<compile_context>
chip_gen: v7x
topology: tpu7x:2x2x1
jax: 0.10.0
libtpu: 0.0.40
codegen_flags: <defaults>
</compile_context>

<pallas_src>
import jax
import jax.numpy as jnp
from jax import lax
from jax.experimental import pallas as pl
from jax.experimental.pallas import tpu as pltpu

# ---------------- problem constants (MNIST-style ConvNet) ----------------
C_PAD = 128            # lane-dense channel / feature padding
K1_PAD = 32            # conv1 im2col contraction: 1*5*5 = 25 -> 32
K2_PAD = 256           # conv2 im2col contraction: 10*5*5 = 250 -> 256
H_IN = W_IN = 28
H1 = W1 = 24           # conv1 "VALID" output spatial
P1H = P1W = 12         # after 2x2 max-pool
H2 = W2 = 8            # conv2 output spatial
P2H = P2W = 4          # after 2x2 max-pool
C1, C2 = 10, 20        # conv1 / conv2 output channels
F_HID, F_OUT = 50, 10  # fc1 / fc2 output features


# ---------------- Pallas kernels ----------------
def conv_pool1_kernel(p1_ref, w1_ref, b1_ref, h1_ref):
    """relu(maxpool2x2(conv1(x) + b1)).

    p1_ref : (4, B*144, 32)  im2col patches; leading axis = (di,dj) tap of each pool window
    w1_ref : (32, 128)       conv1 weights, zero-padded (25->32 rows, 10->128 cols)
    b1_ref : (1, 128)        conv1 bias, zero-padded
    h1_ref : (B*144, 128)    lane-dense pooled + ReLU'd conv1 activations
    """
    w = w1_ref[...]
    acc = jnp.dot(p1_ref[0], w, preferred_element_type=jnp.float32)
    for d in range(1, 4):
        acc = jnp.maximum(acc, jnp.dot(p1_ref[d], w, preferred_element_type=jnp.float32))
    h1_ref[...] = jnp.maximum(acc + b1_ref[...], 0.0)


def conv_pool2_fc_kernel(p2_ref, w2_ref, b2_ref, wf1_ref, bf1_ref, wf2_ref, bf2_ref,
                         out_ref):
    """relu(maxpool2x2(conv2(h1) + b2)) -> fc1 -> ReLU -> fc2 -> log_softmax.

    p2_ref : (4, 16*B, 256)  conv2 im2col patches, rows ordered (pos, batch)
    w2_ref : (256, 128)      conv2 weights, zero-padded
    b2_ref : (1, 128)
    wf1_ref: (16, 128, 128)  fc1 weights, one (in_ch x out) slab per spatial position
    bf1_ref: (1, 128)
    wf2_ref: (128, 128)      fc2 weights
    bf2_ref: (1, 128)
    out_ref: (B, 128)        lane-dense log-softmax output (first 10 lanes valid)
    """
    B = out_ref.shape[0]

    # conv2 + bias + 2x2 max-pool + ReLU (pool = elementwise max over the 4 tap slabs)
    w2 = w2_ref[...]
    acc = jnp.dot(p2_ref[0], w2, preferred_element_type=jnp.float32)
    for d in range(1, 4):
        acc = jnp.maximum(acc, jnp.dot(p2_ref[d], w2, preferred_element_type=jnp.float32))
    h2 = jnp.maximum(acc + b2_ref[...], 0.0)        # (16*B, 128), row = p*B + b
    # TODO(synk): Dropout2d / F.dropout are inference-mode identities; stochastic
    # training path not implemented.

    # fc1 on torch's x.view(-1, 320): sum of per-spatial-position matmuls
    f1 = jnp.zeros((B, C_PAD), jnp.float32)
    for p in range(P2H * P2W):
        f1 = f1 + jnp.dot(h2[p * B:(p + 1) * B, :], wf1_ref[p],
                          preferred_element_type=jnp.float32)
    f1 = jnp.maximum(f1 + bf1_ref[...], 0.0)        # (B, 128)

    # fc2
    logits = jnp.dot(f1, wf2_ref[...], preferred_element_type=jnp.float32) + bf2_ref[...]

    # log_softmax over the 10 real classes (lanes >= 10 are zero padding)
    lane = lax.broadcasted_iota(jnp.int32, (B, C_PAD), 1)
    valid = lane < F_OUT
    masked = jnp.where(valid, logits, jnp.full_like(logits, -1e30))
    m = jnp.max(masked, axis=-1, keepdims=True)
    e = jnp.where(valid, jnp.exp(masked - m), 0.0)
    lse = m + jnp.log(jnp.sum(e, axis=-1, keepdims=True))
    out_ref[...] = (masked - lse).astype(out_ref.dtype)


# ---------------- wrapper (layout plumbing + pallas_call) ----------------
def convnet_forward(x, params):
    """x: (B, 1, 28, 28) float32.  Returns (B, 10) log-probabilities (inference mode)."""
    c1w, c1b, c2w, c2b, f1w, f1b, f2w, f2b = params
    B = x.shape[0]
    f32 = jnp.float32

    # ---- im2col + lane padding for conv1 (zero FLOPs) ----
    img = x[:, 0, :, :]                                                   # (B, 28, 28)
    pat1 = jnp.stack([img[:, ki:ki + H1, kj:kj + W1]
                      for ki in range(5) for kj in range(5)], axis=-1)    # (B, 24, 24, 25)
    pat1 = pat1.reshape(B, P1H, 2, P1W, 2, 25).transpose(2, 4, 0, 1, 3, 5)
    pat1 = pat1.reshape(4, B * P1H * P1W, 25)                             # rows = b,pi,pj
    pat1 = jnp.pad(pat1, ((0, 0), (0, 0), (0, K1_PAD - 25))).astype(f32)

    w1m = jnp.pad(c1w.reshape(C1, 25).T, ((0, K1_PAD - 25), (0, C_PAD - C1))).astype(f32)
    b1p = jnp.pad(c1b, (0, C_PAD - C1)).reshape(1, C_PAD).astype(f32)

    h1 = pl.pallas_call(
        conv_pool1_kernel,
        out_shape=jax.ShapeDtypeStruct((B * P1H * P1W, C_PAD), f32),
        in_specs=[pl.BlockSpec(memory_space=pltpu.VMEM)] * 3,
        out_specs=pl.BlockSpec(memory_space=pltpu.VMEM),
    )(pat1, w1m, b1p)

    # ---- im2col + lane padding for conv2 / fc weights (zero FLOPs) ----
    h1 = h1.reshape(B, P1H, P1W, C_PAD)[:, :, :, :C1]                     # (B, 12, 12, 10)
    pat2 = jnp.stack([h1[:, ki:ki + H2, kj:kj + W2, :]
                      for ki in range(5) for kj in range(5)], axis=3)     # (B, 8, 8, 25, 10)
    pat2 = pat2.reshape(B, H2, W2, 25 * C1)                               # feat = tap*10+ic
    pat2 = pat2.reshape(B, P2H, 2, P2W, 2, 25 * C1).transpose(2, 4, 1, 3, 0, 5)
    pat2 = pat2.reshape(4, P2H * P2W * B, 25 * C1)                        # rows = p*B + b
    pat2 = jnp.pad(pat2, ((0, 0), (0, 0), (0, K2_PAD - 25 * C1))).astype(f32)

    w2m = jnp.pad(c2w.transpose(2, 3, 1, 0).reshape(25 * C1, C2),
                  ((0, K2_PAD - 25 * C1), (0, C_PAD - C2))).astype(f32)
    b2p = jnp.pad(c2b, (0, C_PAD - C2)).reshape(1, C_PAD).astype(f32)

    # fc1 weights split per spatial position p=i*4+j so the kernel never reshuffles lanes:
    # wf1[p, c, o] = f1w[o, c*16 + p]
    wf1 = jnp.pad(f1w.reshape(F_HID, C2, P2H * P2W).transpose(2, 1, 0),
                  ((0, 0), (0, C_PAD - C2), (0, C_PAD - F_HID))).astype(f32)
    bf1 = jnp.pad(f1b, (0, C_PAD - F_HID)).reshape(1, C_PAD).astype(f32)
    wf2 = jnp.pad(f2w.T, ((0, C_PAD - F_HID), (0, C_PAD - F_OUT))).astype(f32)
    bf2 = jnp.pad(f2b, (0, C_PAD - F_OUT)).reshape(1, C_PAD).astype(f32)

    out = pl.pallas_call(
        conv_pool2_fc_kernel,
        out_shape=jax.ShapeDtypeStruct((B, C_PAD), f32),
        in_specs=[pl.BlockSpec(memory_space=pltpu.VMEM)] * 7,
        out_specs=pl.BlockSpec(memory_space=pltpu.VMEM),
    )(pat2, w2m, b2p, wf1, bf1, wf2, bf2)

    return out[:, :F_OUT]


# ---------------- pure-JAX reference (independent path) ----------------
def convnet_reference(x, params):
    c1w, c1b, c2w, c2b, f1w, f1b, f2w, f2b = params
    B = x.shape[0]
    dn = ("NCHW", "OIHW", "NCHW")
    hp = lax.Precision.HIGHEST
    y = lax.conv_general_dilated(x, c1w, (1, 1), "VALID", dimension_numbers=dn,
                                 precision=hp) + c1b[None, :, None, None]
    y = jnp.maximum(jnp.max(y.reshape(B, C1, P1H, 2, P1W, 2), axis=(3, 5)), 0.0)
    y = lax.conv_general_dilated(y, c2w, (1, 1), "VALID", dimension_numbers=dn,
                                 precision=hp) + c2b[None, :, None, None]
    y = jnp.maximum(jnp.max(y.reshape(B, C2, P2H, 2, P2W, 2), axis=(3, 5)), 0.0)
    flat = y.reshape(B, C2 * P2H * P2W)                       # torch .view(-1, 320) order
    f1 = jnp.maximum(jnp.dot(flat, f1w.T, precision=hp) + f1b, 0.0)
    logits = jnp.dot(f1, f2w.T, precision=hp) + f2b
    return logits - jax.scipy.special.logsumexp(logits, axis=1, keepdims=True)


if __name__ == "__main__":
    key = jax.random.PRNGKey(0)
    ks = jax.random.split(key, 9)
    B = 2
    x = jax.random.normal(ks[0], (B, 1, H_IN, W_IN), dtype=jnp.float32)

    def uinit(k, shape, fan_in):
        bound = 1.0 / (fan_in ** 0.5)   # mimics nn.Conv2d / nn.Linear default init range
        return jax.random.uniform(k, shape, minval=-bound, maxval=bound, dtype=jnp.float32)

    c1w = uinit(ks[1], (C1, 1, 5, 5), 25)
    c1b = uinit(ks[2], (C1,), 25)
    c2w = uinit(ks[3], (C2, C1, 5, 5), 250)
    c2b = uinit(ks[4], (C2,), 250)
    f1w = uinit(ks[5], (F_HID, 320), 320)
    f1b = uinit(ks[6], (F_HID,), 320)
    f2w = uinit(ks[7], (F_OUT, F_HID), 50)
    f2b = uinit(ks[8], (F_OUT,), 50)
    params = (c1w, c1b, c2w, c2b, f1w, f1b, f2w, f2b)

    fwd = jax.jit(convnet_forward)
    out = jax.block_until_ready(fwd(x, params))

    ref = convnet_reference(x, params)
    assert out.shape == (B, F_OUT)
    max_err = float(jnp.max(jnp.abs(out - ref)))
    assert jnp.allclose(out, ref, atol=1e-3, rtol=1e-3), f"max abs diff {max_err}"
    # log-probabilities should exponentiate-sum to 1 per row
    assert jnp.allclose(jnp.sum(jnp.exp(out), axis=1), 1.0, atol=1e-3)

    print("KERNEL_OK")
</pallas_src>

<mosaic_0001>
module attributes {stable_mosaic.version = 11 : i64} {
  func.func @conv_pool1_kernel(%arg0: memref<4x288x32xf32, #tpu.memory_space<vmem>>, %arg1: memref<32x128xf32, #tpu.memory_space<vmem>>, %arg2: memref<1x128xf32, #tpu.memory_space<vmem>>, %arg3: memref<288x128xf32, #tpu.memory_space<vmem>>) attributes {dimension_semantics = [], scalar_prefetch = 0 : i64, scratch_operands = 0 : i64, tpu.core_type = #tpu.core_type<tc>} {
    %c0 = arith.constant 0 : index
    %c0_0 = arith.constant 0 : index
    %0 = vector.load %arg1[%c0, %c0_0] : memref<32x128xf32, #tpu.memory_space<vmem>>, vector<32x128xf32>
    %c0_1 = arith.constant 0 : index
    %c0_2 = arith.constant 0 : index
    %c0_3 = arith.constant 0 : index
    %1 = vector.load %arg0[%c0_1, %c0_2, %c0_3] : memref<4x288x32xf32, #tpu.memory_space<vmem>>, vector<1x288x32xf32>
    %2 = vector.shape_cast %1 : vector<1x288x32xf32> to vector<288x32xf32>
    %cst = arith.constant dense<0.000000e+00> : vector<288x128xf32>
    %3 = tpu.matmul %2, %0, %cst {dimension_numbers = #tpu.dot_dimension_numbers<[1], [0], [0], [1], [0, 0, 1, 1], [], []>} : vector<288x32xf32>, vector<32x128xf32>, vector<288x128xf32> -> vector<288x128xf32>
    %c1 = arith.constant 1 : index
    %c0_4 = arith.constant 0 : index
    %c0_5 = arith.constant 0 : index
    %4 = vector.load %arg0[%c1, %c0_4, %c0_5] : memref<4x288x32xf32, #tpu.memory_space<vmem>>, vector<1x288x32xf32>
    %5 = vector.shape_cast %4 : vector<1x288x32xf32> to vector<288x32xf32>
    %cst_6 = arith.constant dense<0.000000e+00> : vector<288x128xf32>
    %6 = tpu.matmul %5, %0, %cst_6 {dimension_numbers = #tpu.dot_dimension_numbers<[1], [0], [0], [1], [0, 0, 1, 1], [], []>} : vector<288x32xf32>, vector<32x128xf32>, vector<288x128xf32> -> vector<288x128xf32>
    %7 = arith.maximumf %3, %6 : vector<288x128xf32>
    %c2 = arith.constant 2 : index
    %c0_7 = arith.constant 0 : index
    %c0_8 = arith.constant 0 : index
    %8 = vector.load %arg0[%c2, %c0_7, %c0_8] : memref<4x288x32xf32, #tpu.memory_space<vmem>>, vector<1x288x32xf32>
    %9 = vector.shape_cast %8 : vector<1x288x32xf32> to vector<288x32xf32>
    %cst_9 = arith.constant dense<0.000000e+00> : vector<288x128xf32>
    %10 = tpu.matmul %9, %0, %cst_9 {dimension_numbers = #tpu.dot_dimension_numbers<[1], [0], [0], [1], [0, 0, 1, 1], [], []>} : vector<288x32xf32>, vector<32x128xf32>, vector<288x128xf32> -> vector<288x128xf32>
    %11 = arith.maximumf %7, %10 : vector<288x128xf32>
    %c3 = arith.constant 3 : index
    %c0_10 = arith.constant 0 : index
    %c0_11 = arith.constant 0 : index
    %12 = vector.load %arg0[%c3, %c0_10, %c0_11] : memref<4x288x32xf32, #tpu.memory_space<vmem>>, vector<1x288x32xf32>
    %13 = vector.shape_cast %12 : vector<1x288x32xf32> to vector<288x32xf32>
    %cst_12 = arith.constant dense<0.000000e+00> : vector<288x128xf32>
    %14 = tpu.matmul %13, %0, %cst_12 {dimension_numbers = #tpu.dot_dimension_numbers<[1], [0], [0], [1], [0, 0, 1, 1], [], []>} : vector<288x32xf32>, vector<32x128xf32>, vector<288x128xf32> -> vector<288x128xf32>
    %15 = arith.maximumf %11, %14 : vector<288x128xf32>
    %c0_13 = arith.constant 0 : index
    %c0_14 = arith.constant 0 : index
    %16 = vector.load %arg2[%c0_13, %c0_14] : memref<1x128xf32, #tpu.memory_space<vmem>>, vector<1x128xf32>
    %17 = vector.broadcast %16 : vector<1x128xf32> to vector<288x128xf32>
    %18 = arith.addf %15, %17 : vector<288x128xf32>
    %cst_15 = arith.constant 0.000000e+00 : f32
    %19 = vector.broadcast %cst_15 : f32 to vector<288x128xf32>
    %20 = arith.maximumf %18, %19 : vector<288x128xf32>
    %c0_16 = arith.constant 0 : index
    %c0_17 = arith.constant 0 : index
    %21 = vector.load %arg3[%c0_16, %c0_17] : memref<288x128xf32, #tpu.memory_space<vmem>>, vector<288x128xf32>
    tpu.vector_store %arg3[%c0_16, %c0_17], %20 {strides = array<i32>} : memref<288x128xf32, #tpu.memory_space<vmem>>, vector<288x128xf32>,
    return
  }
}

module attributes {stable_mosaic.version = 11 : i64} {
  func.func @conv_pool2_fc_kernel(%arg0: memref<4x32x256xf32, #tpu.memory_space<vmem>>, %arg1: memref<256x128xf32, #tpu.memory_space<vmem>>, %arg2: memref<1x128xf32, #tpu.memory_space<vmem>>, %arg3: memref<16x128x128xf32, #tpu.memory_space<vmem>>, %arg4: memref<1x128xf32, #tpu.memory_space<vmem>>, %arg5: memref<128x128xf32, #tpu.memory_space<vmem>>, %arg6: memref<1x128xf32, #tpu.memory_space<vmem>>, %arg7: memref<2x128xf32, #tpu.memory_space<vmem>>) attributes {dimension_semantics = [], scalar_prefetch = 0 : i64, scratch_operands = 0 : i64, tpu.core_type = #tpu.core_type<tc>} {
    %c0 = arith.constant 0 : index
    %c0_0 = arith.constant 0 : index
    %0 = vector.load %arg1[%c0, %c0_0] : memref<256x128xf32, #tpu.memory_space<vmem>>, vector<256x128xf32>
    %c0_1 = arith.constant 0 : index
    %c0_2 = arith.constant 0 : index
    %c0_3 = arith.constant 0 : index
    %1 = vector.load %arg0[%c0_1, %c0_2, %c0_3] : memref<4x32x256xf32, #tpu.memory_space<vmem>>, vector<1x32x256xf32>
    %2 = vector.shape_cast %1 : vector<1x32x256xf32> to vector<32x256xf32>
    %cst = arith.constant dense<0.000000e+00> : vector<32x128xf32>
    %3 = tpu.matmul %2, %0, %cst {dimension_numbers = #tpu.dot_dimension_numbers<[1], [0], [0], [1], [0, 0, 1, 1], [], []>} : vector<32x256xf32>, vector<256x128xf32>, vector<32x128xf32> -> vector<32x128xf32>
    %c1 = arith.constant 1 : index
    %c0_4 = arith.constant 0 : index
    %c0_5 = arith.constant 0 : index
    %4 = vector.load %arg0[%c1, %c0_4, %c0_5] : memref<4x32x256xf32, #tpu.memory_space<vmem>>, vector<1x32x256xf32>
    %5 = vector.shape_cast %4 : vector<1x32x256xf32> to vector<32x256xf32>
    %cst_6 = arith.constant dense<0.000000e+00> : vector<32x128xf32>
    %6 = tpu.matmul %5, %0, %cst_6 {dimension_numbers = #tpu.dot_dimension_numbers<[1], [0], [0], [1], [0, 0, 1, 1], [], []>} : vector<32x256xf32>, vector<256x128xf32>, vector<32x128xf32> -> vector<32x128xf32>
    %7 = arith.maximumf %3, %6 : vector<32x128xf32>
    %c2 = arith.constant 2 : index
    %c0_7 = arith.constant 0 : index
    %c0_8 = arith.constant 0 : index
    %8 = vector.load %arg0[%c2, %c0_7, %c0_8] : memref<4x32x256xf32, #tpu.memory_space<vmem>>, vector<1x32x256xf32>
    %9 = vector.shape_cast %8 : vector<1x32x256xf32> to vector<32x256xf32>
    %cst_9 = arith.constant dense<0.000000e+00> : vector<32x128xf32>
    %10 = tpu.matmul %9, %0, %cst_9 {dimension_numbers = #tpu.dot_dimension_numbers<[1], [0], [0], [1], [0, 0, 1, 1], [], []>} : vector<32x256xf32>, vector<256x128xf32>, vector<32x128xf32> -> vector<32x128xf32>
    %11 = arith.maximumf %7, %10 : vector<32x128xf32>
    %c3 = arith.constant 3 : index
    %c0_10 = arith.constant 0 : index
    %c0_11 = arith.constant 0 : index
    %12 = vector.load %arg0[%c3, %c0_10, %c0_11] : memref<4x32x256xf32, #tpu.memory_space<vmem>>, vector<1x32x256xf32>
    %13 = vector.shape_cast %12 : vector<1x32x256xf32> to vector<32x256xf32>
    %cst_12 = arith.constant dense<0.000000e+00> : vector<32x128xf32>
    %14 = tpu.matmul %13, %0, %cst_12 {dimension_numbers = #tpu.dot_dimension_numbers<[1], [0], [0], [1], [0, 0, 1, 1], [], []>} : vector<32x256xf32>, vector<256x128xf32>, vector<32x128xf32> -> vector<32x128xf32>
    %15 = arith.maximumf %11, %14 : vector<32x128xf32>
    %c0_13 = arith.constant 0 : index
    %c0_14 = arith.constant 0 : index
    %16 = vector.load %arg2[%c0_13, %c0_14] : memref<1x128xf32, #tpu.memory_space<vmem>>, vector<1x128xf32>
    %17 = vector.broadcast %16 : vector<1x128xf32> to vector<32x128xf32>
    %18 = arith.addf %15, %17 : vector<32x128xf32>
    %cst_15 = arith.constant 0.000000e+00 : f32
    %19 = vector.broadcast %cst_15 : f32 to vector<32x128xf32>
    %20 = arith.maximumf %18, %19 : vector<32x128xf32>
    %cst_16 = arith.constant 0.000000e+00 : f32
    %21 = vector.broadcast %cst_16 : f32 to vector<2x128xf32>
    %22 = vector.extract_strided_slice %20 {offsets = [0, 0], sizes = [2, 128], strides = [1, 1]} : vector<32x128xf32> to vector<2x128xf32>
    %c0_17 = arith.constant 0 : index
    %c0_18 = arith.constant 0 : index
    %c0_19 = arith.constant 0 : index
    %23 = vector.load %arg3[%c0_17, %c0_18, %c0_19] : memref<16x128x128xf32, #tpu.memory_space<vmem>>, vector<1x128x128xf32>
    %24 = vector.shape_cast %23 : vector<1x128x128xf32> to vector<128x128xf32>
    %cst_20 = arith.constant dense<0.000000e+00> : vector<2x128xf32>
    %25 = tpu.matmul %22, %24, %cst_20 {dimension_numbers = #tpu.dot_dimension_numbers<[1], [0], [0], [1], [0, 0, 1, 1], [], []>} : vector<2x128xf32>, vector<128x128xf32>, vector<2x128xf32> -> vector<2x128xf32>
    %26 = arith.addf %21, %25 : vector<2x128xf32>
    %27 = vector.extract_strided_slice %20 {offsets = [2, 0], sizes = [2, 128], strides = [1, 1]} : vector<32x128xf32> to vector<2x128xf32>
    %c1_21 = arith.constant 1 : index
    %c0_22 = arith.constant 0 : index
    %c0_23 = arith.constant 0 : index
    %28 = vector.load %arg3[%c1_21, %c0_22, %c0_23] : memref<16x128x128xf32, #tpu.memory_space<vmem>>, vector<1x128x128xf32>
    %29 = vector.shape_cast %28 : vector<1x128x128xf32> to vector<128x128xf32>
    %cst_24 = arith.constant dense<0.000000e+00> : vector<2x128xf32>
    %30 = tpu.matmul %27, %29, %cst_24 {dimension_numbers = #tpu.dot_dimension_numbers<[1], [0], [0], [1], [0, 0, 1, 1], [], []>} : vector<2x128xf32>, vector<128x128xf32>, vector<2x128xf32> -> vector<2x128xf32>
    %31 = arith.addf %26, %30 : vector<2x128xf32>
    %32 = vector.extract_strided_slice %20 {offsets = [4, 0], sizes = [2, 128], strides = [1, 1]} : vector<32x128xf32> to vector<2x128xf32>
    %c2_25 = arith.constant 2 : index
    %c0_26 = arith.constant 0 : index
    %c0_27 = arith.constant 0 : index
    %33 = vector.load %arg3[%c2_25, %c0_26, %c0_27] : memref<16x128x128xf32, #tpu.memory_space<vmem>>, vector<1x128x128xf32>
    %34 = vector.shape_cast %33 : vector<1x128x128xf32> to vector<128x128xf32>
    %cst_28 = arith.constant dense<0.000000e+00> : vector<2x128xf32>
    %35 = tpu.matmul %32, %34, %cst_28 {dimension_numbers = #tpu.dot_dimension_numbers<[1], [0], [0], [1], [0, 0, 1, 1], [], []>} : vector<2x128xf32>, vector<128x128xf32>, vector<2x128xf32> -> vector<2x128xf32>
    %36 = arith.addf %31, %35 : vector<2x128xf32>
    %37 = vector.extract_strided_slice %20 {offsets = [6, 0], sizes = [2, 128], strides = [1, 1]} : vector<32x128xf32> to vector<2x128xf32>
    %c3_29 = arith.constant 3 : index
    %c0_30 = arith.constant 0 : index
    %c0_31 = arith.constant 0 : index
    %38 = vector.load %arg3[%c3_29, %c0_30, %c0_31] : memref<16x128x128xf32, #tpu.memory_space<vmem>>, vector<1x128x128xf32>
    %39 = vector.shape_cast %38 : vector<1x128x128xf32> to vector<128x128xf32>
    %cst_32 = arith.constant dense<0.000000e+00> : vector<2x128xf32>
    %40 = tpu.matmul %37, %39, %cst_32 {dimension_numbers = #tpu.dot_dimension_numbers<[1], [0], [0], [1], [0, 0, 1, 1], [], []>} : vector<2x128xf32>, vector<128x128xf32>, vector<2x128xf32> -> vector<2x128xf32>
    %41 = arith.addf %36, %40 : vector<2x128xf32>
    %42 = vector.extract_strided_slice %20 {offsets = [8, 0], sizes = [2, 128], strides = [1, 1]} : vector<32x128xf32> to vector<2x128xf32>
    %c4 = arith.constant 4 : index
    %c0_33 = arith.constant 0 : index
    %c0_34 = arith.constant 0 : index
    %43 = vector.load %arg3[%c4, %c0_33, %c0_34] : memref<16x128x128xf32, #tpu.memory_space<vmem>>, vector<1x128x128xf32>
    %44 = vector.shape_cast %43 : vector<1x128x128xf32> to vector<128x128xf32>
    %cst_35 = arith.constant dense<0.000000e+00> : vector<2x128xf32>
    %45 = tpu.matmul %42, %44, %cst_35 {dimension_numbers = #tpu.dot_dimension_numbers<[1], [0], [0], [1], [0, 0, 1, 1], [], []>} : vector<2x128xf32>, vector<128x128xf32>, vector<2x128xf32> -> vector<2x128xf32>
    %46 = arith.addf %41, %45 : vector<2x128xf32>
    %47 = vector.extract_strided_slice %20 {offsets = [10, 0], sizes = [2, 128], strides = [1, 1]} : vector<32x128xf32> to vector<2x128xf32>
    %c5 = arith.constant 5 : index
    %c0_36 = arith.constant 0 : index
    %c0_37 = arith.constant 0 : index
    %48 = vector.load %arg3[%c5, %c0_36, %c0_37] : memref<16x128x128xf32, #tpu.memory_space<vmem>>, vector<1x128x128xf32>
    %49 = vector.shape_cast %48 : vector<1x128x128xf32> to vector<128x128xf32>
    %cst_38 = arith.constant dense<0.000000e+00> : vector<2x128xf32>
    %50 = tpu.matmul %47, %49, %cst_38 {dimension_numbers = #tpu.dot_dimension_numbers<[1], [0], [0], [1], [0, 0, 1, 1], [], []>} : vector<2x128xf32>, vector<128x128xf32>, vector<2x128xf32> -> vector<2x128xf32>
    %51 = arith.addf %46, %50 : vector<2x128xf32>
    %52 = vector.extract_strided_slice %20 {offsets = [12, 0], sizes = [2, 128], strides = [1, 1]} : vector<32x128xf32> to vector<2x128xf32>
    %c6 = arith.constant 6 : index
    %c0_39 = arith.constant 0 : index
    %c0_40 = arith.constant 0 : index
    %53 = vector.load %arg3[%c6, %c0_39, %c0_40] : memref<16x128x128xf32, #tpu.memory_space<vmem>>, vector<1x128x128xf32>
    %54 = vector.shape_cast %53 : vector<1x128x128xf32> to vector<128x128xf32>
    %cst_41 = arith.constant dense<0.000000e+00> : vector<2x128xf32>
    %55 = tpu.matmul %52, %54, %cst_41 {dimension_numbers = #tpu.dot_dimension_numbers<[1], [0], [0], [1], [0, 0, 1, 1], [], []>} : vector<2x128xf32>, vector<128x128xf32>, vector<2x128xf32> -> vector<2x128xf32>
    %56 = arith.addf %51, %55 : vector<2x128xf32>
    %57 = vector.extract_strided_slice %20 {offsets = [14, 0], sizes = [2, 128], strides = [1, 1]} : vector<32x128xf32> to vector<2x128xf32>
    %c7 = arith.constant 7 : index
    %c0_42 = arith.constant 0 : index
    %c0_43 = arith.constant 0 : index
    %58 = vector.load %arg3[%c7, %c0_42, %c0_43] : memref<16x128x128xf32, #tpu.memory_space<vmem>>, vector<1x128x128xf32>
    %59 = vector.shape_cast %58 : vector<1x128x128xf32> to vector<128x128xf32>
    %cst_44 = arith.constant dense<0.000000e+00> : vector<2x128xf32>
    %60 = tpu.matmul %57, %59, %cst_44 {dimension_numbers = #tpu.dot_dimension_numbers<[1], [0], [0], [1], [0, 0, 1, 1], [], []>} : vector<2x128xf32>, vector<128x128xf32>, vector<2x128xf32> -> vector<2x128xf32>
    %61 = arith.addf %56, %60 : vector<2x128xf32>
    %62 = vector.extract_strided_slice %20 {offsets = [16, 0], sizes = [2, 128], strides = [1, 1]} : vector<32x128xf32> to vector<2x128xf32>
    %c8 = arith.constant 8 : index
    %c0_45 = arith.constant 0 : index
    %c0_46 = arith.constant 0 : index
    %63 = vector.load %arg3[%c8, %c0_45, %c0_46] : memref<16x128x128xf32, #tpu.memory_space<vmem>>, vector<1x128x128xf32>
    %64 = vector.shape_cast %63 : vector<1x128x128xf32> to vector<128x128xf32>
    %cst_47 = arith.constant dense<0.000000e+00> : vector<2x128xf32>
    %65 = tpu.matmul %62, %64, %cst_47 {dimension_numbers = #tpu.dot_dimension_numbers<[1], [0], [0], [1], [0, 0, 1, 1], [], []>} : vector<2x128xf32>, vector<128x128xf32>, vector<2x128xf32> -> vector<2x128xf32>
    %66 = arith.addf %61, %65 : vector<2x128xf32>
    %67 = vector.extract_strided_slice %20 {offsets = [18, 0], sizes = [2, 128], strides = [1, 1]} : vector<32x128xf32> to vector<2x128xf32>
    %c9 = arith.constant 9 : index
    %c0_48 = arith.constant 0 : index
    %c0_49 = arith.constant 0 : index
    %68 = vector.load %arg3[%c9, %c0_48, %c0_49] : memref<16x128x128xf32, #tpu.memory_space<vmem>>, vector<1x128x128xf32>
    %69 = vector.shape_cast %68 : vector<1x128x128xf32> to vector<128x128xf32>
    %cst_50 = arith.constant dense<0.000000e+00> : vector<2x128xf32>
    %70 = tpu.matmul %67, %69, %cst_50 {dimension_numbers = #tpu.dot_dimension_numbers<[1], [0], [0], [1], [0, 0, 1, 1], [], []>} : vector<2x128xf32>, vector<128x128xf32>, vector<2x128xf32> -> vector<2x128xf32>
    %71 = arith.addf %66, %70 : vector<2x128xf32>
    %72 = vector.extract_strided_slice %20 {offsets = [20, 0], sizes = [2, 128], strides = [1, 1]} : vector<32x128xf32> to vector<2x128xf32>
    %c10 = arith.constant 10 : index
    %c0_51 = arith.constant 0 : index
    %c0_52 = arith.constant 0 : index
    %73 = vector.load %arg3[%c10, %c0_51, %c0_52] : memref<16x128x128xf32, #tpu.memory_space<vmem>>, vector<1x128x128xf32>
    %74 = vector.shape_cast %73 : vector<1x128x128xf32> to vector<128x128xf32>
    %cst_53 = arith.constant dense<0.000000e+00> : vector<2x128xf32>
    %75 = tpu.matmul %72, %74, %cst_53 {dimension_numbers = #tpu.dot_dimension_numbers<[1], [0], [0], [1], [0, 0, 1, 1], [], []>} : vector<2x128xf32>, vector<128x128xf32>, vector<2x128xf32> -> vector<2x128xf32>
    %76 = arith.addf %71, %75 : vector<2x128xf32>
    %77 = vector.extract_strided_slice %20 {offsets = [22, 0], sizes = [2, 128], strides = [1, 1]} : vector<32x128xf32> to vector<2x128xf32>
    %c11 = arith.constant 11 : index
    %c0_54 = arith.constant 0 : index
    %c0_55 = arith.constant 0 : index
    %78 = vector.load %arg3[%c11, %c0_54, %c0_55] : memref<16x128x128xf32, #tpu.memory_space<vmem>>, vector<1x128x128xf32>
    %79 = vector.shape_cast %78 : vector<1x128x128xf32> to vector<128x128xf32>
    %cst_56 = arith.constant dense<0.000000e+00> : vector<2x128xf32>
    %80 = tpu.matmul %77, %79, %cst_56 {dimension_numbers = #tpu.dot_dimension_numbers<[1], [0], [0], [1], [0, 0, 1, 1], [], []>} : vector<2x128xf32>, vector<128x128xf32>, vector<2x128xf32> -> vector<2x128xf32>
    %81 = arith.addf %76, %80 : vector<2x128xf32>
    %82 = vector.extract_strided_slice %20 {offsets = [24, 0], sizes = [2, 128], strides = [1, 1]} : vector<32x128xf32> to vector<2x128xf32>
    %c12 = arith.constant 12 : index
    %c0_57 = arith.constant 0 : index
    %c0_58 = arith.constant 0 : index
    %83 = vector.load %arg3[%c12, %c0_57, %c0_58] : memref<16x128x128xf32, #tpu.memory_space<vmem>>, vector<1x128x128xf32>
    %84 = vector.shape_cast %83 : vector<1x128x128xf32> to vector<128x128xf32>
    %cst_59 = arith.constant dense<0.000000e+00> : vector<2x128xf32>
    %85 = tpu.matmul %82, %84, %cst_59 {dimension_numbers = #tpu.dot_dimension_numbers<[1], [0], [0], [1], [0, 0, 1, 1], [], []>} : vector<2x128xf32>, vector<128x128xf32>, vector<2x128xf32> -> vector<2x128xf32>
    %86 = arith.addf %81, %85 : vector<2x128xf32>
    %87 = vector.extract_strided_slice %20 {offsets = [26, 0], sizes = [2, 128], strides = [1, 1]} : vector<32x128xf32> to vector<2x128xf32>
    %c13 = arith.constant 13 : index
    %c0_60 = arith.constant 0 : index
    %c0_61 = arith.constant 0 : index
    %88 = vector.load %arg3[%c13, %c0_60, %c0_61] : memref<16x128x128xf32, #tpu.memory_space<vmem>>, vector<1x128x128xf32>
    %89 = vector.shape_cast %88 : vector<1x128x128xf32> to vector<128x128xf32>
    %cst_62 = arith.constant dense<0.000000e+00> : vector<2x128xf32>
    %90 = tpu.matmul %87, %89, %cst_62 {dimension_numbers = #tpu.dot_dimension_numbers<[1], [0], [0], [1], [0, 0, 1, 1], [], []>} : vector<2x128xf32>, vector<128x128xf32>, vector<2x128xf32> -> vector<2x128xf32>
    %91 = arith.addf %86, %90 : vector<2x128xf32>
    %92 = vector.extract_strided_slice %20 {offsets = [28, 0], sizes = [2, 128], strides = [1, 1]} : vector<32x128xf32> to vector<2x128xf32>
    %c14 = arith.constant 14 : index
    %c0_63 = arith.constant 0 : index
    %c0_64 = arith.constant 0 : index
    %93 = vector.load %arg3[%c14, %c0_63, %c0_64] : memref<16x128x128xf32, #tpu.memory_space<vmem>>, vector<1x128x128xf32>
    %94 = vector.shape_cast %93 : vector<1x128x128xf32> to vector<128x128xf32>
    %cst_65 = arith.constant dense<0.000000e+00> : vector<2x128xf32>
    %95 = tpu.matmul %92, %94, %cst_65 {dimension_numbers = #tpu.dot_dimension_numbers<[1], [0], [0], [1], [0, 0, 1, 1], [], []>} : vector<2x128xf32>, vector<128x128xf32>, vector<2x128xf32> -> vector<2x128xf32>
    %96 = arith.addf %91, %95 : vector<2x128xf32>
    %97 = vector.extract_strided_slice %20 {offsets = [30, 0], sizes = [2, 128], strides = [1, 1]} : vector<32x128xf32> to vector<2x128xf32>
    %c15 = arith.constant 15 : index
    %c0_66 = arith.constant 0 : index
    %c0_67 = arith.constant 0 : index
    %98 = vector.load %arg3[%c15, %c0_66, %c0_67] : memref<16x128x128xf32, #tpu.memory_space<vmem>>, vector<1x128x128xf32>
    %99 = vector.shape_cast %98 : vector<1x128x128xf32> to vector<128x128xf32>
    %cst_68 = arith.constant dense<0.000000e+00> : vector<2x128xf32>
    %100 = tpu.matmul %97, %99, %cst_68 {dimension_numbers = #tpu.dot_dimension_numbers<[1], [0], [0], [1], [0, 0, 1, 1], [], []>} : vector<2x128xf32>, vector<128x128xf32>, vector<2x128xf32> -> vector<2x128xf32>
    %101 = arith.addf %96, %100 : vector<2x128xf32>
    %c0_69 = arith.constant 0 : index
    %c0_70 = arith.constant 0 : index
    %102 = vector.load %arg4[%c0_69, %c0_70] : memref<1x128xf32, #tpu.memory_space<vmem>>, vector<1x128xf32>
    %103 = vector.broadcast %102 : vector<1x128xf32> to vector<2x128xf32>
    %104 = arith.addf %101, %103 : vector<2x128xf32>
    %cst_71 = arith.constant 0.000000e+00 : f32
    %105 = vector.broadcast %cst_71 : f32 to vector<2x128xf32>
    %106 = arith.maximumf %104, %105 : vector<2x128xf32>
    %c0_72 = arith.constant 0 : index
    %c0_73 = arith.constant 0 : index
    %107 = vector.load %arg5[%c0_72, %c0_73] : memref<128x128xf32, #tpu.memory_space<vmem>>, vector<128x128xf32>
    %cst_74 = arith.constant dense<0.000000e+00> : vector<2x128xf32>
    %108 = tpu.matmul %106, %107, %cst_74 {dimension_numbers = #tpu.dot_dimension_numbers<[1], [0], [0], [1], [0, 0, 1, 1], [], []>} : vector<2x128xf32>, vector<128x128xf32>, vector<2x128xf32> -> vector<2x128xf32>
    %c0_75 = arith.constant 0 : index
    %c0_76 = arith.constant 0 : index
    %109 = vector.load %arg6[%c0_75, %c0_76] : memref<1x128xf32, #tpu.memory_space<vmem>>, vector<1x128xf32>
    %110 = vector.broadcast %109 : vector<1x128xf32> to vector<2x128xf32>
    %111 = arith.addf %108, %110 : vector<2x128xf32>
    %112 = tpu.iota {dimensions = array<i32: 1>} : vector<2x128xi32>
    %c10_i32 = arith.constant 10 : i32
    %113 = vector.broadcast %c10_i32 : i32 to vector<2x128xi32>
    %114 = arith.cmpi slt, %112, %113 : vector<2x128xi32>
    %cst_77 = arith.constant -1.000000e+30 : f32
    %115 = vector.broadcast %cst_77 : f32 to vector<2x128xf32>
    %116 = arith.select %114, %111, %115 : vector<2x128xi1>, vector<2x128xf32>
    %cst_78 = arith.constant dense<0xFF800000> : vector<2xf32>
    %117 = vector.multi_reduction <maximumf>, %116, %cst_78 [1] : vector<2x128xf32> to vector<2xf32>
    %118 = vector.shape_cast %117 : vector<2xf32> to vector<2x1xf32>
    %119 = vector.broadcast %118 : vector<2x1xf32> to vector<2x128xf32>
    %120 = arith.subf %116, %119 : vector<2x128xf32>
    %121 = math.exp %120 : vector<2x128xf32>
    %cst_79 = arith.constant 0.000000e+00 : f32
    %122 = vector.broadcast %cst_79 : f32 to vector<2x128xf32>
    %123 = arith.select %114, %121, %122 : vector<2x128xi1>, vector<2x128xf32>
    %cst_80 = arith.constant dense<0.000000e+00> : vector<2xf32>
    %124 = vector.multi_reduction <add>, %123, %cst_80 [1] : vector<2x128xf32> to vector<2xf32>
    %125 = vector.shape_cast %124 : vector<2xf32> to vector<2x1xf32>
    %126 = math.log %125 : vector<2x1xf32>
    %127 = arith.addf %118, %126 : vector<2x1xf32>
    %128 = vector.broadcast %127 : vector<2x1xf32> to vector<2x128xf32>
    %129 = arith.subf %116, %128 : vector<2x128xf32>
    %c0_81 = arith.constant 0 : index
    %c0_82 = arith.constant 0 : index
    %130 = vector.load %arg7[%c0_81, %c0_82] : memref<2x128xf32, #tpu.memory_space<vmem>>, vector<2x128xf32>
    tpu.vector_store %arg7[%c0_81, %c0_82], %129 {strides = array<i32>} : memref<2x128xf32, #tpu.memory_space<vmem>>, vector<2x128xf32>,
    return
  }
}

</mosaic_0001>

<bundles_post_ra>
// kernel: convnet_forward.2
= control target key start
LH: loop header
LB: loop body
LE: loop exit
PB: predicated region body
PF: predicated region fallthrough
CT: control target
= control target key end

     0   :  { %vm54_vm0 = vcmask 261120   ;;  %s3579_s1 = inlined_call_operand.vmem [shape: f32[32,128], index: 1, kind: input, shape index: {}]   ;;  %s3580_s0 = inlined_call_operand.vmem [shape: f32[4,288,32], index: 0, kind: input, shape index: {}]   ;;  %s3581_s2 = inlined_call_operand.vmem [shape: f32[1,128], index: 2, kind: input, shape index: {}]   ;;  %s3582_s3 = inlined_call_operand.vmem [shape: f32[288,128], index: 3, kind: output, shape index: {}]  }
   0x1   :  { %v14_v0 = vld [vmem:[%s3579_s1] sm:$0xff]  ;;  %v15_v1 = vld [vmem:[%s3579_s1 + $0x8] sm:$0xff]  ;;  %v16_v2 = vld [vmem:[%s3579_s1 + $0x10] sm:$0xff] }
   0x2   :  { %v2466_v3 = vpack.c.bf16 %v15_v1, %v14_v0  ;;  %v17_v4 = vld [vmem:[%s3579_s1 + $0x18] sm:$0xff]  ;;  %v18_v5 = vld [vmem:[%s3580_s0] sm:$0xff]  ;;  %v19_v8 = vld [vmem:[%s3580_s0 + $0x8] sm:$0xff] }
   0x3   :  { %v1841_v6 = vld [vmem:[%s3580_s0 + $0x120] sm:$0xff]  ;;  %v2470_v7 = vpack.c.bf16 %v17_v4, %v16_v2  ;;  %2226 = vmatprep.mubr.msk.f32.mxu0 %vm54_vm0, %v18_v5  ;;  %v1842_v9 = vld [vmem:[%s3580_s0 + $0x128] sm:$0xff]  ;;  %v20_v10 = vld [vmem:[%s3580_s0 + $0x10] sm:$0xff] }
   0x4   :  { %2288 = vmatprep.mubr.msk.f32.mxu1 %vm54_vm0, %v1841_v6  ;;  %2467 = vmatprep.subr.bf16.mxu0 %v2466_v3  ;;  %v1843_v11 = vld [vmem:[%s3580_s0 + $0x130] sm:$0xff]  ;;  %v21_v12 = vld [vmem:[%s3580_s0 + $0x18] sm:$0xff]  ;;  %v22_v14 = vld [vmem:[%s3580_s0 + $0x20] sm:$0xff] }
   0x5   :  { %2475 = vmatprep.subr.bf16.mxu1 %v2466_v3  ;;  %2469 = vmatpush3.bf16.msra.mxu0 %v2466_v3  ;;  %v1844_v13 = vld [vmem:[%s3580_s0 + $0x138] sm:$0xff]  ;;  %v1845_v15 = vld [vmem:[%s3580_s0 + $0x140] sm:$0xff]  ;;  %v23_v16 = vld [vmem:[%s3580_s0 + $0x28] sm:$0xff] }
   0x6   :  { %2477 = vmatpush3.bf16.msra.mxu1 %v2466_v3  ;;  %2471 = vmatprep.subr.bf16.mxu0 %v2470_v7  ;;  %v1846_v17 = vld [vmem:[%s3580_s0 + $0x148] sm:$0xff]  ;;  %v24_v18 = vld [vmem:[%s3580_s0 + $0x30] sm:$0xff]  ;;  %v25_v20 = vld [vmem:[%s3580_s0 + $0x38] sm:$0xff] }
   0x7   :  { %2479 = vmatprep.subr.bf16.mxu1 %v2470_v7  ;;  %v1847_v19 = vld [vmem:[%s3580_s0 + $0x150] sm:$0xff]  ;;  %v1848_v21 = vld [vmem:[%s3580_s0 + $0x158] sm:$0xff]  ;;  %v26_v22 = vld [vmem:[%s3580_s0 + $0x40] sm:$0xff] }
   0x8   :  { %v1849_v23 = vld [vmem:[%s3580_s0 + $0x160] sm:$0xff]  ;;  %v27_v24 = vld [vmem:[%s3580_s0 + $0x48] sm:$0xff]  ;;  %v28_v26 = vld [vmem:[%s3580_s0 + $0x50] sm:$0xff] }
   0x9   :  { %2473 = vmatpush3.bf16.msra.mxu0 %v2470_v7  ;;  %v1850_v25 = vld [vmem:[%s3580_s0 + $0x168] sm:$0xff]  ;;  %v1851_v27 = vld [vmem:[%s3580_s0 + $0x170] sm:$0xff]  ;;  %v29_v28 = vld [vmem:[%s3580_s0 + $0x58] sm:$0xff] }
   0xa   :  { %2481 = vmatpush3.bf16.msra.mxu1 %v2470_v7  ;;  %2483 = vmatprep.subr.bf16.mxu0 %v2466_v3  ;;  %v1852_v29 = vld [vmem:[%s3580_s0 + $0x178] sm:$0xff]  ;;  %v30_v30 = vld [vmem:[%s3580_s0 + $0x60] sm:$0xff]  ;;  %v31_v32 = vld [vmem:[%s3580_s0 + $0x68] sm:$0xff] }
   0xb   :  { %2491 = vmatprep.subr.bf16.mxu1 %v2466_v3  ;;  %v1853_v31 = vld [vmem:[%s3580_s0 + $0x180] sm:$0xff]  ;;  %v1854_v33 = vld [vmem:[%s3580_s0 + $0x188] sm:$0xff]  ;;  %v32_v34 = vld [vmem:[%s3580_s0 + $0x70] sm:$0xff] }
   0xc   :  { %2227 = vmatmul.mubr.msk.f32.vlgmr.msra.gmra.mrb[0].mxu0 %vm54_vm0, %v19_v8  ;;  %v1855_v35 = vld [vmem:[%s3580_s0 + $0x190] sm:$0xff]  ;;  %v33_v36 = vld [vmem:[%s3580_s0 + $0x78] sm:$0xff]  ;;  %v34_v38 = vld [vmem:[%s3580_s0 + $0x80] sm:$0xff] }
   0xd   :  { %2289 = vmatmul.mubr.msk.f32.vlgmr.msra.gmra.mrb[0].mxu1 %vm54_vm0, %v1842_v9  ;;  %2485 = vmatpush3.bf16.msra.mxu0 %v2466_v3  ;;  %v1856_v37 = vld [vmem:[%s3580_s0 + $0x198] sm:$0xff]  ;;  %v1857_v39 = vld [vmem:[%s3580_s0 + $0x1a0] sm:$0xff]  ;;  %v35_v40 = vld [vmem:[%s3580_s0 + $0x88] sm:$0xff] }
   0xe   :  { %2229 = vmatprep.mubr.msk.f32.mxu0 %vm54_vm0, %v20_v10  ;;  %2291 = vmatprep.mubr.msk.f32.mxu1 %vm54_vm0, %v1843_v11  ;;  %v1858_v41 = vld [vmem:[%s3580_s0 + $0x1a8] sm:$0xff]  ;;  %v36_v42 = vld [vmem:[%s3580_s0 + $0x90] sm:$0xff]  ;;  %v37_v44 = vld [vmem:[%s3580_s0 + $0x98] sm:$0xff] }
   0xf   :  { %2493 = vmatpush3.bf16.msra.mxu1 %v2466_v3  ;;  %2487 = vmatprep.subr.bf16.mxu0 %v2470_v7  ;;  %v1859_v43 = vld [vmem:[%s3580_s0 + $0x1b0] sm:$0xff]  ;;  %v1860_v45 = vld [vmem:[%s3580_s0 + $0x1b8] sm:$0xff]  ;;  %v38_v46 = vld [vmem:[%s3580_s0 + $0xa0] sm:$0xff] }
  0x10   :  { %2495 = vmatprep.subr.bf16.mxu1 %v2470_v7  ;;  %2230 = vmatmul.mubr.msk.f32.gmra.mrb[2].mxu0 %vm54_vm0, %v21_v12  ;;  %v1861_v47 = vld [vmem:[%s3580_s0 + $0x1c0] sm:$0xff]  ;;  %v39_v48 = vld [vmem:[%s3580_s0 + $0xa8] sm:$0xff]  ;;  %v40_v50 = vld [vmem:[%s3580_s0 + $0xb0] sm:$0xff] }
  0x11   :  { %2292 = vmatmul.mubr.msk.f32.gmra.mrb[2].mxu1 %vm54_vm0, %v1844_v13  ;;  %2232 = vmatprep.mubr.msk.f32.mxu0 %vm54_vm0, %v22_v14  ;;  %v1862_v49 = vld [vmem:[%s3580_s0 + $0x1c8] sm:$0xff]  ;;  %v1863_v51 = vld [vmem:[%s3580_s0 + $0x1d0] sm:$0xff]  ;;  %v41_v52 = vld [vmem:[%s3580_s0 + $0xb8] sm:$0xff] }
  0x12   :  { %2294 = vmatprep.mubr.msk.f32.mxu1 %vm54_vm0, %v1845_v15  ;;  %2489 = vmatpush3.bf16.msra.mxu0 %v2470_v7  ;;  %v1864_v53 = vld [vmem:[%s3580_s0 + $0x1d8] sm:$0xff]  ;;  %v42_v54 = vld [vmem:[%s3580_s0 + $0xc0] sm:$0xff]  ;;  %v43_v56 = vld [vmem:[%s3580_s0 + $0xc8] sm:$0xff] }
  0x13   :  { %2497 = vmatpush3.bf16.msra.mxu1 %v2470_v7  ;;  %v1865_v55 = vld [vmem:[%s3580_s0 + $0x1e0] sm:$0xff]  ;;  %v1866_v57 = vld [vmem:[%s3580_s0 + $0x1e8] sm:$0xff]  ;;  %v44_v58 = vld [vmem:[%s3580_s0 + $0xd0] sm:$0xff] }
  0x14   :  { %2233 = vmatmul.mubr.msk.f32.gmra.mrb[4].mxu0 %vm54_vm0, %v23_v16  ;;  %v1867_v59 = vld [vmem:[%s3580_s0 + $0x1f0] sm:$0xff]  ;;  %v45_v60 = vld [vmem:[%s3580_s0 + $0xd8] sm:$0xff]  ;;  %v46_v62 = vld [vmem:[%s3580_s0 + $0xe0] sm:$0xff] }
  0x15   :  { %2295 = vmatmul.mubr.msk.f32.gmra.mrb[4].mxu1 %vm54_vm0, %v1846_v17  ;;  %2235 = vmatprep.mubr.msk.f32.mxu0 %vm54_vm0, %v24_v18  ;;  %v1868_v61 = vld [vmem:[%s3580_s0 + $0x1f8] sm:$0xff]  ;;  %v1869_v63 = vld [vmem:[%s3580_s0 + $0x200] sm:$0xff]  ;;  %v47_v0 = vld [vmem:[%s3580_s0 + $0xe8] sm:$0xff] }
  0x16   :  { %2297 = vmatprep.mubr.msk.f32.mxu1 %vm54_vm0, %v1847_v19  ;;  %v1870_v1 = vld [vmem:[%s3580_s0 + $0x208] sm:$0xff]  ;;  %v48_v2 = vld [vmem:[%s3580_s0 + $0xf0] sm:$0xff]  ;;  %v49_v4 = vld [vmem:[%s3580_s0 + $0xf8] sm:$0xff] }
  0x17   :  { %v1871_v3 = vld [vmem:[%s3580_s0 + $0x210] sm:$0xff]  ;;  %v1872_v5 = vld [vmem:[%s3580_s0 + $0x218] sm:$0xff]  ;;  %v50_v6 = vld [vmem:[%s3580_s0 + $0x100] sm:$0xff] }
  0x18   :  { %2236 = vmatmul.mubr.msk.f32.gmra.mrb[6].mxu0 %vm54_vm0, %v25_v20  ;;  %v1873_v7 = vld [vmem:[%s3580_s0 + $0x220] sm:$0xff]  ;;  %v51_v8 = vld [vmem:[%s3580_s0 + $0x108] sm:$0xff]  ;;  %v52_v10 = vld [vmem:[%s3580_s0 + $0x110] sm:$0xff] }
  0x19   :  { %2298 = vmatmul.mubr.msk.f32.gmra.mrb[6].mxu1 %vm54_vm0, %v1848_v21  ;;  %2238 = vmatprep.mubr.msk.f32.mxu0 %vm54_vm0, %v26_v22  ;;  %v1874_v9 = vld [vmem:[%s3580_s0 + $0x228] sm:$0xff]  ;;  %v1875_v11 = vld [vmem:[%s3580_s0 + $0x230] sm:$0xff]  ;;  %v53_v12 = vld [vmem:[%s3580_s0 + $0x118] sm:$0xff] }
  0x1a   :  { %2300 = vmatprep.mubr.msk.f32.mxu1 %vm54_vm0, %v1849_v23  ;;  %v1876_v13 = vld [vmem:[%s3580_s0 + $0x238] sm:$0xff]  ;;  %v1913_v14 = vld [vmem:[%s3580_s0 + $0x240] sm:$0xff]  ;;  %v1914_v16 = vld [vmem:[%s3580_s0 + $0x248] sm:$0xff] }
  0x1b   :  { %v1985_v15 = vld [vmem:[%s3580_s0 + $0x360] sm:$0xff]  ;;  %v1986_v17 = vld [vmem:[%s3580_s0 + $0x368] sm:$0xff]  ;;  %v1915_v18 = vld [vmem:[%s3580_s0 + $0x250] sm:$0xff] }
  0x1c   :  { %2239 = vmatmul.mubr.msk.f32.gmra.mrb[8].mxu0 %vm54_vm0, %v27_v24  ;;  %v1987_v19 = vld [vmem:[%s3580_s0 + $0x370] sm:$0xff]  ;;  %v1916_v20 = vld [vmem:[%s3580_s0 + $0x258] sm:$0xff]  ;;  %v1917_v22 = vld [vmem:[%s3580_s0 + $0x260] sm:$0xff] }
  0x1d   :  { %2301 = vmatmul.mubr.msk.f32.gmra.mrb[8].mxu1 %vm54_vm0, %v1850_v25  ;;  %2241 = vmatprep.mubr.msk.f32.mxu0 %vm54_vm0, %v28_v26  ;;  %v1988_v21 = vld [vmem:[%s3580_s0 + $0x378] sm:$0xff]  ;;  %v1989_v23 = vld [vmem:[%s3580_s0 + $0x380] sm:$0xff]  ;;  %v1918_v24 = vld [vmem:[%s3580_s0 + $0x268] sm:$0xff] }
  0x1e   :  { %2303 = vmatprep.mubr.msk.f32.mxu1 %vm54_vm0, %v1851_v27  ;;  %v1990_v25 = vld [vmem:[%s3580_s0 + $0x388] sm:$0xff]  ;;  %v1919_v26 = vld [vmem:[%s3580_s0 + $0x270] sm:$0xff] }
  0x1f   :  { %v1991_v27 = vld [vmem:[%s3580_s0 + $0x390] sm:$0xff] }
  0x20   :  { %2242 = vmatmul.mubr.msk.f32.gmra.mrb[10].mxu0 %vm54_vm0, %v29_v28  ;;  %v1920_v28 = vld [vmem:[%s3580_s0 + $0x278] sm:$0xff] }
  0x21   :  { %2304 = vmatmul.mubr.msk.f32.gmra.mrb[10].mxu1 %vm54_vm0, %v1852_v29  ;;  %2244 = vmatprep.mubr.msk.f32.mxu0 %vm54_vm0, %v30_v30  ;;  %v1992_v29 = vld [vmem:[%s3580_s0 + $0x398] sm:$0xff]  ;;  %v1921_v30 = vld [vmem:[%s3580_s0 + $0x280] sm:$0xff] }
  0x22   :  { %2306 = vmatprep.mubr.msk.f32.mxu1 %vm54_vm0, %v1853_v31  ;;  %v1993_v31 = vld [vmem:[%s3580_s0 + $0x3a0] sm:$0xff] }
  0x24   :  { %2245 = vmatmul.mubr.msk.f32.gmra.mrb[12].mxu0 %vm54_vm0, %v31_v32  ;;  %v1922_v32 = vld [vmem:[%s3580_s0 + $0x288] sm:$0xff] }
  0x25   :  { %2307 = vmatmul.mubr.msk.f32.gmra.mrb[12].mxu1 %vm54_vm0, %v1854_v33  ;;  %2247 = vmatprep.mubr.msk.f32.mxu0 %vm54_vm0, %v32_v34  ;;  %v1994_v33 = vld [vmem:[%s3580_s0 + $0x3a8] sm:$0xff]  ;;  %v1923_v34 = vld [vmem:[%s3580_s0 + $0x290] sm:$0xff] }
  0x26   :  { %2309 = vmatprep.mubr.msk.f32.mxu1 %vm54_vm0, %v1855_v35  ;;  %v1995_v35 = vld [vmem:[%s3580_s0 + $0x3b0] sm:$0xff] }
  0x28   :  { %2248 = vmatmul.mubr.msk.f32.gmra.mrb[14].mxu0 %vm54_vm0, %v33_v36  ;;  %v1924_v36 = vld [vmem:[%s3580_s0 + $0x298] sm:$0xff] }
  0x29   :  { %2310 = vmatmul.mubr.msk.f32.gmra.mrb[14].mxu1 %vm54_vm0, %v1856_v37  ;;  %2250 = vmatprep.mubr.msk.f32.mxu0 %vm54_vm0, %v34_v38  ;;  %v1996_v37 = vld [vmem:[%s3580_s0 + $0x3b8] sm:$0xff]  ;;  %v1925_v38 = vld [vmem:[%s3580_s0 + $0x2a0] sm:$0xff] }
  0x2a   :  { %2312 = vmatprep.mubr.msk.f32.mxu1 %vm54_vm0, %v1857_v39  ;;  %v1997_v39 = vld [vmem:[%s3580_s0 + $0x3c0] sm:$0xff] }
  0x2c   :  { %2251 = vmatmul.mubr.msk.f32.gmra.mrb[16].mxu0 %vm54_vm0, %v35_v40  ;;  %v1926_v40 = vld [vmem:[%s3580_s0 + $0x2a8] sm:$0xff] }
  0x2d   :  { %2313 = vmatmul.mubr.msk.f32.gmra.mrb[16].mxu1 %vm54_vm0, %v1858_v41  ;;  %2253 = vmatprep.mubr.msk.f32.mxu0 %vm54_vm0, %v36_v42  ;;  %v1998_v41 = vld [vmem:[%s3580_s0 + $0x3c8] sm:$0xff]  ;;  %v1927_v42 = vld [vmem:[%s3580_s0 + $0x2b0] sm:$0xff] }
  0x2e   :  { %2315 = vmatprep.mubr.msk.f32.mxu1 %vm54_vm0, %v1859_v43  ;;  %v1999_v43 = vld [vmem:[%s3580_s0 + $0x3d0] sm:$0xff] }
  0x30   :  { %2254 = vmatmul.mubr.msk.f32.gmra.mrb[18].mxu0 %vm54_vm0, %v37_v44  ;;  %v1928_v44 = vld [vmem:[%s3580_s0 + $0x2b8] sm:$0xff] }
  0x31   :  { %2316 = vmatmul.mubr.msk.f32.gmra.mrb[18].mxu1 %vm54_vm0, %v1860_v45  ;;  %2256 = vmatprep.mubr.msk.f32.mxu0 %vm54_vm0, %v38_v46  ;;  %v2000_v45 = vld [vmem:[%s3580_s0 + $0x3d8] sm:$0xff]  ;;  %v1929_v46 = vld [vmem:[%s3580_s0 + $0x2c0] sm:$0xff] }
  0x32   :  { %2318 = vmatprep.mubr.msk.f32.mxu1 %vm54_vm0, %v1861_v47  ;;  %v2001_v47 = vld [vmem:[%s3580_s0 + $0x3e0] sm:$0xff] }
  0x34   :  { %2257 = vmatmul.mubr.msk.f32.gmra.mrb[20].mxu0 %vm54_vm0, %v39_v48  ;;  %v1930_v48 = vld [vmem:[%s3580_s0 + $0x2c8] sm:$0xff] }
  0x35   :  { %2319 = vmatmul.mubr.msk.f32.gmra.mrb[20].mxu1 %vm54_vm0, %v1862_v49  ;;  %2259 = vmatprep.mubr.msk.f32.mxu0 %vm54_vm0, %v40_v50  ;;  %v2002_v49 = vld [vmem:[%s3580_s0 + $0x3e8] sm:$0xff]  ;;  %v1931_v50 = vld [vmem:[%s3580_s0 + $0x2d0] sm:$0xff] }
  0x36   :  { %2321 = vmatprep.mubr.msk.f32.mxu1 %vm54_vm0, %v1863_v51  ;;  %v2003_v51 = vld [vmem:[%s3580_s0 + $0x3f0] sm:$0xff] }
  0x38   :  { %2260 = vmatmul.mubr.msk.f32.gmra.mrb[22].mxu0 %vm54_vm0, %v41_v52  ;;  %v1932_v52 = vld [vmem:[%s3580_s0 + $0x2d8] sm:$0xff] }
  0x39   :  { %2322 = vmatmul.mubr.msk.f32.gmra.mrb[22].mxu1 %vm54_vm0, %v1864_v53  ;;  %2262 = vmatprep.mubr.msk.f32.mxu0 %vm54_vm0, %v42_v54  ;;  %v2004_v53 = vld [vmem:[%s3580_s0 + $0x3f8] sm:$0xff]  ;;  %v1933_v54 = vld [vmem:[%s3580_s0 + $0x2e0] sm:$0xff] }
  0x3a   :  { %2324 = vmatprep.mubr.msk.f32.mxu1 %vm54_vm0, %v1865_v55  ;;  %v2005_v55 = vld [vmem:[%s3580_s0 + $0x400] sm:$0xff] }
  0x3c   :  { %2263 = vmatmul.mubr.msk.f32.gmra.mrb[24].mxu0 %vm54_vm0, %v43_v56  ;;  %v1934_v56 = vld [vmem:[%s3580_s0 + $0x2e8] sm:$0xff] }
  0x3d   :  { %2325 = vmatmul.mubr.msk.f32.gmra.mrb[24].mxu1 %vm54_vm0, %v1866_v57  ;;  %2265 = vmatprep.mubr.msk.f32.mxu0 %vm54_vm0, %v44_v58  ;;  %v2006_v57 = vld [vmem:[%s3580_s0 + $0x408] sm:$0xff]  ;;  %v1935_v58 = vld [vmem:[%s3580_s0 + $0x2f0] sm:$0xff] }
  0x3e   :  { %2327 = vmatprep.mubr.msk.f32.mxu1 %vm54_vm0, %v1867_v59  ;;  %v2007_v59 = vld [vmem:[%s3580_s0 + $0x410] sm:$0xff] }
  0x40   :  { %2266 = vmatmul.mubr.msk.f32.gmra.mrb[26].mxu0 %vm54_vm0, %v45_v60  ;;  %v1936_v60 = vld [vmem:[%s3580_s0 + $0x2f8] sm:$0xff] }
  0x41   :  { %2328 = vmatmul.mubr.msk.f32.gmra.mrb[26].mxu1 %vm54_vm0, %v1868_v61  ;;  %2268 = vmatprep.mubr.msk.f32.mxu0 %vm54_vm0, %v46_v62  ;;  %v2008_v61 = vld [vmem:[%s3580_s0 + $0x418] sm:$0xff]  ;;  %v1937_v62 = vld [vmem:[%s3580_s0 + $0x300] sm:$0xff] }
  0x42   :  { %2330 = vmatprep.mubr.msk.f32.mxu1 %vm54_vm0, %v1869_v63  ;;  %v2009_v63 = vld [vmem:[%s3580_s0 + $0x420] sm:$0xff] }
  0x44   :  { %2269 = vmatmul.mubr.msk.f32.gmra.mrb[28].mxu0 %vm54_vm0, %v47_v0  ;;  %v1938_v0 = vld [vmem:[%s3580_s0 + $0x308] sm:$0xff] }
  0x45   :  { %2331 = vmatmul.mubr.msk.f32.gmra.mrb[28].mxu1 %vm54_vm0, %v1870_v1  ;;  %2271 = vmatprep.mubr.msk.f32.mxu0 %vm54_vm0, %v48_v2  ;;  %v2010_v1 = vld [vmem:[%s3580_s0 + $0x428] sm:$0xff]  ;;  %v1939_v2 = vld [vmem:[%s3580_s0 + $0x310] sm:$0xff] }
  0x46   :  { %2333 = vmatprep.mubr.msk.f32.mxu1 %vm54_vm0, %v1871_v3  ;;  %v2011_v3 = vld [vmem:[%s3580_s0 + $0x430] sm:$0xff] }
  0x48   :  { %2272 = vmatmul.mubr.msk.f32.gmra.mrb[30].mxu0 %vm54_vm0, %v49_v4  ;;  %v1940_v4 = vld [vmem:[%s3580_s0 + $0x318] sm:$0xff] }
  0x49   :  { %2334 = vmatmul.mubr.msk.f32.gmra.mrb[30].mxu1 %vm54_vm0, %v1872_v5  ;;  %2274 = vmatprep.mubr.msk.f32.mxu0 %vm54_vm0, %v50_v6  ;;  %v2012_v5 = vld [vmem:[%s3580_s0 + $0x438] sm:$0xff]  ;;  %v1941_v6 = vld [vmem:[%s3580_s0 + $0x320] sm:$0xff] }
  0x4a   :  { %2336 = vmatprep.mubr.msk.f32.mxu1 %vm54_vm0, %v1873_v7  ;;  %v2013_v7 = vld [vmem:[%s3580_s0 + $0x440] sm:$0xff] }
  0x4c   :  { %2275 = vmatmul.mubr.msk.f32.gmra.mrb[32].mxu0 %vm54_vm0, %v51_v8  ;;  %v1942_v8 = vld [vmem:[%s3580_s0 + $0x328] sm:$0xff] }
  0x4d   :  { %2337 = vmatmul.mubr.msk.f32.gmra.mrb[32].mxu1 %vm54_vm0, %v1874_v9  ;;  %2277 = vmatprep.mubr.msk.f32.mxu0 %vm54_vm0, %v52_v10  ;;  %v2014_v9 = vld [vmem:[%s3580_s0 + $0x448] sm:$0xff]  ;;  %v1943_v10 = vld [vmem:[%s3580_s0 + $0x330] sm:$0xff] }
  0x4e   :  { %2339 = vmatprep.mubr.msk.f32.mxu1 %vm54_vm0, %v1875_v11  ;;  %v2015_v11 = vld [vmem:[%s3580_s0 + $0x450] sm:$0xff] }
  0x50   :  { %2278 = vmatmul.mubr.msk.f32.gmra.mrb[34].mxu0 %vm54_vm0, %v53_v12  ;;  %v1944_v12 = vld [vmem:[%s3580_s0 + $0x338] sm:$0xff] }
  0x51   :  { %2340 = vmatmul.mubr.msk.f32.gmra.mrb[34].mxu1 %vm54_vm0, %v1876_v13  ;;  %2350 = vmatprep.mubr.msk.f32.mxu0 %vm54_vm0, %v1913_v14  ;;  %v2016_v13 = vld [vmem:[%s3580_s0 + $0x458] sm:$0xff]  ;;  %v1945_v14 = vld [vmem:[%s3580_s0 + $0x340] sm:$0xff] }
  0x52   :  { %2412 = vmatprep.mubr.msk.f32.mxu1 %vm54_vm0, %v1985_v15  ;;  %v2017_v15 = vld [vmem:[%s3580_s0 + $0x460] sm:$0xff] }
  0x54   :  { %2351 = vmatmul.mubr.msk.f32.vlgmr.msra.gmra.mrb[36].mxu0 %vm54_vm0, %v1914_v16  ;;  %v1946_v16 = vld [vmem:[%s3580_s0 + $0x348] sm:$0xff] }
  0x55   :  { %2413 = vmatmul.mubr.msk.f32.vlgmr.msra.gmra.mrb[36].mxu1 %vm54_vm0, %v1986_v17  ;;  %2353 = vmatprep.mubr.msk.f32.mxu0 %vm54_vm0, %v1915_v18  ;;  %v2018_v17 = vld [vmem:[%s3580_s0 + $0x468] sm:$0xff]  ;;  %v1947_v18 = vld [vmem:[%s3580_s0 + $0x350] sm:$0xff] }
  0x56   :  { %2415 = vmatprep.mubr.msk.f32.mxu1 %vm54_vm0, %v1987_v19  ;;  %v2019_v19 = vld [vmem:[%s3580_s0 + $0x470] sm:$0xff] }
  0x58   :  { %2354 = vmatmul.mubr.msk.f32.gmra.mrb[38].mxu0 %vm54_vm0, %v1916_v20  ;;  %v1948_v20 = vld [vmem:[%s3580_s0 + $0x358] sm:$0xff] }
  0x59   :  { %2416 = vmatmul.mubr.msk.f32.gmra.mrb[38].mxu1 %vm54_vm0, %v1988_v21  ;;  %2356 = vmatprep.mubr.msk.f32.mxu0 %vm54_vm0, %v1917_v22  ;;  %v2020_v21 = vld [vmem:[%s3580_s0 + $0x478] sm:$0xff] }
  0x5a   :  { %2418 = vmatprep.mubr.msk.f32.mxu1 %vm54_vm0, %v1989_v23 }
  0x5c   :  { %2357 = vmatmul.mubr.msk.f32.gmra.mrb[40].mxu0 %vm54_vm0, %v1918_v24 }
  0x5d   :  { %2419 = vmatmul.mubr.msk.f32.gmra.mrb[40].mxu1 %vm54_vm0, %v1990_v25  ;;  %2359 = vmatprep.mubr.msk.f32.mxu0 %vm54_vm0, %v1919_v26 }
  0x5e   :  { %2421 = vmatprep.mubr.msk.f32.mxu1 %vm54_vm0, %v1991_v27 }
  0x60   :  { %2360 = vmatmul.mubr.msk.f32.gmra.mrb[42].mxu0 %vm54_vm0, %v1920_v28 }
  0x61   :  { %2422 = vmatmul.mubr.msk.f32.gmra.mrb[42].mxu1 %vm54_vm0, %v1992_v29  ;;  %2362 = vmatprep.mubr.msk.f32.mxu0 %vm54_vm0, %v1921_v30 }
  0x62   :  { %2424 = vmatprep.mubr.msk.f32.mxu1 %vm54_vm0, %v1993_v31 }
  0x64   :  { %2363 = vmatmul.mubr.msk.f32.gmra.mrb[44].mxu0 %vm54_vm0, %v1922_v32 }
  0x65   :  { %2425 = vmatmul.mubr.msk.f32.gmra.mrb[44].mxu1 %vm54_vm0, %v1994_v33  ;;  %2365 = vmatprep.mubr.msk.f32.mxu0 %vm54_vm0, %v1923_v34 }
  0x66   :  { %2427 = vmatprep.mubr.msk.f32.mxu1 %vm54_vm0, %v1995_v35 }
  0x68   :  { %2366 = vmatmul.mubr.msk.f32.gmra.mrb[46].mxu0 %vm54_vm0, %v1924_v36 }
  0x69   :  { %2428 = vmatmul.mubr.msk.f32.gmra.mrb[46].mxu1 %vm54_vm0, %v1996_v37  ;;  %2368 = vmatprep.mubr.msk.f32.mxu0 %vm54_vm0, %v1925_v38 }
  0x6a   :  { %2430 = vmatprep.mubr.msk.f32.mxu1 %vm54_vm0, %v1997_v39 }
  0x6c   :  { %2369 = vmatmul.mubr.msk.f32.gmra.mrb[48].mxu0 %vm54_vm0, %v1926_v40 }
  0x6d   :  { %2431 = vmatmul.mubr.msk.f32.gmra.mrb[48].mxu1 %vm54_vm0, %v1998_v41  ;;  %2371 = vmatprep.mubr.msk.f32.mxu0 %vm54_vm0, %v1927_v42 }
  0x6e   :  { %2433 = vmatprep.mubr.msk.f32.mxu1 %vm54_vm0, %v1999_v43 }
  0x70   :  { %2372 = vmatmul.mubr.msk.f32.gmra.mrb[50].mxu0 %vm54_vm0, %v1928_v44 }
  0x71   :  { %2434 = vmatmul.mubr.msk.f32.gmra.mrb[50].mxu1 %vm54_vm0, %v2000_v45  ;;  %2374 = vmatprep.mubr.msk.f32.mxu0 %vm54_vm0, %v1929_v46 }
  0x72   :  { %2436 = vmatprep.mubr.msk.f32.mxu1 %vm54_vm0, %v2001_v47 }
  0x74   :  { %2375 = vmatmul.mubr.msk.f32.gmra.mrb[52].mxu0 %vm54_vm0, %v1930_v48 }
  0x75   :  { %2437 = vmatmul.mubr.msk.f32.gmra.mrb[52].mxu1 %vm54_vm0, %v2002_v49  ;;  %2377 = vmatprep.mubr.msk.f32.mxu0 %vm54_vm0, %v1931_v50 }
  0x76   :  { %2439 = vmatprep.mubr.msk.f32.mxu1 %vm54_vm0, %v2003_v51 }
  0x78   :  { %2378 = vmatmul.mubr.msk.f32.gmra.mrb[54].mxu0 %vm54_vm0, %v1932_v52 }
  0x79   :  { %2440 = vmatmul.mubr.msk.f32.gmra.mrb[54].mxu1 %vm54_vm0, %v2004_v53  ;;  %2380 = vmatprep.mubr.msk.f32.mxu0 %vm54_vm0, %v1933_v54 }
  0x7a   :  { %2442 = vmatprep.mubr.msk.f32.mxu1 %vm54_vm0, %v2005_v55 }
  0x7c   :  { %2381 = vmatmul.mubr.msk.f32.gmra.mrb[56].mxu0 %vm54_vm0, %v1934_v56 }
  0x7d   :  { %2443 = vmatmul.mubr.msk.f32.gmra.mrb[56].mxu1 %vm54_vm0, %v2006_v57  ;;  %2383 = vmatprep.mubr.msk.f32.mxu0 %vm54_vm0, %v1935_v58 }
  0x7e   :  { %2445 = vmatprep.mubr.msk.f32.mxu1 %vm54_vm0, %v2007_v59 }
  0x80   :  { %2384 = vmatmul.mubr.msk.f32.gmra.mrb[58].mxu0 %vm54_vm0, %v1936_v60 }
  0x81   :  { %2446 = vmatmul.mubr.msk.f32.gmra.mrb[58].mxu1 %vm54_vm0, %v2008_v61  ;;  %2386 = vmatprep.mubr.msk.f32.mxu0 %vm54_vm0, %v1937_v62 }
  0x82   :  { %2448 = vmatprep.mubr.msk.f32.mxu1 %vm54_vm0, %v2009_v63 }
  0x84   :  { %2387 = vmatmul.mubr.msk.f32.gmra.mrb[60].mxu0 %vm54_vm0, %v1938_v0 }
  0x85   :  { %2449 = vmatmul.mubr.msk.f32.gmra.mrb[60].mxu1 %vm54_vm0, %v2010_v1  ;;  %2389 = vmatprep.mubr.msk.f32.mxu0 %vm54_vm0, %v1939_v2 }
  0x86   :  { %2451 = vmatprep.mubr.msk.f32.mxu1 %vm54_vm0, %v2011_v3 }
  0x88   :  { %2390 = vmatmul.mubr.msk.f32.gmra.mrb[62].mxu0 %vm54_vm0, %v1940_v4 }
  0x89   :  { %2452 = vmatmul.mubr.msk.f32.gmra.mrb[62].mxu1 %vm54_vm0, %v2012_v5  ;;  %2392 = vmatprep.mubr.msk.f32.mxu0 %vm54_vm0, %v1941_v6 }
  0x8a   :  { %2454 = vmatprep.mubr.msk.f32.mxu1 %vm54_vm0, %v2013_v7 }
  0x8c   :  { %2393 = vmatmul.mubr.msk.f32.gmra.mrb[64].mxu0 %vm54_vm0, %v1942_v8 }
  0x8d   :  { %2455 = vmatmul.mubr.msk.f32.gmra.mrb[64].mxu1 %vm54_vm0, %v2014_v9  ;;  %2395 = vmatprep.mubr.msk.f32.mxu0 %vm54_vm0, %v1943_v10 }
  0x8e   :  { %2457 = vmatprep.mubr.msk.f32.mxu1 %vm54_vm0, %v2015_v11 }
  0x90   :  { %2396 = vmatmul.mubr.msk.f32.gmra.mrb[66].mxu0 %vm54_vm0, %v1944_v12 }
  0x91   :  { %2458 = vmatmul.mubr.msk.f32.gmra.mrb[66].mxu1 %vm54_vm0, %v2016_v13  ;;  %2398 = vmatprep.mubr.msk.f32.mxu0 %vm54_vm0, %v1945_v14 }
  0x92   :  { %2460 = vmatprep.mubr.msk.f32.mxu1 %vm54_vm0, %v2017_v15 }
  0x94   :  { %2399 = vmatmul.mubr.msk.f32.gmra.mrb[68].mxu0 %vm54_vm0, %v1946_v16 }
  0x95   :  { %2461 = vmatmul.mubr.msk.f32.gmra.mrb[68].mxu1 %vm54_vm0, %v2018_v17  ;;  %2401 = vmatprep.mubr.msk.f32.mxu0 %vm54_vm0, %v1947_v18  ;;  %v3331_v17 = vld [vmem:[%s3581_s2] ss:$0 sm:$0xff] }
  0x96   :  { %2463 = vmatprep.mubr.msk.f32.mxu1 %vm54_vm0, %v2019_v19 }
  0x98   :  { %2402 = vmatmul.mubr.msk.f32.gmra.mrb[70].mxu0 %vm54_vm0, %v1948_v20 }
  0x99   :  { %2464 = vmatmul.mubr.msk.f32.gmra.mrb[70].mxu1 %vm54_vm0, %v2020_v21 }
  0xdf   :  { %v3106_v22 = vpop.f32.mrb[0].mxu0 }
  0xe0   :  { %v3108_v23 = vpop.f32.mrb[0].mxu1  ;;  %v3112_v25 = vpop.f32.mrb[1].mxu0 }
  0xe1   :  { %v3114_v26 = vpop.f32.mrb[1].mxu1 }
  0xe3   :  { %v3118_v28 = vpop.f32.mrb[2].mxu0 }
  0xe4   :  { %v3120_v29 = vpop.f32.mrb[2].mxu1  ;;  %v3124_v31 = vpop.f32.mrb[3].mxu0 }
  0xe5   :  { %v3126_v32 = vpop.f32.mrb[3].mxu1 }
  0xe7   :  { %v3130_v34 = vpop.f32.mrb[4].mxu0 }
  0xe8   :  { %v3132_v35 = vpop.f32.mrb[4].mxu1  ;;  %v3136_v37 = vpop.f32.mrb[5].mxu0 }
  0xe9   :  { %v3138_v38 = vpop.f32.mrb[5].mxu1 }
  0xeb   :  { %v3142_v40 = vpop.f32.mrb[6].mxu0 }
  0xec   :  { %v3144_v41 = vpop.f32.mrb[6].mxu1  ;;  %v3148_v43 = vpop.f32.mrb[7].mxu0 }
  0xed   :  { %v3150_v44 = vpop.f32.mrb[7].mxu1 }
  0xef   :  { %v3154_v46 = vpop.f32.mrb[8].mxu0 }
  0xf0   :  { %v3156_v47 = vpop.f32.mrb[8].mxu1  ;;  %v3160_v49 = vpop.f32.mrb[9].mxu0 }
  0xf1   :  { %v3162_v50 = vpop.f32.mrb[9].mxu1 }
  0xf3   :  { %v3166_v52 = vpop.f32.mrb[10].mxu0 }
  0xf4   :  { %v3168_v53 = vpop.f32.mrb[10].mxu1  ;;  %v3172_v55 = vpop.f32.mrb[11].mxu0 }
  0xf5   :  { %v3174_v56 = vpop.f32.mrb[11].mxu1 }
  0xf7   :  { %v3178_v58 = vpop.f32.mrb[12].mxu0 }
  0xf8   :  { %v3180_v59 = vpop.f32.mrb[12].mxu1  ;;  %v3184_v61 = vpop.f32.mrb[13].mxu0 }
  0xf9   :  { %v3186_v62 = vpop.f32.mrb[13].mxu1 }
  0xfb   :  { %v3190_v0 = vpop.f32.mrb[14].mxu0 }
  0xfc   :  { %v3192_v1 = vpop.f32.mrb[14].mxu1  ;;  %v3196_v3 = vpop.f32.mrb[15].mxu0 }
  0xfd   :  { %v3198_v4 = vpop.f32.mrb[15].mxu1 }
  0xff   :  { %v3202_v6 = vpop.f32.mrb[16].mxu0 }
 0x100   :  { %v3204_v7 = vpop.f32.mrb[16].mxu1  ;;  %v3208_v9 = vpop.f32.mrb[17].mxu0 }
 0x101   :  { %v3210_v10 = vpop.f32.mrb[17].mxu1 }
 0x103   :  { %v3214_v12 = vpop.f32.mrb[18].mxu0 }
 0x104   :  { %v3216_v13 = vpop.f32.mrb[18].mxu1  ;;  %v3220_v15 = vpop.f32.mrb[19].mxu0 }
 0x105   :  { %v3222_v16 = vpop.f32.mrb[19].mxu1 }
 0x107   :  { %v3226_v18 = vpop.f32.mrb[20].mxu0 }
 0x108   :  { %v3228_v19 = vpop.f32.mrb[20].mxu1  ;;  %v3232_v21 = vpop.f32.mrb[21].mxu0 }
 0x109   :  { %v3234_v11 = vpop.f32.mrb[21].mxu1 }
 0x10b   :  { %v3238_v8 = vpop.f32.mrb[22].mxu0 }
 0x10c   :  { %v3240_v5 = vpop.f32.mrb[22].mxu1  ;;  %v3244_v2 = vpop.f32.mrb[23].mxu0 }
 0x10d   :  { %v3246_v63 = vpop.f32.mrb[23].mxu1 }
 0x10f   :  { %v3250_v60 = vpop.f32.mrb[24].mxu0 }
 0x110   :  { %v3252_v57 = vpop.f32.mrb[24].mxu1  ;;  %v3256_v54 = vpop.f32.mrb[25].mxu0 }
 0x111   :  { %3606 = vst [vmem:[#allocation2_spill] sm:$0xff] %v3252_v57  ;;  %3607 = vst [vmem:[#allocation3_spill] sm:$0xff] %v3256_v54  ;;  %v3258_v51 = vpop.f32.mrb[25].mxu1 }
 0x112   :  { %3608 = vst [vmem:[#allocation4_spill] sm:$0xff] %v3258_v51  ;;  %v3630_v51 = vmax.f32 %v3112_v25, %v3114_v26  ;;  %v3632_v26 = vmax.f32 %v3124_v31, %v3126_v32  ;;  %v3634_v32 = vmax.f32 %v3136_v37, %v3138_v38  ;;  %v3636_v38 = vmax.f32 %v3148_v43, %v3150_v44 }
 0x113   :  { %v3262_v48 = vpop.f32.mrb[26].mxu0  ;;  %v3638_v44 = vmax.f32 %v3160_v49, %v3162_v50  ;;  %v3640_v50 = vmax.f32 %v3172_v55, %v3174_v56  ;;  %v3642_v56 = vmax.f32 %v3184_v61, %v3186_v62  ;;  %v3644_v62 = vmax.f32 %v3196_v3, %v3198_v4 }
 0x114   :  { %3609 = vst [vmem:[#allocation5_spill] sm:$0xff] %v3262_v48  ;;  %v3264_v45 = vpop.f32.mrb[26].mxu1  ;;  %v3268_v42 = vpop.f32.mrb[27].mxu0  ;;  %v3629_v48 = vmax.f32 %v3106_v22, %v3108_v23  ;;  %v3631_v22 = vmax.f32 %v3118_v28, %v3120_v29  ;;  %v3633_v28 = vmax.f32 %v3130_v34, %v3132_v35  ;;  %v3635_v35 = vmax.f32 %v3142_v40, %v3144_v41 }
 0x115   :  { %3610 = vst [vmem:[#allocation6_spill] sm:$0xff] %v3264_v45  ;;  %3611 = vst [vmem:[#allocation7_spill] sm:$0xff] %v3268_v42  ;;  %v3270_v39 = vpop.f32.mrb[27].mxu1  ;;  %v3637_v41 = vmax.f32 %v3154_v46, %v3156_v47  ;;  %v3639_v47 = vmax.f32 %v3166_v52, %v3168_v53  ;;  %v3641_v53 = vmax.f32 %v3178_v58, %v3180_v59 }
 0x116   :  { %3612 = vst [vmem:[#allocation8_spill] sm:$0xff] %v3270_v39  ;;  %v3643_v59 = vmax.f32 %v3190_v0, %v3192_v1  ;;  %v3645_v1 = vmax.f32 %v3202_v6, %v3204_v7  ;;  %v3646_v4 = vmax.f32 %v3208_v9, %v3210_v10  ;;  %v3647_v7 = vmax.f32 %v3214_v12, %v3216_v13 }
 0x117   :  { %v3274_v36 = vpop.f32.mrb[28].mxu0  ;;  %v3648_v10 = vmax.f32 %v3220_v15, %v3222_v16  ;;  %v3649_v13 = vmax.f32 %v3226_v18, %v3228_v19  ;;  %v3650_v16 = vmax.f32 %v3232_v21, %v3234_v11  ;;  %v3651_v19 = vmax.f32 %v3238_v8, %v3240_v5 }
 0x118   :  { %3613 = vst [vmem:[#allocation9_spill] sm:$0xff] %v3274_v36  ;;  %v3276_v33 = vpop.f32.mrb[28].mxu1  ;;  %v3280_v30 = vpop.f32.mrb[29].mxu0  ;;  %v3652_v21 = vmax.f32 %v3244_v2, %v3246_v63  ;;  %v3653_v8 = vld [vmem:[#allocation2_spill] sm:$0xff]  ;;  %v3655_v2 = vld [vmem:[#allocation3_spill] sm:$0xff] }
 0x119   :  { %3614 = vst [vmem:[#allocation10_spill] sm:$0xff] %v3276_v33  ;;  %3615 = vst [vmem:[#allocation11_spill] sm:$0xff] %v3280_v30  ;;  %v3282_v27 = vpop.f32.mrb[29].mxu1 }
 0x11a   :  { %3616 = vst [vmem:[#allocation12_spill] sm:$0xff] %v3282_v27 }
 0x11b   :  { %v3286_v24 = vpop.f32.mrb[30].mxu0 }
 0x11c   :  { %3617 = vst [vmem:[#allocation13_spill] sm:$0xff] %v3286_v24  ;;  %v3288_v45 = vpop.f32.mrb[30].mxu1  ;;  %v3292_v39 = vpop.f32.mrb[31].mxu0 }
 0x11d   :  { %3618 = vst [vmem:[#allocation14_spill] sm:$0xff] %v3288_v45  ;;  %3619 = vst [vmem:[#allocation15_spill] sm:$0xff] %v3292_v39  ;;  %v3294_v42 = vpop.f32.mrb[31].mxu1 }
 0x11e   :  { %3620 = vst [vmem:[#allocation16_spill] sm:$0xff] %v3294_v42 }
 0x11f   :  { %v3298_v33 = vpop.f32.mrb[32].mxu0 }
 0x120   :  { %3621 = vst [vmem:[#allocation17_spill] sm:$0xff] %v3298_v33  ;;  %v3300_v36 = vpop.f32.mrb[32].mxu1  ;;  %v3304_v27 = vpop.f32.mrb[33].mxu0 }
 0x121   :  { %3622 = vst [vmem:[#allocation18_spill] sm:$0xff] %v3300_v36  ;;  %3623 = vst [vmem:[#allocation19_spill] sm:$0xff] %v3304_v27  ;;  %v3306_v30 = vpop.f32.mrb[33].mxu1 }
 0x122   :  { %3624 = vst [vmem:[#allocation20_spill] sm:$0xff] %v3306_v30 }
 0x123   :  { %v3310_v45 = vpop.f32.mrb[34].mxu0 }
 0x124   :  { %3625 = vst [vmem:[#allocation21_spill] sm:$0xff] %v3310_v45  ;;  %v3312_v24 = vpop.f32.mrb[34].mxu1  ;;  %v3316_v42 = vpop.f32.mrb[35].mxu0 }
 0x125   :  { %3626 = vst [vmem:[#allocation22_spill] sm:$0xff] %v3312_v24  ;;  %3627 = vst [vmem:[#allocation23_spill] sm:$0xff] %v3316_v42  ;;  %v3318_v39 = vpop.f32.mrb[35].mxu1 }
 0x126   :  { %3628 = vst [vmem:[#allocation24_spill] sm:$0xff] %v3318_v39 }
 0x127   :  { %v2352_v36 = vpop.f32.mrb[36].mxu0 }
 0x128   :  { %v2414_v33 = vpop.f32.mrb[36].mxu1  ;;  %v1225_v14 = vmax.f32 %v3629_v48, %v2352_v36  ;;  %v1045_v30 = vpop.f32.mrb[37].mxu0 }
 0x129   :  { %v1471_v27 = vpop.f32.mrb[37].mxu1  ;;  %v1224_v54 = vmax.f32 %v3630_v51, %v1045_v30 }
 0x12a   :  { %v1651_v24 = vmax.f32 %v1225_v14, %v2414_v33 }
 0x12b   :  { %v1650_v45 = vmax.f32 %v1224_v54, %v1471_v27  ;;  %v2355_v20 = vpop.f32.mrb[38].mxu0 }
 0x12c   :  { %v2417_v39 = vpop.f32.mrb[38].mxu1  ;;  %v1694_v42 = vadd.f32 %v3331_v17, %v1651_v24  ;;  %v1227_v23 = vmax.f32 %v3631_v22, %v2355_v20  ;;  %v1055_v36 = vpop.f32.mrb[39].mxu0 }
 0x12d   :  { %v1481_v48 = vpop.f32.mrb[39].mxu1  ;;  %v1693_v25 = vadd.f32 %v3331_v17, %v1650_v45  ;;  %v1226_v30 = vmax.f32 %v3632_v26, %v1055_v36 }
 0x12e   :  { %v1730_v51 = vmax.f32 %v1694_v42, 0.0  ;;  %v1653_v57 = vmax.f32 %v1227_v23, %v2417_v39 }
 0x12f   :  { %v1729_v33 = vmax.f32 %v1693_v25, 0.0  ;;  %v1652_v27 = vmax.f32 %v1226_v30, %v1481_v48  ;;  %v2358_v54 = vpop.f32.mrb[40].mxu0 }
 0x130   :  { %v2420_v14 = vpop.f32.mrb[40].mxu1  ;;  %1766 = vst [vmem:[%s3582_s3 + $0x8] sm:$0xff] %v1730_v51  ;;  %v1696_v24 = vadd.f32 %v3331_v17, %v1653_v57  ;;  %v1229_v29 = vmax.f32 %v3633_v28, %v2358_v54  ;;  %v1065_v45 = vpop.f32.mrb[41].mxu0 }
 0x131   :  { %v1491_v20 = vpop.f32.mrb[41].mxu1  ;;  %1765 = vst [vmem:[%s3582_s3] sm:$0xff] %v1729_v33  ;;  %v1695_v31 = vadd.f32 %v3331_v17, %v1652_v27  ;;  %v1228_v39 = vmax.f32 %v3634_v32, %v1065_v45 }
 0x132   :  { %v1732_v42 = vmax.f32 %v1696_v24, 0.0  ;;  %v1655_v22 = vmax.f32 %v1229_v29, %v2420_v14 }
 0x133   :  { %v1731_v23 = vmax.f32 %v1695_v31, 0.0  ;;  %v1654_v57 = vmax.f32 %v1228_v39, %v1491_v20  ;;  %v2361_v36 = vpop.f32.mrb[42].mxu0 }
 0x134   :  { %v2423_v48 = vpop.f32.mrb[42].mxu1  ;;  %1768 = vst [vmem:[%s3582_s3 + $0x18] sm:$0xff] %v1732_v42  ;;  %v1698_v34 = vadd.f32 %v3331_v17, %v1655_v22  ;;  %v1231_v25 = vmax.f32 %v3635_v35, %v2361_v36  ;;  %v1075_v26 = vpop.f32.mrb[43].mxu0 }
 0x135   :  { %v1501_v30 = vpop.f32.mrb[43].mxu1  ;;  %1767 = vst [vmem:[%s3582_s3 + $0x10] sm:$0xff] %v1731_v23  ;;  %v1697_v37 = vadd.f32 %v3331_v17, %v1654_v57  ;;  %v1230_v51 = vmax.f32 %v3636_v38, %v1075_v26 }
 0x136   :  { %v1734_v33 = vmax.f32 %v1698_v34, 0.0  ;;  %v1657_v27 = vmax.f32 %v1231_v25, %v2423_v48 }
 0x137   :  { %v1733_v54 = vmax.f32 %v1697_v37, 0.0  ;;  %v1656_v14 = vmax.f32 %v1230_v51, %v1501_v30  ;;  %v2364_v24 = vpop.f32.mrb[44].mxu0 }
 0x138   :  { %v2426_v28 = vpop.f32.mrb[44].mxu1  ;;  %1770 = vst [vmem:[%s3582_s3 + $0x28] sm:$0xff] %v1734_v33  ;;  %v1700_v40 = vadd.f32 %v3331_v17, %v1657_v27  ;;  %v1233_v29 = vmax.f32 %v3637_v41, %v2364_v24  ;;  %v1085_v45 = vpop.f32.mrb[45].mxu0 }
 0x139   :  { %v1511_v20 = vpop.f32.mrb[45].mxu1  ;;  %1769 = vst [vmem:[%s3582_s3 + $0x20] sm:$0xff] %v1733_v54  ;;  %v1699_v43 = vadd.f32 %v3331_v17, %v1656_v14  ;;  %v1232_v31 = vmax.f32 %v3638_v44, %v1085_v45 }
 0x13a   :  { %v1736_v32 = vmax.f32 %v1700_v40, 0.0  ;;  %v1659_v39 = vmax.f32 %v1233_v29, %v2426_v28 }
 0x13b   :  { %v1735_v42 = vmax.f32 %v1699_v43, 0.0  ;;  %v1658_v22 = vmax.f32 %v1232_v31, %v1511_v20  ;;  %v2367_v23 = vpop.f32.mrb[46].mxu0 }
 0x13c   :  { %v2429_v57 = vpop.f32.mrb[46].mxu1  ;;  %1772 = vst [vmem:[%s3582_s3 + $0x38] sm:$0xff] %v1736_v32  ;;  %v1702_v46 = vadd.f32 %v3331_v17, %v1659_v39  ;;  %v1235_v36 = vmax.f32 %v3639_v47, %v2367_v23  ;;  %v1095_v48 = vpop.f32.mrb[47].mxu0 }
 0x13d   :  { %v1521_v34 = vpop.f32.mrb[47].mxu1  ;;  %1771 = vst [vmem:[%s3582_s3 + $0x30] sm:$0xff] %v1735_v42  ;;  %v1701_v49 = vadd.f32 %v3331_v17, %v1658_v22  ;;  %v1234_v35 = vmax.f32 %v3640_v50, %v1095_v48 }
 0x13e   :  { %v1738_v25 = vmax.f32 %v1702_v46, 0.0  ;;  %v1661_v26 = vmax.f32 %v1235_v36, %v2429_v57 }
 0x13f   :  { %v1737_v30 = vmax.f32 %v1701_v49, 0.0  ;;  %v1660_v37 = vmax.f32 %v1234_v35, %v1521_v34  ;;  %v2370_v38 = vpop.f32.mrb[48].mxu0 }
 0x140   :  { %v2432_v51 = vpop.f32.mrb[48].mxu1  ;;  %1774 = vst [vmem:[%s3582_s3 + $0x48] sm:$0xff] %v1738_v25  ;;  %v1704_v52 = vadd.f32 %v3331_v17, %v1661_v26  ;;  %v1237_v33 = vmax.f32 %v3641_v53, %v2370_v38  ;;  %v1105_v27 = vpop.f32.mrb[49].mxu0 }
 0x141   :  { %v1531_v54 = vpop.f32.mrb[49].mxu1  ;;  %1773 = vst [vmem:[%s3582_s3 + $0x40] sm:$0xff] %v1737_v30  ;;  %v1703_v55 = vadd.f32 %v3331_v17, %v1660_v37  ;;  %v1236_v14 = vmax.f32 %v3642_v56, %v1105_v27 }
 0x142   :  { %v1740_v24 = vmax.f32 %v1704_v52, 0.0  ;;  %v1663_v28 = vmax.f32 %v1237_v33, %v2432_v51 }
 0x143   :  { %v1739_v40 = vmax.f32 %v1703_v55, 0.0  ;;  %v1662_v41 = vmax.f32 %v1236_v14, %v1531_v54  ;;  %v2373_v29 = vpop.f32.mrb[50].mxu0 }
 0x144   :  { %v2435_v45 = vpop.f32.mrb[50].mxu1  ;;  %1776 = vst [vmem:[%s3582_s3 + $0x58] sm:$0xff] %v1740_v24  ;;  %v1706_v58 = vadd.f32 %v3331_v17, %v1663_v28  ;;  %v1239_v20 = vmax.f32 %v3643_v59, %v2373_v29  ;;  %v1115_v43 = vpop.f32.mrb[51].mxu0 }
 0x145   :  { %v1541_v44 = vpop.f32.mrb[51].mxu1  ;;  %1775 = vst [vmem:[%s3582_s3 + $0x50] sm:$0xff] %v1739_v40  ;;  %v1705_v61 = vadd.f32 %v3331_v17, %v1662_v41  ;;  %v1238_v31 = vmax.f32 %v3644_v62, %v1115_v43 }
 0x146   :  { %v1742_v32 = vmax.f32 %v1706_v58, 0.0  ;;  %v1665_v39 = vmax.f32 %v1239_v20, %v2435_v45 }
 0x147   :  { %v1741_v42 = vmax.f32 %v1705_v61, 0.0  ;;  %v1664_v22 = vmax.f32 %v1238_v31, %v1541_v44  ;;  %v2376_v23 = vpop.f32.mrb[52].mxu0 }
 0x148   :  { %v2438_v57 = vpop.f32.mrb[52].mxu1  ;;  %1778 = vst [vmem:[%s3582_s3 + $0x68] sm:$0xff] %v1742_v32  ;;  %v1708_v0 = vadd.f32 %v3331_v17, %v1665_v39  ;;  %v1241_v46 = vmax.f32 %v3645_v1, %v2376_v23  ;;  %v1125_v47 = vpop.f32.mrb[53].mxu0  ;;  %v3654_v23 = vmax.f32 %v3250_v60, %v3653_v8 }
 0x149   :  { %v1551_v36 = vpop.f32.mrb[53].mxu1  ;;  %1777 = vst [vmem:[%s3582_s3 + $0x60] sm:$0xff] %v1741_v42  ;;  %v1707_v3 = vadd.f32 %v3331_v17, %v1664_v22  ;;  %v1240_v48 = vmax.f32 %v3646_v4, %v1125_v47 }
 0x14a   :  { %v1744_v34 = vmax.f32 %v1708_v0, 0.0  ;;  %v1667_v49 = vmax.f32 %v1241_v46, %v2438_v57  ;;  %v3656_v46 = vld [vmem:[#allocation4_spill] sm:$0xff] }
 0x14b   :  { %v1743_v50 = vmax.f32 %v1707_v3, 0.0  ;;  %v1666_v35 = vmax.f32 %v1240_v48, %v1551_v36  ;;  %v2379_v25 = vpop.f32.mrb[54].mxu0  ;;  %v3657_v47 = vmax.f32 %v3655_v2, %v3656_v46 }
 0x14c   :  { %v2441_v26 = vpop.f32.mrb[54].mxu1  ;;  %1780 = vst [vmem:[%s3582_s3 + $0x78] sm:$0xff] %v1744_v34  ;;  %v1710_v6 = vadd.f32 %v3331_v17, %v1667_v49  ;;  %v1243_v30 = vmax.f32 %v3647_v7, %v2379_v25  ;;  %v1135_v37 = vpop.f32.mrb[55].mxu0  ;;  %v3659_v25 = vld [vmem:[#allocation6_spill] sm:$0xff] }
 0x14d   :  { %v1561_v38 = vpop.f32.mrb[55].mxu1  ;;  %1779 = vst [vmem:[%s3582_s3 + $0x70] sm:$0xff] %v1743_v50  ;;  %v1709_v9 = vadd.f32 %v3331_v17, %v1666_v35  ;;  %v1242_v51 = vmax.f32 %v3648_v10, %v1135_v37  ;;  %v3658_v35 = vld [vmem:[#allocation5_spill] sm:$0xff] }
 0x14e   :  { %v1746_v52 = vmax.f32 %v1710_v6, 0.0  ;;  %v1669_v53 = vmax.f32 %v1243_v30, %v2441_v26  ;;  %v3660_v26 = vmax.f32 %v3658_v35, %v3659_v25 }
 0x14f   :  { %v1745_v33 = vmax.f32 %v1709_v9, 0.0  ;;  %v1668_v27 = vmax.f32 %v1242_v51, %v1561_v38  ;;  %v2382_v54 = vpop.f32.mrb[56].mxu0  ;;  %v3661_v38 = vld [vmem:[#allocation7_spill] sm:$0xff]  ;;  %v3662_v9 = vld [vmem:[#allocation8_spill] sm:$0xff] }
 0x150   :  { %v2444_v55 = vpop.f32.mrb[56].mxu1  ;;  %1782 = vst [vmem:[%s3582_s3 + $0x88] sm:$0xff] %v1746_v52  ;;  %v1712_v12 = vadd.f32 %v3331_v17, %v1669_v53  ;;  %v1245_v56 = vmax.f32 %v3649_v13, %v2382_v54  ;;  %v1145_v14 = vpop.f32.mrb[57].mxu0  ;;  %v3663_v10 = vmax.f32 %v3661_v38, %v3662_v9  ;;  %v3664_v13 = vld [vmem:[#allocation9_spill] sm:$0xff] }
 0x151   :  { %v1571_v24 = vpop.f32.mrb[57].mxu1  ;;  %1781 = vst [vmem:[%s3582_s3 + $0x80] sm:$0xff] %v1745_v33  ;;  %v1711_v15 = vadd.f32 %v3331_v17, %v1668_v27  ;;  %v1244_v28 = vmax.f32 %v3650_v16, %v1145_v14 }
 0x152   :  { %v1748_v40 = vmax.f32 %v1712_v12, 0.0  ;;  %v1671_v41 = vmax.f32 %v1245_v56, %v2444_v55  ;;  %v3665_v56 = vld [vmem:[#allocation10_spill] sm:$0xff] }
 0x153   :  { %v1747_v29 = vmax.f32 %v1711_v15, 0.0  ;;  %v1670_v45 = vmax.f32 %v1244_v28, %v1571_v24  ;;  %v2385_v58 = vpop.f32.mrb[58].mxu0  ;;  %v3666_v14 = vmax.f32 %v3664_v13, %v3665_v56 }
 0x154   :  { %v2447_v59 = vpop.f32.mrb[58].mxu1  ;;  %1784 = vst [vmem:[%s3582_s3 + $0x98] sm:$0xff] %v1748_v40  ;;  %v1714_v18 = vadd.f32 %v3331_v17, %v1671_v41  ;;  %v1247_v20 = vmax.f32 %v3651_v19, %v2385_v58  ;;  %v1155_v43 = vpop.f32.mrb[59].mxu0  ;;  %v3667_v40 = vld [vmem:[#allocation11_spill] sm:$0xff]  ;;  %v3668_v41 = vld [vmem:[#allocation12_spill] sm:$0xff] }
 0x155   :  { %v1581_v44 = vpop.f32.mrb[59].mxu1  ;;  %1783 = vst [vmem:[%s3582_s3 + $0x90] sm:$0xff] %v1747_v29  ;;  %v1713_v11 = vadd.f32 %v3331_v17, %v1670_v45  ;;  %v1246_v61 = vmax.f32 %v3652_v21, %v1155_v43  ;;  %v3669_v29 = vmax.f32 %v3667_v40, %v3668_v41  ;;  %v3671_v21 = vld [vmem:[#allocation14_spill] sm:$0xff] }
 0x156   :  { %v1750_v62 = vmax.f32 %v1714_v18, 0.0  ;;  %v1673_v31 = vmax.f32 %v1247_v20, %v2447_v59 }
 0x157   :  { %v1749_v32 = vmax.f32 %v1713_v11, 0.0  ;;  %v1672_v39 = vmax.f32 %v1246_v61, %v1581_v44  ;;  %v2388_v42 = vpop.f32.mrb[60].mxu0  ;;  %v3670_v11 = vld [vmem:[#allocation13_spill] sm:$0xff] }
 0x158   :  { %v2450_v22 = vpop.f32.mrb[60].mxu1  ;;  %1786 = vst [vmem:[%s3582_s3 + $0xa8] sm:$0xff] %v1750_v62  ;;  %v1716_v5 = vadd.f32 %v3331_v17, %v1673_v31  ;;  %v1249_v57 = vmax.f32 %v3654_v23, %v2388_v42  ;;  %v1165_v0 = vpop.f32.mrb[61].mxu0  ;;  %v3672_v61 = vmax.f32 %v3670_v11, %v3671_v21  ;;  %v3673_v42 = vld [vmem:[#allocation15_spill] sm:$0xff] }
 0x159   :  { %v1591_v1 = vpop.f32.mrb[61].mxu1  ;;  %1785 = vst [vmem:[%s3582_s3 + $0xa0] sm:$0xff] %v1749_v32  ;;  %v1715_v63 = vadd.f32 %v3331_v17, %v1672_v39  ;;  %v1248_v36 = vmax.f32 %v3657_v47, %v1165_v0  ;;  %v3676_v47 = vld [vmem:[#allocation17_spill] sm:$0xff] }
 0x15a   :  { %v1752_v3 = vmax.f32 %v1716_v5, 0.0  ;;  %v1675_v4 = vmax.f32 %v1249_v57, %v2450_v22  ;;  %v3674_v22 = vld [vmem:[#allocation16_spill] sm:$0xff] }
 0x15b   :  { %v1751_v48 = vmax.f32 %v1715_v63, 0.0  ;;  %v1674_v34 = vmax.f32 %v1248_v36, %v1591_v1  ;;  %v2391_v49 = vpop.f32.mrb[62].mxu0  ;;  %v3675_v5 = vmax.f32 %v3673_v42, %v3674_v22  ;;  %v3677_v36 = vld [vmem:[#allocation18_spill] sm:$0xff] }
 0x15c   :  { %v2453_v50 = vpop.f32.mrb[62].mxu1  ;;  %1788 = vst [vmem:[%s3582_s3 + $0xb8] sm:$0xff] %v1752_v3  ;;  %v1718_v60 = vadd.f32 %v3331_v17, %v1675_v4  ;;  %v1251_v6 = vmax.f32 %v3660_v26, %v2391_v49  ;;  %v1175_v7 = vpop.f32.mrb[63].mxu0  ;;  %v3678_v3 = vmax.f32 %v3676_v47, %v3677_v36 }
 0x15d   :  { %v1601_v30 = vpop.f32.mrb[63].mxu1  ;;  %1787 = vst [vmem:[%s3582_s3 + $0xb0] sm:$0xff] %v1751_v48  ;;  %v1717_v37 = vadd.f32 %v3331_v17, %v1674_v34  ;;  %v1250_v51 = vmax.f32 %v3663_v10, %v1175_v7  ;;  %v3682_v10 = vld [vmem:[#allocation21_spill] sm:$0xff] }
 0x15e   :  { %v1754_v52 = vmax.f32 %v1718_v60, 0.0  ;;  %v1677_v53 = vmax.f32 %v1251_v6, %v2453_v50  ;;  %v3679_v50 = vld [vmem:[#allocation19_spill] sm:$0xff]  ;;  %v3680_v60 = vld [vmem:[#allocation20_spill] sm:$0xff] }
 0x15f   :  { %v1753_v33 = vmax.f32 %v1717_v37, 0.0  ;;  %v1676_v27 = vmax.f32 %v1250_v51, %v1601_v30  ;;  %v2394_v54 = vpop.f32.mrb[64].mxu0  ;;  %v3681_v35 = vmax.f32 %v3679_v50, %v3680_v60  ;;  %v3683_v51 = vld [vmem:[#allocation22_spill] sm:$0xff] }
 0x160   :  { %v2456_v55 = vpop.f32.mrb[64].mxu1  ;;  %1790 = vst [vmem:[%s3582_s3 + $0xc8] sm:$0xff] %v1754_v52  ;;  %v1720_v12 = vadd.f32 %v3331_v17, %v1677_v53  ;;  %v1253_v24 = vmax.f32 %v3666_v14, %v2394_v54  ;;  %v1185_v15 = vpop.f32.mrb[65].mxu0  ;;  %v3684_v52 = vmax.f32 %v3682_v10, %v3683_v51 }
 0x161   :  { %v1611_v16 = vpop.f32.mrb[65].mxu1  ;;  %1789 = vst [vmem:[%s3582_s3 + $0xc0] sm:$0xff] %v1753_v33  ;;  %v1719_v28 = vadd.f32 %v3331_v17, %v1676_v27  ;;  %v1252_v45 = vmax.f32 %v3669_v29, %v1185_v15 }
 0x162   :  { %v1756_v58 = vmax.f32 %v1720_v12, 0.0  ;;  %v1679_v59 = vmax.f32 %v1253_v24, %v2456_v55  ;;  %v3685_v55 = vld [vmem:[#allocation23_spill] sm:$0xff]  ;;  %v3686_v12 = vld [vmem:[#allocation24_spill] sm:$0xff] }
 0x163   :  { %v1755_v18 = vmax.f32 %v1719_v28, 0.0  ;;  %v1678_v19 = vmax.f32 %v1252_v45, %v1611_v16  ;;  %v2397_v20 = vpop.f32.mrb[66].mxu0  ;;  %v3687_v13 = vmax.f32 %v3685_v55, %v3686_v12 }
 0x164   :  { %v2459_v43 = vpop.f32.mrb[66].mxu1  ;;  %1792 = vst [vmem:[%s3582_s3 + $0xd8] sm:$0xff] %v1756_v58  ;;  %v1722_v44 = vadd.f32 %v3331_v17, %v1679_v59  ;;  %v1255_v62 = vmax.f32 %v3672_v61, %v2397_v20  ;;  %v1195_v31 = vpop.f32.mrb[67].mxu0 }
 0x165   :  { %v1621_v32 = vpop.f32.mrb[67].mxu1  ;;  %1791 = vst [vmem:[%s3582_s3 + $0xd0] sm:$0xff] %v1755_v18  ;;  %v1721_v39 = vadd.f32 %v3331_v17, %v1678_v19  ;;  %v1254_v8 = vmax.f32 %v3675_v5, %v1195_v31 }
 0x166   :  { %v1758_v23 = vmax.f32 %v1722_v44, 0.0  ;;  %v1681_v57 = vmax.f32 %v1255_v62, %v2459_v43 }
 0x167   :  { %v1757_v0 = vmax.f32 %v1721_v39, 0.0  ;;  %v1680_v1 = vmax.f32 %v1254_v8, %v1621_v32  ;;  %v2400_v63 = vpop.f32.mrb[68].mxu0 }
 0x168   :  { %v2462_v2 = vpop.f32.mrb[68].mxu1  ;;  %1794 = vst [vmem:[%s3582_s3 + $0xe8] sm:$0xff] %v1758_v23  ;;  %v1724_v46 = vadd.f32 %v3331_v17, %v1681_v57  ;;  %v1257_v4 = vmax.f32 %v3678_v3, %v2400_v63  ;;  %v1205_v48 = vpop.f32.mrb[69].mxu0 }
 0x169   :  { %v1631_v34 = vpop.f32.mrb[69].mxu1  ;;  %1793 = vst [vmem:[%s3582_s3 + $0xe0] sm:$0xff] %v1757_v0  ;;  %v1723_v49 = vadd.f32 %v3331_v17, %v1680_v1  ;;  %v1256_v25 = vmax.f32 %v3681_v35, %v1205_v48 }
 0x16a   :  { %v1760_v26 = vmax.f32 %v1724_v46, 0.0  ;;  %v1683_v6 = vmax.f32 %v1257_v4, %v2462_v2 }
 0x16b   :  { %v1759_v7 = vmax.f32 %v1723_v49, 0.0  ;;  %v1682_v30 = vmax.f32 %v1256_v25, %v1631_v34  ;;  %v2403_v37 = vpop.f32.mrb[70].mxu0 }
 0x16c   :  { %v2465_v38 = vpop.f32.mrb[70].mxu1  ;;  %1796 = vst [vmem:[%s3582_s3 + $0xf8] sm:$0xff] %v1760_v26  ;;  %v1726_v9 = vadd.f32 %v3331_v17, %v1683_v6  ;;  %v1259_v53 = vmax.f32 %v3684_v52, %v2403_v37  ;;  %v1215_v33 = vpop.f32.mrb[71].mxu0 }
 0x16d   :  { %v1641_v27 = vpop.f32.mrb[71].mxu1  ;;  %1795 = vst [vmem:[%s3582_s3 + $0xf0] sm:$0xff] %v1759_v7  ;;  %v1725_v54 = vadd.f32 %v3331_v17, %v1682_v30  ;;  %v1258_v56 = vmax.f32 %v3687_v13, %v1215_v33 }
 0x16e   :  { %v1762_v14 = vmax.f32 %v1726_v9, 0.0  ;;  %v1685_v24 = vmax.f32 %v1259_v53, %v2465_v38 }
 0x16f   :  { %v1761_v15 = vmax.f32 %v1725_v54, 0.0  ;;  %v1684_v16 = vmax.f32 %v1258_v56, %v1641_v27 }
 0x170   :  { %1798 = vst [vmem:[%s3582_s3 + $0x108] sm:$0xff] %v1762_v14  ;;  %v1728_v28 = vadd.f32 %v3331_v17, %v1685_v24 }
 0x171   :  { %1797 = vst [vmem:[%s3582_s3 + $0x100] sm:$0xff] %v1761_v15  ;;  %v1727_v40 = vadd.f32 %v3331_v17, %v1684_v16 }
 0x172   :  { %v1764_v41 = vmax.f32 %v1728_v28, 0.0 }
 0x173   :  { %v1763_v29 = vmax.f32 %v1727_v40, 0.0 }
 0x174   :  { %1800 = vst [vmem:[%s3582_s3 + $0x118] sm:$0xff] %v1764_v41 }
 0x175   :  { %1799 = vst [vmem:[%s3582_s3 + $0x110] sm:$0xff] %v1763_v29 }

// kernel: convnet_forward.3
= control target key start
LH: loop header
LB: loop body
LE: loop exit
PB: predicated region body
PF: predicated region fallthrough
CT: control target
= control target key end

     0   :  { %s5309_s0 = inlined_call_operand.vmem [shape: f32[4,32,256], index: 0, kind: input, shape index: {}]   ;;  %s5310_s1 = inlined_call_operand.vmem [shape: f32[256,128], index: 1, kind: input, shape index: {}]   ;;  %s5311_s2 = inlined_call_operand.vmem [shape: f32[1,128], index: 2, kind: input, shape index: {}]   ;;  %s5312_s3 = inlined_call_operand.vmem [shape: f32[16,128,128], index: 3, kind: input, shape index: {}]   ;;  %s5313_s4 = inlined_call_operand.vmem [shape: f32[1,128], index: 4, kind: input, shape index: {}]   ;;  %s5314_s5 = inlined_call_operand.vmem [shape: f32[128,128], index: 5, kind: input, shape index: {}]   ;;  %s5315_s6 = inlined_call_operand.vmem [shape: f32[1,128], index: 6, kind: input, shape index: {}]   ;;  %s5316_s7 = inlined_call_operand.hbm [shape: f32[2,128], index: 7, kind: output, shape index: {}]  }
   0x1   :  { %v43_v0 = vld [vmem:[%s5310_s1 + $0x80] sm:$0xff]  ;;  %v44_v1 = vld [vmem:[%s5310_s1 + $0x88] sm:$0xff]  ;;  %v45_v5 = vld [vmem:[%s5310_s1 + $0x90] sm:$0xff] }
   0x2   :  { %v27_v2 = vld [vmem:[%s5310_s1] sm:$0xff]  ;;  %v3978_v3 = vpack.c.bf16 %v44_v1, %v43_v0  ;;  %v28_v4 = vld [vmem:[%s5310_s1 + $0x8] sm:$0xff]  ;;  %v46_v6 = vld [vmem:[%s5310_s1 + $0x98] sm:$0xff] }
   0x3   :  { %v3989_v7 = vpack.c.bf16 %v28_v4, %v27_v2  ;;  %v3991_v8 = vpack.c.bf16 %v46_v6, %v45_v5  ;;  %v29_v9 = vld [vmem:[%s5310_s1 + $0x10] sm:$0xff]  ;;  %v30_v10 = vld [vmem:[%s5310_s1 + $0x18] sm:$0xff]  ;;  %v47_v11 = vld [vmem:[%s5310_s1 + $0xa0] sm:$0xff] }
   0x4   :  { %3358 = vmatprep.subr.bf16.mxu0 %v3978_v3  ;;  %3390 = vmatprep.subr.bf16.mxu1 %v3978_v3  ;;  %v48_v12 = vld [vmem:[%s5310_s1 + $0xa8] sm:$0xff]  ;;  %v4009_v13 = vpack.c.bf16 %v30_v10, %v29_v9  ;;  %v31_v15 = vld [vmem:[%s5310_s1 + $0x20] sm:$0xff]  ;;  %v49_v17 = vld [vmem:[%s5310_s1 + $0xb0] sm:$0xff] }
   0x5   :  { %3360 = vmatpush3.bf16.msra.mxu0 %v3989_v7  ;;  %3392 = vmatpush3.bf16.msra.mxu1 %v3989_v7  ;;  %v4013_v14 = vpack.c.bf16 %v48_v12, %v47_v11  ;;  %v32_v16 = vld [vmem:[%s5310_s1 + $0x28] sm:$0xff]  ;;  %v50_v18 = vld [vmem:[%s5310_s1 + $0xb8] sm:$0xff]  ;;  %v33_v21 = vld [vmem:[%s5310_s1 + $0x30] sm:$0xff] }
   0x6   :  { %3362 = vmatprep.subr.bf16.mxu0 %v3991_v8  ;;  %3394 = vmatprep.subr.bf16.mxu1 %v3991_v8  ;;  %v4029_v19 = vpack.c.bf16 %v32_v16, %v31_v15  ;;  %v4033_v20 = vpack.c.bf16 %v50_v18, %v49_v17  ;;  %v34_v22 = vld [vmem:[%s5310_s1 + $0x38] sm:$0xff]  ;;  %v51_v23 = vld [vmem:[%s5310_s1 + $0xc0] sm:$0xff]  ;;  %v52_v24 = vld [vmem:[%s5310_s1 + $0xc8] sm:$0xff] }
   0x7   :  { %v60_v25 = vld [vmem:[%s5309_s0 + $0x8] sm:$0xff]  ;;  %v4055_v27 = vpack.c.bf16 %v34_v22, %v33_v21  ;;  %v4059_v28 = vpack.c.bf16 %v52_v24, %v51_v23  ;;  %v35_v29 = vld [vmem:[%s5310_s1 + $0x40] sm:$0xff]  ;;  %v53_v31 = vld [vmem:[%s5310_s1 + $0xd0] sm:$0xff] }
   0x8   :  { %131 = vmatprep.mubr.f32.mxu0 %v60_v25  ;;  %v2031_v26 = vld [vmem:[%s5309_s0 + $0x48] sm:$0xff]  ;;  %v54_v32 = vld [vmem:[%s5310_s1 + $0xd8] sm:$0xff]  ;;  %v37_v35 = vld [vmem:[%s5310_s1 + $0x50] sm:$0xff] }
   0x9   :  { %3364 = vmatpush3.bf16.msra.mxu0 %v4009_v13  ;;  %3396 = vmatpush3.bf16.msra.mxu1 %v4009_v13  ;;  %v36_v30 = vld [vmem:[%s5310_s1 + $0x48] sm:$0xff]  ;;  %v4079_v34 = vpack.c.bf16 %v54_v32, %v53_v31  ;;  %v38_v36 = vld [vmem:[%s5310_s1 + $0x58] sm:$0xff]  ;;  %v55_v37 = vld [vmem:[%s5310_s1 + $0xe0] sm:$0xff] }
   0xa   :  { %3366 = vmatprep.subr.bf16.mxu0 %v4013_v14  ;;  %3398 = vmatprep.subr.bf16.mxu1 %v4013_v14  ;;  %v4075_v33 = vpack.c.bf16 %v36_v30, %v35_v29  ;;  %v56_v38 = vld [vmem:[%s5310_s1 + $0xe8] sm:$0xff]  ;;  %v4095_v39 = vpack.c.bf16 %v38_v36, %v37_v35  ;;  %v39_v41 = vld [vmem:[%s5310_s1 + $0x60] sm:$0xff] }
   0xb   :  { %225 = vmatprep.mubr.f32.mxu1 %v2031_v26  ;;  %v4099_v40 = vpack.c.bf16 %v56_v38, %v55_v37  ;;  %v40_v42 = vld [vmem:[%s5310_s1 + $0x68] sm:$0xff] }
   0xd   :  { %3368 = vmatpush3.bf16.msra.mxu0 %v4029_v19  ;;  %3400 = vmatpush3.bf16.msra.mxu1 %v4029_v19 }
   0xe   :  { %3370 = vmatprep.subr.bf16.mxu0 %v4033_v20  ;;  %3402 = vmatprep.subr.bf16.mxu1 %v4033_v20 }
  0x11   :  { %3372 = vmatpush3.bf16.msra.mxu0 %v4055_v27  ;;  %3404 = vmatpush3.bf16.msra.mxu1 %v4055_v27 }
  0x12   :  { %3374 = vmatprep.subr.bf16.mxu0 %v4059_v28  ;;  %3406 = vmatprep.subr.bf16.mxu1 %v4059_v28 }
  0x15   :  { %3376 = vmatpush3.bf16.msra.mxu0 %v4075_v33  ;;  %3408 = vmatpush3.bf16.msra.mxu1 %v4075_v33 }
  0x16   :  { %3378 = vmatprep.subr.bf16.mxu0 %v4079_v34  ;;  %3410 = vmatprep.subr.bf16.mxu1 %v4079_v34 }
  0x17   :  { %12 = vsyncpa [#allocation3], 0  ;;  %v57_v43 = vld [vmem:[%s5310_s1 + $0xf0] sm:$0xff]  ;;  %v58_v44 = vld [vmem:[%s5310_s1 + $0xf8] sm:$0xff]  ;;  %v4115_v45 = vpack.c.bf16 %v40_v42, %v39_v41  ;;  %vm3926_vm0 = vmmov 0   ;;  %vm2000_vm2 = vcmask 1041408  }
  0x18   :  { %v4119_v46 = vpack.c.bf16 %v58_v44, %v57_v43  ;;  %v41_v47 = vld [vmem:[%s5310_s1 + $0x70] sm:$0xff]  ;;  %v42_v48 = vld [vmem:[%s5310_s1 + $0x78] sm:$0xff]  ;;  %v59_v50 = vld [vmem:[%s5309_s0] sm:$0xff] }
  0x19   :  { %3380 = vmatpush3.bf16.msra.mxu0 %v4095_v39  ;;  %3412 = vmatpush3.bf16.msra.mxu1 %v4095_v39  ;;  %v4129_v49 = vpack.c.bf16 %v42_v48, %v41_v47  ;;  %v2030_v51 = vld [vmem:[%s5309_s0 + $0x40] sm:$0xff]  ;;  %v62_v52 = vld [vmem:[%s5309_s0 + $0x18] sm:$0xff]  ;;  %v61_v54 = vld [vmem:[%s5309_s0 + $0x10] sm:$0xff] }
  0x1a   :  { %3382 = vmatprep.subr.bf16.mxu0 %v4099_v40  ;;  %3414 = vmatprep.subr.bf16.mxu1 %v4099_v40  ;;  %v2033_v53 = vld [vmem:[%s5309_s0 + $0x58] sm:$0xff]  ;;  %v2032_v55 = vld [vmem:[%s5309_s0 + $0x50] sm:$0xff]  ;;  %v64_v56 = vld [vmem:[%s5309_s0 + $0x28] sm:$0xff] }
  0x1b   :  { %v2035_v57 = vld [vmem:[%s5309_s0 + $0x68] sm:$0xff]  ;;  %v63_v58 = vld [vmem:[%s5309_s0 + $0x20] sm:$0xff]  ;;  %v66_v60 = vld [vmem:[%s5309_s0 + $0x38] sm:$0xff] }
  0x1c   :  { %v2034_v59 = vld [vmem:[%s5309_s0 + $0x60] sm:$0xff]  ;;  %v2037_v61 = vld [vmem:[%s5309_s0 + $0x78] sm:$0xff]  ;;  %v65_v62 = vld [vmem:[%s5309_s0 + $0x30] sm:$0xff] }
  0x1d   :  { %3384 = vmatpush3.bf16.msra.mxu0 %v4115_v45  ;;  %3416 = vmatpush3.bf16.msra.mxu1 %v4115_v45  ;;  %v2036_v63 = vld [vmem:[%s5309_s0 + $0x70] sm:$0xff]  ;;  %v2039_v0 = vld [vmem:[%s5309_s0 + $0x88] sm:$0xff]  ;;  %v2038_v2 = vld [vmem:[%s5309_s0 + $0x80] sm:$0xff] }
  0x1e   :  { %3386 = vmatprep.subr.bf16.mxu0 %v4119_v46  ;;  %3418 = vmatprep.subr.bf16.mxu1 %v4119_v46  ;;  %v2047_v1 = vld [vmem:[%s5309_s0 + $0xc8] sm:$0xff]  ;;  %v2041_v4 = vld [vmem:[%s5309_s0 + $0x98] sm:$0xff]  ;;  %v2040_v6 = vld [vmem:[%s5309_s0 + $0x90] sm:$0xff] }
  0x1f   :  { %v2049_v5 = vld [vmem:[%s5309_s0 + $0xd8] sm:$0xff]  ;;  %v2051_v9 = vld [vmem:[%s5309_s0 + $0xe8] sm:$0xff]  ;;  %v2042_v10 = vld [vmem:[%s5309_s0 + $0xa0] sm:$0xff] }
  0x20   :  { %v2050_v11 = vld [vmem:[%s5309_s0 + $0xe0] sm:$0xff]  ;;  %v2045_v12 = vld [vmem:[%s5309_s0 + $0xb8] sm:$0xff]  ;;  %v2052_v15 = vld [vmem:[%s5309_s0 + $0xf0] sm:$0xff] }
  0x21   :  { %3388 = vmatpush3.bf16.msra.mxu0 %v4129_v49  ;;  %3420 = vmatpush3.bf16.msra.mxu1 %v4129_v49  ;;  %v461_v16 = vld [vmem:[%s5312_s3] sm:$0xff]  ;;  %v462_v17 = vld [vmem:[%s5312_s3 + $0x8] sm:$0xff]  ;;  %v463_v22 = vld [vmem:[%s5312_s3 + $0x10] sm:$0xff] }
  0x22   :  { %3422 = vmatprep.subr.bf16.mxu0 %v3978_v3  ;;  %3454 = vmatprep.subr.bf16.mxu1 %v3978_v3  ;;  %v2046_v3 = vld [vmem:[%s5309_s0 + $0xc0] sm:$0xff]  ;;  %v2056_v21 = vld [vmem:[%s5312_s3 + $0x88] sm:$0xff]  ;;  %v464_v23 = vld [vmem:[%s5312_s3 + $0x18] sm:$0xff] }
  0x23   :  { %v2055_v18 = vld [vmem:[%s5312_s3 + $0x80] sm:$0xff]  ;;  %v2057_v25 = vld [vmem:[%s5312_s3 + $0x90] sm:$0xff]  ;;  %v2058_v26 = vld [vmem:[%s5312_s3 + $0x98] sm:$0xff] }
  0x24   :  { %132 = vmatmul.mubr.f32.vlgmr.msra.gmra.mrb[0].mxu0 %v59_v50  ;;  %226 = vmatmul.mubr.f32.vlgmr.msra.gmra.mrb[0].mxu1 %v2030_v51  ;;  %v3486_v24 = vpack.c.bf16 %v2056_v21, %v2055_v18  ;;  %v465_v29 = vld [vmem:[%s5312_s3 + $0x20] sm:$0xff]  ;;  %v466_v30 = vld [vmem:[%s5312_s3 + $0x28] sm:$0xff]  ;;  %v467_v35 = vld [vmem:[%s5312_s3 + $0x30] sm:$0xff] }
  0x25   :  { %3424 = vmatpush3.bf16.msra.mxu0 %v3989_v7  ;;  %3456 = vmatpush3.bf16.msra.mxu1 %v3989_v7  ;;  %v2048_v7 = vld [vmem:[%s5309_s0 + $0xd0] sm:$0xff]  ;;  %v2059_v31 = vld [vmem:[%s5312_s3 + $0xa0] sm:$0xff]  ;;  %v2060_v32 = vld [vmem:[%s5312_s3 + $0xa8] sm:$0xff] }
  0x26   :  { %3426 = vmatprep.subr.bf16.mxu0 %v3991_v8  ;;  %3458 = vmatprep.subr.bf16.mxu1 %v3991_v8  ;;  %v2043_v8 = vld [vmem:[%s5309_s0 + $0xa8] sm:$0xff]  ;;  %v468_v36 = vld [vmem:[%s5312_s3 + $0x38] sm:$0xff]  ;;  %v2061_v37 = vld [vmem:[%s5312_s3 + $0xb0] sm:$0xff] }
  0x27   :  { %136 = vmatprep.mubr.f32.mxu0 %v62_v52  ;;  %230 = vmatprep.mubr.f32.mxu1 %v2033_v53  ;;  %v2062_v38 = vld [vmem:[%s5312_s3 + $0xb8] sm:$0xff]  ;;  %v469_v41 = vld [vmem:[%s5312_s3 + $0x40] sm:$0xff]  ;;  %v470_v42 = vld [vmem:[%s5312_s3 + $0x48] sm:$0xff] }
  0x28   :  { %137 = vmatmul.mubr.f32.gmra.mrb[2].mxu0 %v61_v54  ;;  %231 = vmatmul.mubr.f32.gmra.mrb[2].mxu1 %v2032_v55  ;;  %v2063_v43 = vld [vmem:[%s5312_s3 + $0xc0] sm:$0xff]  ;;  %v2064_v44 = vld [vmem:[%s5312_s3 + $0xc8] sm:$0xff]  ;;  %v471_v47 = vld [vmem:[%s5312_s3 + $0x50] sm:$0xff] }
  0x29   :  { %3428 = vmatpush3.bf16.msra.mxu0 %v4009_v13  ;;  %3460 = vmatpush3.bf16.msra.mxu1 %v4009_v13  ;;  %v2053_v13 = vld [vmem:[%s5309_s0 + $0xf8] sm:$0xff]  ;;  %v2065_v50 = vld [vmem:[%s5312_s3 + $0xd0] sm:$0xff]  ;;  %v473_v53 = vld [vmem:[%s5312_s3 + $0x60] sm:$0xff] }
  0x2a   :  { %3430 = vmatprep.subr.bf16.mxu0 %v4013_v14  ;;  %3462 = vmatprep.subr.bf16.mxu1 %v4013_v14  ;;  %v2044_v14 = vld [vmem:[%s5309_s0 + $0xb0] sm:$0xff]  ;;  %v472_v48 = vld [vmem:[%s5312_s3 + $0x58] sm:$0xff]  ;;  %v474_v54 = vld [vmem:[%s5312_s3 + $0x68] sm:$0xff] }
  0x2b   :  { %141 = vmatprep.mubr.f32.mxu0 %v64_v56  ;;  %235 = vmatprep.mubr.f32.mxu1 %v2035_v57  ;;  %v2066_v51 = vld [vmem:[%s5312_s3 + $0xd8] sm:$0xff]  ;;  %v3528_v55 = vpack.c.bf16 %v474_v54, %v473_v53  ;;  %v2067_v56 = vld [vmem:[%s5312_s3 + $0xe0] sm:$0xff]  ;;  %v2068_v57 = vld [vmem:[%s5312_s3 + $0xe8] sm:$0xff] }
  0x2c   :  { %142 = vmatmul.mubr.f32.gmra.mrb[4].mxu0 %v63_v58  ;;  %236 = vmatmul.mubr.f32.gmra.mrb[4].mxu1 %v2034_v59  ;;  %v3501_v52 = vpack.c.bf16 %v2066_v51, %v2065_v50  ;;  %v3504_v58 = vpack.c.bf16 %v2068_v57, %v2067_v56  ;;  %v475_v59 = vld [vmem:[%s5312_s3 + $0x70] sm:$0xff]  ;;  %v2072_v53 = vld [vmem:[%s5312_s3 + $0x108] sm:$0xff] }
  0x2d   :  { %3432 = vmatpush3.bf16.msra.mxu0 %v4029_v19  ;;  %3464 = vmatpush3.bf16.msra.mxu1 %v4029_v19  ;;  %v3925_v19 = vmov 0.0|0.0  }
  0x2e   :  { %3434 = vmatprep.subr.bf16.mxu0 %v4033_v20  ;;  %3466 = vmatprep.subr.bf16.mxu1 %v4033_v20  ;;  %v3510_v20 = vpack.c.bf16 %v462_v17, %v461_v16 }
  0x2f   :  { %146 = vmatprep.mubr.f32.mxu0 %v66_v60  ;;  %240 = vmatprep.mubr.f32.mxu1 %v2037_v61  ;;  %v476_v60 = vld [vmem:[%s5312_s3 + $0x78] sm:$0xff] }
  0x30   :  { %147 = vmatmul.mubr.f32.gmra.mrb[6].mxu0 %v65_v62  ;;  %241 = vmatmul.mubr.f32.gmra.mrb[6].mxu1 %v2036_v63  ;;  %v3531_v61 = vpack.c.bf16 %v476_v60, %v475_v59  ;;  %v2069_v62 = vld [vmem:[%s5312_s3 + $0xf0] sm:$0xff]  ;;  %v2070_v63 = vld [vmem:[%s5312_s3 + $0xf8] sm:$0xff] }
  0x31   :  { %3436 = vmatpush3.bf16.msra.mxu0 %v4055_v27  ;;  %3468 = vmatpush3.bf16.msra.mxu1 %v4055_v27  ;;  %v3513_v27 = vpack.c.bf16 %v464_v23, %v463_v22 }
  0x32   :  { %3438 = vmatprep.subr.bf16.mxu0 %v4059_v28  ;;  %3470 = vmatprep.subr.bf16.mxu1 %v4059_v28  ;;  %v3489_v28 = vpack.c.bf16 %v2058_v26, %v2057_v25 }
  0x33   :  { %323 = vmatprep.mubr.f32.mxu0 %v2039_v0  ;;  %421 = vmatprep.mubr.f32.mxu1 %v2047_v1  ;;  %v3507_v0 = vpack.c.bf16 %v2070_v63, %v2069_v62  ;;  %v3927_v1 = vmov 0.0   ;;  %v2090_v62 = vld [vmem:[%s5312_s3 + $0x198] sm:$0xff] }
  0x35   :  { %3440 = vmatpush3.bf16.msra.mxu0 %v4075_v33  ;;  %3472 = vmatpush3.bf16.msra.mxu1 %v4075_v33  ;;  %v3516_v33 = vpack.c.bf16 %v466_v30, %v465_v29 }
  0x36   :  { %3442 = vmatprep.subr.bf16.mxu0 %v4079_v34  ;;  %3474 = vmatprep.subr.bf16.mxu1 %v4079_v34  ;;  %v3492_v34 = vpack.c.bf16 %v2060_v32, %v2059_v31 }
  0x39   :  { %3444 = vmatpush3.bf16.msra.mxu0 %v4095_v39  ;;  %3476 = vmatpush3.bf16.msra.mxu1 %v4095_v39  ;;  %v3519_v39 = vpack.c.bf16 %v468_v36, %v467_v35 }
  0x3a   :  { %3446 = vmatprep.subr.bf16.mxu0 %v4099_v40  ;;  %3478 = vmatprep.subr.bf16.mxu1 %v4099_v40  ;;  %v3495_v40 = vpack.c.bf16 %v2062_v38, %v2061_v37 }
  0x3d   :  { %3448 = vmatpush3.bf16.msra.mxu0 %v4115_v45  ;;  %3480 = vmatpush3.bf16.msra.mxu1 %v4115_v45  ;;  %v3522_v45 = vpack.c.bf16 %v470_v42, %v469_v41 }
  0x3e   :  { %3450 = vmatprep.subr.bf16.mxu0 %v4119_v46  ;;  %3482 = vmatprep.subr.bf16.mxu1 %v4119_v46  ;;  %v3498_v46 = vpack.c.bf16 %v2064_v44, %v2063_v43 }
  0x41   :  { %3452 = vmatpush3.bf16.msra.mxu0 %v4129_v49  ;;  %3484 = vmatpush3.bf16.msra.mxu1 %v4129_v49  ;;  %v3525_v49 = vpack.c.bf16 %v472_v48, %v471_v47  ;;  %v2088_v47 = vld [vmem:[%s5312_s3 + $0x188] sm:$0xff] }
  0x42   :  { %3509 = vmatprep.subr.bf16.mxu1 %v3925_v19  ;;  %3485 = vmatprep.subr.bf16.mxu0 %v3925_v19 }
  0x44   :  { %324 = vmatmul.mubr.f32.vlgmr.msra.gmra.mrb[8].mxu0 %v2038_v2  ;;  %422 = vmatmul.mubr.f32.vlgmr.msra.gmra.mrb[8].mxu1 %v2046_v3 }
  0x45   :  { %328 = vmatprep.mubr.f32.mxu0 %v2041_v4  ;;  %426 = vmatprep.mubr.f32.mxu1 %v2049_v5 }
  0x46   :  { %3511 = vmatpush3.bf16.msra.mxu1 %v3510_v20  ;;  %3487 = vmatpush3.bf16.msra.mxu0 %v3486_v24 }
  0x47   :  { %3512 = vmatprep.subr.bf16.mxu1 %v3925_v19  ;;  %3488 = vmatprep.subr.bf16.mxu0 %v3925_v19 }
  0x48   :  { %329 = vmatmul.mubr.f32.gmra.mrb[10].mxu0 %v2040_v6  ;;  %427 = vmatmul.mubr.f32.gmra.mrb[10].mxu1 %v2048_v7 }
  0x49   :  { %333 = vmatprep.mubr.f32.mxu0 %v2043_v8  ;;  %431 = vmatprep.mubr.f32.mxu1 %v2051_v9 }
  0x4a   :  { %3514 = vmatpush3.bf16.msra.mxu1 %v3513_v27  ;;  %3490 = vmatpush3.bf16.msra.mxu0 %v3489_v28 }
  0x4b   :  { %3515 = vmatprep.subr.bf16.mxu1 %v3925_v19  ;;  %3491 = vmatprep.subr.bf16.mxu0 %v3925_v19 }
  0x4c   :  { %334 = vmatmul.mubr.f32.gmra.mrb[12].mxu0 %v2042_v10  ;;  %432 = vmatmul.mubr.f32.gmra.mrb[12].mxu1 %v2050_v11 }
  0x4d   :  { %338 = vmatprep.mubr.f32.mxu0 %v2045_v12  ;;  %436 = vmatprep.mubr.f32.mxu1 %v2053_v13 }
  0x4e   :  { %3517 = vmatpush3.bf16.msra.mxu1 %v3516_v33  ;;  %3493 = vmatpush3.bf16.msra.mxu0 %v3492_v34 }
  0x4f   :  { %3518 = vmatprep.subr.bf16.mxu1 %v3925_v19  ;;  %3494 = vmatprep.subr.bf16.mxu0 %v3925_v19 }
  0x50   :  { %339 = vmatmul.mubr.f32.gmra.mrb[14].mxu0 %v2044_v14  ;;  %437 = vmatmul.mubr.f32.gmra.mrb[14].mxu1 %v2052_v15 }
  0x51   :  { %2829 = vmatprep.mubr.msk.f32.mxu1 %vm3926_vm0, %v3927_v1  ;;  %2794 = vmatprep.mubr.msk.f32.mxu0 %vm3926_vm0, %v3927_v1 }
  0x52   :  { %3520 = vmatpush3.bf16.msra.mxu1 %v3519_v39  ;;  %3496 = vmatpush3.bf16.msra.mxu0 %v3495_v40  ;;  %v4378_v40 = vld [vmem:[%s5311_s2] ss:$0 sm:$0xff] }
  0x53   :  { %3521 = vmatprep.subr.bf16.mxu1 %v3925_v19  ;;  %3497 = vmatprep.subr.bf16.mxu0 %v3925_v19 }
  0x56   :  { %3523 = vmatpush3.bf16.msra.mxu1 %v3522_v45  ;;  %3499 = vmatpush3.bf16.msra.mxu0 %v3498_v46  ;;  %v2087_v46 = vld [vmem:[%s5312_s3 + $0x180] sm:$0xff] }
  0x57   :  { %3524 = vmatprep.subr.bf16.mxu1 %v3925_v19  ;;  %3500 = vmatprep.subr.bf16.mxu0 %v3925_v19  ;;  %v3558_v56 = vpack.c.bf16 %v2088_v47, %v2087_v46  ;;  %v2083_v47 = vld [vmem:[%s5312_s3 + $0x160] sm:$0xff] }
  0x5a   :  { %3526 = vmatpush3.bf16.msra.mxu1 %v3525_v49  ;;  %3502 = vmatpush3.bf16.msra.mxu0 %v3501_v52  ;;  %v2071_v52 = vld [vmem:[%s5312_s3 + $0x100] sm:$0xff] }
  0x5b   :  { %3527 = vmatprep.subr.bf16.mxu1 %v3925_v19  ;;  %3503 = vmatprep.subr.bf16.mxu0 %v3925_v19  ;;  %v3534_v63 = vpack.c.bf16 %v2072_v53, %v2071_v52  ;;  %v2102_v52 = vld [vmem:[%s5312_s3 + $0x1f8] sm:$0xff] }
  0x5e   :  { %3529 = vmatpush3.bf16.msra.mxu1 %v3528_v55  ;;  %3505 = vmatpush3.bf16.msra.mxu0 %v3504_v58 }
  0x5f   :  { %3530 = vmatprep.subr.bf16.mxu1 %v3925_v19  ;;  %3506 = vmatprep.subr.bf16.mxu0 %v3925_v19 }
  0x62   :  { %3532 = vmatpush3.bf16.msra.mxu1 %v3531_v61  ;;  %3508 = vmatpush3.bf16.msra.mxu0 %v3507_v0  ;;  %v2089_v61 = vld [vmem:[%s5312_s3 + $0x190] sm:$0xff] }
  0x63   :  { %3557 = vmatprep.subr.bf16.mxu1 %v3925_v19  ;;  %3533 = vmatprep.subr.bf16.mxu0 %v3925_v19 }
  0xf7   :  { %v2329_v2 = vpop.f32.mrb[0].mxu0  ;;  %v2373_v3 = vpop.f32.mrb[0].mxu1 }
  0xf8   :  { %v2330_v4 = vpop.f32.mrb[1].mxu0  ;;  %v2374_v5 = vpop.f32.mrb[1].mxu1 }
  0xf9   :  { %v2331_v6 = vadd.f32 %v2330_v4, %v2329_v2  ;;  %v2375_v7 = vadd.f32 %v2374_v5, %v2373_v3  ;;  %v2073_v5 = vld [vmem:[%s5312_s3 + $0x110] sm:$0xff] }
  0xfb   :  { %v246_v8 = vmax.f32 %v2331_v6, %v2375_v7  ;;  %v2332_v9 = vpop.f32.mrb[2].mxu0  ;;  %v2376_v10 = vpop.f32.mrb[2].mxu1  ;;  %v2074_v6 = vld [vmem:[%s5312_s3 + $0x118] sm:$0xff] }
  0xfc   :  { %v2333_v11 = vpop.f32.mrb[3].mxu0  ;;  %v2377_v12 = vpop.f32.mrb[3].mxu1 }
  0xfd   :  { %v2334_v13 = vadd.f32 %v2333_v11, %v2332_v9  ;;  %v2378_v14 = vadd.f32 %v2377_v12, %v2376_v10  ;;  %v3561_v9 = vpack.c.bf16 %v2090_v62, %v2089_v61  ;;  %v2103_v62 = vld [vmem:[%s5312_s3 + $0x200] sm:$0xff] }
  0xff   :  { %v247_v15 = vmax.f32 %v2334_v13, %v2378_v14  ;;  %v2335_v16 = vpop.f32.mrb[4].mxu0  ;;  %v2379_v17 = vpop.f32.mrb[4].mxu1  ;;  %v2091_v13 = vld [vmem:[%s5312_s3 + $0x1a0] sm:$0xff]  ;;  %v2092_v14 = vld [vmem:[%s5312_s3 + $0x1a8] sm:$0xff] }
 0x100   :  { %v2336_v18 = vpop.f32.mrb[5].mxu0  ;;  %v2380_v20 = vpop.f32.mrb[5].mxu1 }
 0x101   :  { %v2337_v21 = vadd.f32 %v2336_v18, %v2335_v16  ;;  %v2381_v22 = vadd.f32 %v2380_v20, %v2379_v17  ;;  %v2075_v18 = vld [vmem:[%s5312_s3 + $0x120] sm:$0xff]  ;;  %v2076_v20 = vld [vmem:[%s5312_s3 + $0x128] sm:$0xff] }
 0x103   :  { %v248_v23 = vmax.f32 %v2337_v21, %v2381_v22  ;;  %v2338_v24 = vpop.f32.mrb[6].mxu0  ;;  %v2382_v25 = vpop.f32.mrb[6].mxu1  ;;  %v3564_v21 = vpack.c.bf16 %v2092_v14, %v2091_v13  ;;  %v2108_v13 = vld [vmem:[%s5312_s3 + $0x228] sm:$0xff] }
 0x104   :  { %v2339_v26 = vpop.f32.mrb[7].mxu0  ;;  %v2383_v27 = vpop.f32.mrb[7].mxu1 }
 0x105   :  { %v2340_v28 = vadd.f32 %v2339_v26, %v2338_v24  ;;  %v2384_v29 = vadd.f32 %v2383_v27, %v2382_v25  ;;  %v2094_v24 = vld [vmem:[%s5312_s3 + $0x1b8] sm:$0xff]  ;;  %v3540_v25 = vpack.c.bf16 %v2076_v20, %v2075_v18  ;;  %v2077_v27 = vld [vmem:[%s5312_s3 + $0x130] sm:$0xff] }
 0x106   :  { %v2109_v20 = vld [vmem:[%s5312_s3 + $0x230] sm:$0xff] }
 0x107   :  { %v249_v30 = vmax.f32 %v2340_v28, %v2384_v29  ;;  %v2078_v28 = vld [vmem:[%s5312_s3 + $0x138] sm:$0xff] }
 0x117   :  { %v2417_v31 = vpop.f32.mrb[8].mxu0  ;;  %v2461_v32 = vpop.f32.mrb[8].mxu1 }
 0x118   :  { %v2418_v33 = vpop.f32.mrb[9].mxu0  ;;  %v2462_v34 = vpop.f32.mrb[9].mxu1 }
 0x119   :  { %v2419_v35 = vadd.f32 %v2418_v33, %v2417_v31  ;;  %v2463_v36 = vadd.f32 %v2462_v34, %v2461_v32  ;;  %v2096_v31 = vld [vmem:[%s5312_s3 + $0x1c8] sm:$0xff]  ;;  %v3543_v32 = vpack.c.bf16 %v2078_v28, %v2077_v27  ;;  %v2079_v33 = vld [vmem:[%s5312_s3 + $0x140] sm:$0xff] }
 0x11a   :  { %v2080_v34 = vld [vmem:[%s5312_s3 + $0x148] sm:$0xff]  ;;  %v2111_v27 = vld [vmem:[%s5312_s3 + $0x240] sm:$0xff] }
 0x11b   :  { %v344_v37 = vmax.f32 %v246_v8, %v2419_v35  ;;  %v2420_v38 = vpop.f32.mrb[10].mxu0  ;;  %v2464_v39 = vpop.f32.mrb[10].mxu1  ;;  %v2112_v28 = vld [vmem:[%s5312_s3 + $0x248] sm:$0xff] }
 0x11c   :  { %v2421_v41 = vpop.f32.mrb[11].mxu0  ;;  %v2465_v42 = vpop.f32.mrb[11].mxu1 }
 0x11d   :  { %v442_v43 = vmax.f32 %v344_v37, %v2463_v36  ;;  %v2422_v44 = vadd.f32 %v2421_v41, %v2420_v38  ;;  %v4380_v45 = vadd.f32 %v2465_v42, %v2464_v39  ;;  %v2097_v36 = vld [vmem:[%s5312_s3 + $0x1d0] sm:$0xff]  ;;  %v2098_v37 = vld [vmem:[%s5312_s3 + $0x1d8] sm:$0xff]  ;;  %v3546_v38 = vpack.c.bf16 %v2080_v34, %v2079_v33 }
 0x11e   :  { %v2081_v39 = vld [vmem:[%s5312_s3 + $0x150] sm:$0xff]  ;;  %v2082_v41 = vld [vmem:[%s5312_s3 + $0x158] sm:$0xff]  ;;  %v3573_v42 = vpack.c.bf16 %v2098_v37, %v2097_v36  ;;  %v2131_v36 = vld [vmem:[%s5312_s3 + $0x2e0] sm:$0xff] }
 0x11f   :  { %v453_v48 = vadd.f32 %v4378_v40, %v442_v43  ;;  %v4389_v49 = vmax.f32 %v247_v15, %v2422_v44  ;;  %v2423_v50 = vpop.f32.mrb[12].mxu0  ;;  %v2467_v51 = vpop.f32.mrb[12].mxu1  ;;  %v3537_v15 = vpack.c.bf16 %v2074_v6, %v2073_v5  ;;  %v2099_v43 = vld [vmem:[%s5312_s3 + $0x1e0] sm:$0xff]  ;;  %v2100_v44 = vld [vmem:[%s5312_s3 + $0x1e8] sm:$0xff]  ;;  %v3549_v46 = vpack.c.bf16 %v2082_v41, %v2081_v39  ;;  %v2113_v33 = vld [vmem:[%s5312_s3 + $0x250] sm:$0xff] }
 0x120   :  { %v2424_v54 = vpop.f32.mrb[13].mxu0  ;;  %v2468_v55 = vpop.f32.mrb[13].mxu1  ;;  %v2114_v34 = vld [vmem:[%s5312_s3 + $0x258] sm:$0xff]  ;;  %v2132_v37 = vld [vmem:[%s5312_s3 + $0x2e8] sm:$0xff]  ;;  %v2115_v39 = vld [vmem:[%s5312_s3 + $0x260] sm:$0xff] }
 0x121   :  { %v4397_v57 = vmax.f32 %v453_v48, 0.0  ;;  %v443_v58 = vmax.f32 %v4389_v49, %v4380_v45  ;;  %v2425_v59 = vadd.f32 %v2424_v54, %v2423_v50  ;;  %v2469_v60 = vadd.f32 %v2468_v55, %v2467_v51  ;;  %v2084_v48 = vld [vmem:[%s5312_s3 + $0x168] sm:$0xff]  ;;  %v2101_v51 = vld [vmem:[%s5312_s3 + $0x1f0] sm:$0xff]  ;;  %v2086_v55 = vld [vmem:[%s5312_s3 + $0x178] sm:$0xff] }
 0x122   :  { %v3576_v50 = vpack.c.bf16 %v2100_v44, %v2099_v43  ;;  %v3552_v53 = vpack.c.bf16 %v2084_v48, %v2083_v47  ;;  %v2085_v54 = vld [vmem:[%s5312_s3 + $0x170] sm:$0xff]  ;;  %v2116_v41 = vld [vmem:[%s5312_s3 + $0x268] sm:$0xff]  ;;  %v2151_v48 = vld [vmem:[%s5312_s3 + $0x380] sm:$0xff] }
 0x123   :  { %v346_v0 = vmax.f32 %v248_v23, %v2425_v59  ;;  %v2426_v2 = vpop.f32.mrb[14].mxu0  ;;  %2830 = vmatmul.mubr.f32.vlgmr.msra.gmra.mrb[16].mxu1 %v4397_v57  ;;  %v2470_v3 = vpop.f32.mrb[14].mxu1  ;;  %v495_v4 = vrot.slane %v4397_v57, 2  ;;  %v2093_v23 = vld [vmem:[%s5312_s3 + $0x1b0] sm:$0xff]  ;;  %v2119_v59 = vld [vmem:[%s5312_s3 + $0x280] sm:$0xff]  ;;  %v3555_v61 = vpack.c.bf16 %v2086_v55, %v2085_v54  ;;  %v654_v6 = vrot.slane %v4397_v57, 4 }
 0x124   :  { %3559 = vmatpush3.bf16.msra.mxu1 %v3558_v56  ;;  %v2427_v7 = vpop.f32.mrb[15].mxu0  ;;  %v2471_v8 = vpop.f32.mrb[15].mxu1  ;;  %2899 = vmatprep.mubr.msk.f32.mxu1 %vm3926_vm0, %v3927_v1  ;;  %v3567_v29 = vpack.c.bf16 %v2094_v24, %v2093_v23  ;;  %v3579_v56 = vpack.c.bf16 %v2102_v52, %v2101_v51  ;;  %v2127_v23 = vld [vmem:[%s5312_s3 + $0x2c0] sm:$0xff]  ;;  %v2128_v24 = vld [vmem:[%s5312_s3 + $0x2c8] sm:$0xff]  ;;  %v454_v43 = vadd.f32 %v4378_v40, %v443_v58  ;;  %v2133_v44 = vld [vmem:[%s5312_s3 + $0x2f0] sm:$0xff] }
 0x125   :  { %v444_v10 = vmax.f32 %v346_v0, %v2469_v60  ;;  %v2428_v11 = vadd.f32 %v2427_v7, %v2426_v2  ;;  %2795 = vmatmul.mubr.f32.vlgmr.msra.gmra.mrb[16].mxu0 %v495_v4  ;;  %v2472_v12 = vadd.f32 %v2471_v8, %v2470_v3  ;;  %3560 = vmatprep.subr.bf16.mxu1 %v3925_v19  ;;  %v2120_v60 = vld [vmem:[%s5312_s3 + $0x288] sm:$0xff]  ;;  %v744_v2 = vrot.slane %v4397_v57, 6  ;;  %v2121_v3 = vld [vmem:[%s5312_s3 + $0x290] sm:$0xff]  ;;  %v2122_v4 = vld [vmem:[%s5312_s3 + $0x298] sm:$0xff] }
 0x126   :  { %3535 = vmatpush3.bf16.msra.mxu0 %v3534_v63  ;;  %2864 = vmatprep.mubr.msk.f32.mxu0 %vm3926_vm0, %v3927_v1  ;;  %v2104_v63 = vld [vmem:[%s5312_s3 + $0x208] sm:$0xff]  ;;  %v3606_v0 = vpack.c.bf16 %v2120_v60, %v2119_v59  ;;  %v2105_v7 = vld [vmem:[%s5312_s3 + $0x210] sm:$0xff]  ;;  %v2106_v8 = vld [vmem:[%s5312_s3 + $0x218] sm:$0xff]  ;;  %v3600_v47 = vpack.c.bf16 %v2116_v41, %v2115_v39  ;;  %v4631_v58 = vmax.f32 %v454_v43, 0.0 }
 0x127   :  { %v4427_v16 = vadd.f32 %v4378_v40, %v444_v10  ;;  %v347_v17 = vmax.f32 %v249_v30, %v2428_v11  ;;  %3536 = vmatprep.subr.bf16.mxu0 %v3925_v19  ;;  %v2095_v30 = vld [vmem:[%s5312_s3 + $0x1c0] sm:$0xff]  ;;  %v3582_v5 = vpack.c.bf16 %v2104_v63, %v2103_v62  ;;  %v2124_v10 = vld [vmem:[%s5312_s3 + $0x2a8] sm:$0xff]  ;;  %v3585_v11 = vpack.c.bf16 %v2106_v8, %v2105_v7  ;;  %v2117_v45 = vld [vmem:[%s5312_s3 + $0x270] sm:$0xff] }
 0x128   :  { %3562 = vmatpush3.bf16.msra.mxu1 %v3561_v9  ;;  %v3570_v35 = vpack.c.bf16 %v2096_v31, %v2095_v30  ;;  %v3609_v9 = vpack.c.bf16 %v2122_v4, %v2121_v3  ;;  %v2123_v57 = vld [vmem:[%s5312_s3 + $0x2a0] sm:$0xff]  ;;  %v2129_v30 = vld [vmem:[%s5312_s3 + $0x2d0] sm:$0xff]  ;;  %v2130_v31 = vld [vmem:[%s5312_s3 + $0x2d8] sm:$0xff]  ;;  %v923_v55 = vrot.slane %v4631_v58, 2 }
 0x129   :  { %v445_v22 = vmax.f32 %v347_v17, %v2472_v12  ;;  %3563 = vmatprep.subr.bf16.mxu1 %v3925_v19  ;;  %v2107_v12 = vld [vmem:[%s5312_s3 + $0x220] sm:$0xff]  ;;  %v3612_v14 = vpack.c.bf16 %v2124_v10, %v2123_v57  ;;  %v2126_v17 = vld [vmem:[%s5312_s3 + $0x2b8] sm:$0xff]  ;;  %v2157_v7 = vld [vmem:[%s5312_s3 + $0x3b0] sm:$0xff] }
 0x12a   :  { %3538 = vmatpush3.bf16.msra.mxu0 %v3537_v15  ;;  %v2125_v15 = vld [vmem:[%s5312_s3 + $0x2b0] sm:$0xff]  ;;  %v3588_v18 = vpack.c.bf16 %v2108_v13, %v2107_v12  ;;  %v2135_v52 = vld [vmem:[%s5312_s3 + $0x300] sm:$0xff]  ;;  %v2154_v59 = vld [vmem:[%s5312_s3 + $0x398] sm:$0xff] }
 0x12b   :  { %v4444_v26 = vadd.f32 %v4378_v40, %v445_v22  ;;  %3539 = vmatprep.subr.bf16.mxu0 %v3925_v19  ;;  %v3615_v22 = vpack.c.bf16 %v2126_v17, %v2125_v15  ;;  %v2118_v40 = vld [vmem:[%s5312_s3 + $0x278] sm:$0xff]  ;;  %v2139_v4 = vld [vmem:[%s5312_s3 + $0x320] sm:$0xff]  ;;  %v2141_v57 = vld [vmem:[%s5312_s3 + $0x330] sm:$0xff] }
 0x12c   :  { %3565 = vmatpush3.bf16.msra.mxu1 %v3564_v21  ;;  %v2110_v21 = vld [vmem:[%s5312_s3 + $0x238] sm:$0xff]  ;;  %v3603_v51 = vpack.c.bf16 %v2118_v40, %v2117_v45  ;;  %v2159_v12 = vld [vmem:[%s5312_s3 + $0x3c0] sm:$0xff]  ;;  %v2160_v13 = vld [vmem:[%s5312_s3 + $0x3c8] sm:$0xff] }
 0x12d   :  { %3566 = vmatprep.subr.bf16.mxu1 %v3925_v19  ;;  %v2138_v62 = vld [vmem:[%s5312_s3 + $0x318] sm:$0xff]  ;;  %v2143_v15 = vld [vmem:[%s5312_s3 + $0x340] sm:$0xff]  ;;  %v2144_v17 = vld [vmem:[%s5312_s3 + $0x348] sm:$0xff] }
 0x12e   :  { %3541 = vmatpush3.bf16.msra.mxu0 %v3540_v25  ;;  %v3591_v25 = vpack.c.bf16 %v2110_v21, %v2109_v20  ;;  %v2158_v8 = vld [vmem:[%s5312_s3 + $0x3b8] sm:$0xff]  ;;  %v2161_v20 = vld [vmem:[%s5312_s3 + $0x3d0] sm:$0xff]  ;;  %v2183_v39 = vld [vmem:[%s5312_s3 + $0x480] sm:$0xff] }
 0x12f   :  { %3542 = vmatprep.subr.bf16.mxu0 %v3925_v19  ;;  %v2142_v10 = vld [vmem:[%s5312_s3 + $0x338] sm:$0xff]  ;;  %v2184_v41 = vld [vmem:[%s5312_s3 + $0x488] sm:$0xff]  ;;  %v2167_v43 = vld [vmem:[%s5312_s3 + $0x400] sm:$0xff] }
 0x130   :  { %3568 = vmatpush3.bf16.msra.mxu1 %v3567_v29  ;;  %v3618_v29 = vpack.c.bf16 %v2128_v24, %v2127_v23  ;;  %v2162_v21 = vld [vmem:[%s5312_s3 + $0x3d8] sm:$0xff]  ;;  %v2145_v23 = vld [vmem:[%s5312_s3 + $0x350] sm:$0xff] }
 0x131   :  { %3569 = vmatprep.subr.bf16.mxu1 %v3925_v19  ;;  %v2146_v24 = vld [vmem:[%s5312_s3 + $0x358] sm:$0xff]  ;;  %v2185_v45 = vld [vmem:[%s5312_s3 + $0x490] sm:$0xff] }
 0x132   :  { %3544 = vmatpush3.bf16.msra.mxu0 %v3543_v32  ;;  %v3594_v32 = vpack.c.bf16 %v2112_v28, %v2111_v27  ;;  %v2163_v27 = vld [vmem:[%s5312_s3 + $0x3e0] sm:$0xff]  ;;  %v2164_v28 = vld [vmem:[%s5312_s3 + $0x3e8] sm:$0xff]  ;;  %v2186_v40 = vld [vmem:[%s5312_s3 + $0x498] sm:$0xff] }
 0x133   :  { %3545 = vmatprep.subr.bf16.mxu0 %v3925_v19 }
 0x134   :  { %3571 = vmatpush3.bf16.msra.mxu1 %v3570_v35  ;;  %v3621_v35 = vpack.c.bf16 %v2130_v31, %v2129_v30  ;;  %v2147_v30 = vld [vmem:[%s5312_s3 + $0x360] sm:$0xff]  ;;  %v2148_v31 = vld [vmem:[%s5312_s3 + $0x368] sm:$0xff] }
 0x135   :  { %3572 = vmatprep.subr.bf16.mxu1 %v3925_v19 }
 0x136   :  { %3547 = vmatpush3.bf16.msra.mxu0 %v3546_v38  ;;  %v3597_v38 = vpack.c.bf16 %v2114_v34, %v2113_v33  ;;  %v2165_v33 = vld [vmem:[%s5312_s3 + $0x3f0] sm:$0xff]  ;;  %v2166_v34 = vld [vmem:[%s5312_s3 + $0x3f8] sm:$0xff] }
 0x137   :  { %3548 = vmatprep.subr.bf16.mxu0 %v3925_v19 }
 0x138   :  { %3574 = vmatpush3.bf16.msra.mxu1 %v3573_v42  ;;  %v3624_v42 = vpack.c.bf16 %v2132_v37, %v2131_v36  ;;  %v2149_v36 = vld [vmem:[%s5312_s3 + $0x370] sm:$0xff]  ;;  %v2150_v37 = vld [vmem:[%s5312_s3 + $0x378] sm:$0xff] }
 0x139   :  { %3575 = vmatprep.subr.bf16.mxu1 %v3925_v19 }
 0x13a   :  { %3550 = vmatpush3.bf16.msra.mxu0 %v3549_v46  ;;  %v2134_v46 = vld [vmem:[%s5312_s3 + $0x2f8] sm:$0xff] }
 0x13b   :  { %3551 = vmatprep.subr.bf16.mxu0 %v3925_v19  ;;  %v3627_v49 = vpack.c.bf16 %v2134_v46, %v2133_v44  ;;  %v2168_v44 = vld [vmem:[%s5312_s3 + $0x408] sm:$0xff]  ;;  %v3702_v46 = vpack.c.bf16 %v2184_v41, %v2183_v39  ;;  %v2201_v39 = vld [vmem:[%s5312_s3 + $0x510] sm:$0xff]  ;;  %v2202_v41 = vld [vmem:[%s5312_s3 + $0x518] sm:$0xff] }
 0x13c   :  { %3577 = vmatpush3.bf16.msra.mxu1 %v3576_v50  ;;  %v2152_v50 = vld [vmem:[%s5312_s3 + $0x388] sm:$0xff] }
 0x13d   :  { %3578 = vmatprep.subr.bf16.mxu1 %v3925_v19  ;;  %v3654_v54 = vpack.c.bf16 %v2152_v50, %v2151_v48  ;;  %v1013_v48 = vrot.slane %v4631_v58, 4  ;;  %v2169_v50 = vld [vmem:[%s5312_s3 + $0x410] sm:$0xff] }
 0x13e   :  { %3553 = vmatpush3.bf16.msra.mxu0 %v3552_v53  ;;  %v2136_v53 = vld [vmem:[%s5312_s3 + $0x308] sm:$0xff] }
 0x13f   :  { %3554 = vmatprep.subr.bf16.mxu0 %v3925_v19  ;;  %v3630_v60 = vpack.c.bf16 %v2136_v53, %v2135_v52  ;;  %v3705_v52 = vpack.c.bf16 %v2186_v40, %v2185_v45  ;;  %v2188_v53 = vld [vmem:[%s5312_s3 + $0x4a8] sm:$0xff] }
 0x140   :  { %3580 = vmatpush3.bf16.msra.mxu1 %v3579_v56  ;;  %v2153_v56 = vld [vmem:[%s5312_s3 + $0x390] sm:$0xff]  ;;  %v2204_v45 = vld [vmem:[%s5312_s3 + $0x528] sm:$0xff] }
 0x141   :  { %3605 = vmatprep.subr.bf16.mxu1 %v3925_v19  ;;  %v3657_v63 = vpack.c.bf16 %v2154_v59, %v2153_v56  ;;  %v2172_v56 = vld [vmem:[%s5312_s3 + $0x428] sm:$0xff] }
 0x142   :  { %3556 = vmatpush3.bf16.msra.mxu0 %v3555_v61  ;;  %v2137_v61 = vld [vmem:[%s5312_s3 + $0x310] sm:$0xff] }
 0x143   :  { %2900 = vmatmul.mubr.f32.vlgmr.msra.gmra.mrb[18].mxu1 %v744_v2  ;;  %3581 = vmatprep.subr.bf16.mxu0 %v3925_v19  ;;  %v2156_v2 = vld [vmem:[%s5312_s3 + $0x3a8] sm:$0xff]  ;;  %v3633_v3 = vpack.c.bf16 %v2138_v62, %v2137_v61  ;;  %v2190_v61 = vld [vmem:[%s5312_s3 + $0x4b8] sm:$0xff] }
 0x144   :  { %3607 = vmatpush3.bf16.msra.mxu1 %v3606_v0  ;;  %2969 = vmatprep.mubr.msk.f32.mxu1 %vm3926_vm0, %v3927_v1  ;;  %v2155_v0 = vld [vmem:[%s5312_s3 + $0x3a0] sm:$0xff] }
 0x145   :  { %2865 = vmatmul.mubr.f32.vlgmr.msra.gmra.mrb[18].mxu0 %v654_v6  ;;  %3608 = vmatprep.subr.bf16.mxu1 %v3925_v19  ;;  %v3660_v6 = vpack.c.bf16 %v2156_v2, %v2155_v0  ;;  %v2174_v0 = vld [vmem:[%s5312_s3 + $0x438] sm:$0xff] }
 0x146   :  { %3583 = vmatpush3.bf16.msra.mxu0 %v3582_v5  ;;  %2934 = vmatprep.mubr.msk.f32.mxu0 %vm3926_vm0, %v3927_v1  ;;  %v2140_v5 = vld [vmem:[%s5312_s3 + $0x328] sm:$0xff] }
 0x147   :  { %3584 = vmatprep.subr.bf16.mxu0 %v3925_v19 }
 0x148   :  { %3610 = vmatpush3.bf16.msra.mxu1 %v3609_v9  ;;  %v3636_v9 = vpack.c.bf16 %v2140_v5, %v2139_v4  ;;  %v2192_v4 = vld [vmem:[%s5312_s3 + $0x4c8] sm:$0xff] }
 0x149   :  { %3611 = vmatprep.subr.bf16.mxu1 %v3925_v19 }
 0x14a   :  { %3586 = vmatpush3.bf16.msra.mxu0 %v3585_v11  ;;  %v3663_v11 = vpack.c.bf16 %v2158_v8, %v2157_v7  ;;  %v2176_v7 = vld [vmem:[%s5312_s3 + $0x448] sm:$0xff] }
 0x14b   :  { %3587 = vmatprep.subr.bf16.mxu0 %v3925_v19 }
 0x14c   :  { %3613 = vmatpush3.bf16.msra.mxu1 %v3612_v14  ;;  %v3639_v14 = vpack.c.bf16 %v2142_v10, %v2141_v57  ;;  %v2194_v57 = vld [vmem:[%s5312_s3 + $0x4d8] sm:$0xff] }
 0x14d   :  { %3614 = vmatprep.subr.bf16.mxu1 %v3925_v19 }
 0x14e   :  { %3589 = vmatpush3.bf16.msra.mxu0 %v3588_v18  ;;  %v3666_v18 = vpack.c.bf16 %v2160_v13, %v2159_v12  ;;  %v2178_v12 = vld [vmem:[%s5312_s3 + $0x458] sm:$0xff] }
 0x14f   :  { %3590 = vmatprep.subr.bf16.mxu0 %v3925_v19 }
 0x150   :  { %3616 = vmatpush3.bf16.msra.mxu1 %v3615_v22  ;;  %v3642_v22 = vpack.c.bf16 %v2144_v17, %v2143_v15  ;;  %v2196_v15 = vld [vmem:[%s5312_s3 + $0x4e8] sm:$0xff] }
 0x151   :  { %3617 = vmatprep.subr.bf16.mxu1 %v3925_v19 }
 0x152   :  { %3592 = vmatpush3.bf16.msra.mxu0 %v3591_v25  ;;  %v3669_v25 = vpack.c.bf16 %v2162_v21, %v2161_v20  ;;  %v2180_v20 = vld [vmem:[%s5312_s3 + $0x468] sm:$0xff] }
 0x153   :  { %3593 = vmatprep.subr.bf16.mxu0 %v3925_v19 }
 0x154   :  { %3619 = vmatpush3.bf16.msra.mxu1 %v3618_v29  ;;  %v3645_v29 = vpack.c.bf16 %v2146_v24, %v2145_v23  ;;  %v2198_v23 = vld [vmem:[%s5312_s3 + $0x4f8] sm:$0xff] }
 0x155   :  { %3620 = vmatprep.subr.bf16.mxu1 %v3925_v19 }
 0x156   :  { %3595 = vmatpush3.bf16.msra.mxu0 %v3594_v32  ;;  %v3672_v32 = vpack.c.bf16 %v2164_v28, %v2163_v27  ;;  %v2182_v27 = vld [vmem:[%s5312_s3 + $0x478] sm:$0xff] }
 0x157   :  { %3596 = vmatprep.subr.bf16.mxu0 %v3925_v19 }
 0x158   :  { %3622 = vmatpush3.bf16.msra.mxu1 %v3621_v35  ;;  %v3648_v35 = vpack.c.bf16 %v2148_v31, %v2147_v30  ;;  %v2215_v30 = vld [vmem:[%s5312_s3 + $0x580] sm:$0xff]  ;;  %v2216_v31 = vld [vmem:[%s5312_s3 + $0x588] sm:$0xff] }
 0x159   :  { %3623 = vmatprep.subr.bf16.mxu1 %v3925_v19 }
 0x15a   :  { %3598 = vmatpush3.bf16.msra.mxu0 %v3597_v38  ;;  %v3675_v38 = vpack.c.bf16 %v2166_v34, %v2165_v33  ;;  %v2199_v33 = vld [vmem:[%s5312_s3 + $0x500] sm:$0xff]  ;;  %v3750_v34 = vpack.c.bf16 %v2216_v31, %v2215_v30  ;;  %v2233_v30 = vld [vmem:[%s5312_s3 + $0x610] sm:$0xff]  ;;  %v2234_v31 = vld [vmem:[%s5312_s3 + $0x618] sm:$0xff] }
 0x15b   :  { %3599 = vmatprep.subr.bf16.mxu0 %v3925_v19 }
 0x15c   :  { %3625 = vmatpush3.bf16.msra.mxu1 %v3624_v42  ;;  %v3651_v42 = vpack.c.bf16 %v2150_v37, %v2149_v36  ;;  %v2217_v36 = vld [vmem:[%s5312_s3 + $0x590] sm:$0xff]  ;;  %v2218_v37 = vld [vmem:[%s5312_s3 + $0x598] sm:$0xff] }
 0x15d   :  { %3626 = vmatprep.subr.bf16.mxu1 %v3925_v19 }
 0x15e   :  { %3601 = vmatpush3.bf16.msra.mxu0 %v3600_v47  ;;  %v1103_v47 = vrot.slane %v4631_v58, 6 }
 0x15f   :  { %3602 = vmatprep.subr.bf16.mxu0 %v3925_v19 }
 0x160   :  { %3628 = vmatpush3.bf16.msra.mxu1 %v3627_v49  ;;  %v3678_v49 = vpack.c.bf16 %v2168_v44, %v2167_v43  ;;  %v2219_v43 = vld [vmem:[%s5312_s3 + $0x5a0] sm:$0xff]  ;;  %v2220_v44 = vld [vmem:[%s5312_s3 + $0x5a8] sm:$0xff] }
 0x161   :  { %3653 = vmatprep.subr.bf16.mxu1 %v3925_v19  ;;  %v3756_v40 = vpack.c.bf16 %v2220_v44, %v2219_v43  ;;  %v2255_v44 = vld [vmem:[%s5312_s3 + $0x6c0] sm:$0xff] }
 0x162   :  { %3604 = vmatpush3.bf16.msra.mxu0 %v3603_v51  ;;  %v2170_v51 = vld [vmem:[%s5312_s3 + $0x418] sm:$0xff] }
 0x163   :  { %2970 = vmatmul.mubr.f32.vlgmr.msra.gmra.mrb[20].mxu1 %v923_v55  ;;  %3629 = vmatprep.subr.bf16.mxu0 %v3925_v19  ;;  %v2171_v55 = vld [vmem:[%s5312_s3 + $0x420] sm:$0xff] }
 0x164   :  { %3655 = vmatpush3.bf16.msra.mxu1 %v3654_v54  ;;  %3039 = vmatprep.mubr.msk.f32.mxu1 %vm3926_vm0, %v3927_v1  ;;  %v3681_v54 = vpack.c.bf16 %v2170_v51, %v2169_v50  ;;  %v3684_v62 = vpack.c.bf16 %v2172_v56, %v2171_v55  ;;  %v2205_v51 = vld [vmem:[%s5312_s3 + $0x530] sm:$0xff]  ;;  %v2207_v56 = vld [vmem:[%s5312_s3 + $0x540] sm:$0xff] }
 0x165   :  { %2935 = vmatmul.mubr.f32.vlgmr.msra.gmra.mrb[20].mxu0 %v4631_v58  ;;  %3656 = vmatprep.subr.bf16.mxu1 %v3925_v19  ;;  %v2187_v58 = vld [vmem:[%s5312_s3 + $0x4a0] sm:$0xff] }
 0x166   :  { %3631 = vmatpush3.bf16.msra.mxu0 %v3630_v60  ;;  %3004 = vmatprep.mubr.msk.f32.mxu0 %vm3926_vm0, %v3927_v1  ;;  %v3708_v59 = vpack.c.bf16 %v2188_v53, %v2187_v58  ;;  %v2189_v60 = vld [vmem:[%s5312_s3 + $0x4b0] sm:$0xff]  ;;  %v2223_v53 = vld [vmem:[%s5312_s3 + $0x5c0] sm:$0xff] }
 0x167   :  { %3632 = vmatprep.subr.bf16.mxu0 %v3925_v19  ;;  %v3711_v2 = vpack.c.bf16 %v2190_v61, %v2189_v60  ;;  %v2225_v61 = vld [vmem:[%s5312_s3 + $0x5d0] sm:$0xff] }
 0x168   :  { %3658 = vmatpush3.bf16.msra.mxu1 %v3657_v63  ;;  %v2173_v63 = vld [vmem:[%s5312_s3 + $0x430] sm:$0xff] }
 0x169   :  { %3659 = vmatprep.subr.bf16.mxu1 %v3925_v19  ;;  %v3687_v5 = vpack.c.bf16 %v2174_v0, %v2173_v63  ;;  %v2209_v0 = vld [vmem:[%s5312_s3 + $0x550] sm:$0xff] }
 0x16a   :  { %3634 = vmatpush3.bf16.msra.mxu0 %v3633_v3  ;;  %v2191_v3 = vld [vmem:[%s5312_s3 + $0x4c0] sm:$0xff] }
 0x16b   :  { %3635 = vmatprep.subr.bf16.mxu0 %v3925_v19  ;;  %v3714_v8 = vpack.c.bf16 %v2192_v4, %v2191_v3  ;;  %v2227_v4 = vld [vmem:[%s5312_s3 + $0x5e0] sm:$0xff] }
 0x16c   :  { %3661 = vmatpush3.bf16.msra.mxu1 %v3660_v6  ;;  %v2175_v6 = vld [vmem:[%s5312_s3 + $0x440] sm:$0xff] }
 0x16d   :  { %3662 = vmatprep.subr.bf16.mxu1 %v3925_v19  ;;  %v3690_v10 = vpack.c.bf16 %v2176_v7, %v2175_v6  ;;  %v2211_v7 = vld [vmem:[%s5312_s3 + $0x560] sm:$0xff] }
 0x16e   :  { %3637 = vmatpush3.bf16.msra.mxu0 %v3636_v9  ;;  %v2193_v9 = vld [vmem:[%s5312_s3 + $0x4d0] sm:$0xff] }
 0x16f   :  { %3638 = vmatprep.subr.bf16.mxu0 %v3925_v19  ;;  %v3717_v13 = vpack.c.bf16 %v2194_v57, %v2193_v9  ;;  %v2229_v57 = vld [vmem:[%s5312_s3 + $0x5f0] sm:$0xff] }
 0x170   :  { %3664 = vmatpush3.bf16.msra.mxu1 %v3663_v11  ;;  %v2177_v11 = vld [vmem:[%s5312_s3 + $0x450] sm:$0xff] }
 0x171   :  { %3665 = vmatprep.subr.bf16.mxu1 %v3925_v19  ;;  %v3693_v17 = vpack.c.bf16 %v2178_v12, %v2177_v11  ;;  %v2213_v12 = vld [vmem:[%s5312_s3 + $0x570] sm:$0xff] }
 0x172   :  { %3640 = vmatpush3.bf16.msra.mxu0 %v3639_v14  ;;  %v2195_v14 = vld [vmem:[%s5312_s3 + $0x4e0] sm:$0xff] }
 0x173   :  { %3641 = vmatprep.subr.bf16.mxu0 %v3925_v19  ;;  %v3720_v21 = vpack.c.bf16 %v2196_v15, %v2195_v14  ;;  %v2247_v15 = vld [vmem:[%s5312_s3 + $0x680] sm:$0xff] }
 0x174   :  { %3667 = vmatpush3.bf16.msra.mxu1 %v3666_v18  ;;  %v2179_v18 = vld [vmem:[%s5312_s3 + $0x460] sm:$0xff] }
 0x175   :  { %3668 = vmatprep.subr.bf16.mxu1 %v3925_v19  ;;  %v3696_v24 = vpack.c.bf16 %v2180_v20, %v2179_v18  ;;  %v2231_v20 = vld [vmem:[%s5312_s3 + $0x600] sm:$0xff] }
 0x176   :  { %3643 = vmatpush3.bf16.msra.mxu0 %v3642_v22  ;;  %v2197_v22 = vld [vmem:[%s5312_s3 + $0x4f0] sm:$0xff] }
 0x177   :  { %3644 = vmatprep.subr.bf16.mxu0 %v3925_v19  ;;  %v3723_v28 = vpack.c.bf16 %v2198_v23, %v2197_v22 }
 0x178   :  { %3670 = vmatpush3.bf16.msra.mxu1 %v3669_v25  ;;  %v2181_v25 = vld [vmem:[%s5312_s3 + $0x470] sm:$0xff] }
 0x179   :  { %3671 = vmatprep.subr.bf16.mxu1 %v3925_v19 }
 0x17a   :  { %3646 = vmatpush3.bf16.msra.mxu0 %v3645_v29  ;;  %v4870_v29 = vmax.f32 %v4427_v16, 0.0  ;;  %v2200_v16 = vld [vmem:[%s5312_s3 + $0x508] sm:$0xff] }
 0x17b   :  { %3647 = vmatprep.subr.bf16.mxu0 %v3925_v19 }
 0x17c   :  { %3673 = vmatpush3.bf16.msra.mxu1 %v3672_v32  ;;  %v3699_v32 = vpack.c.bf16 %v2182_v27, %v2181_v25  ;;  %v1462_v23 = vrot.slane %v4870_v29, 6  ;;  %v2250_v25 = vld [vmem:[%s5312_s3 + $0x698] sm:$0xff] }
 0x17d   :  { %3674 = vmatprep.subr.bf16.mxu1 %v3925_v19 }
 0x17e   :  { %3649 = vmatpush3.bf16.msra.mxu0 %v3648_v35  ;;  %v1282_v35 = vrot.slane %v4870_v29, 2 }
 0x17f   :  { %3650 = vmatprep.subr.bf16.mxu0 %v3925_v19 }
 0x180   :  { %3676 = vmatpush3.bf16.msra.mxu1 %v3675_v38  ;;  %v3726_v38 = vpack.c.bf16 %v2200_v16, %v2199_v33  ;;  %v2252_v33 = vld [vmem:[%s5312_s3 + $0x6a8] sm:$0xff]  ;;  %v3777_v16 = vpack.c.bf16 %v2234_v31, %v2233_v30  ;;  %v2269_v30 = vld [vmem:[%s5312_s3 + $0x730] sm:$0xff]  ;;  %v2270_v31 = vld [vmem:[%s5312_s3 + $0x738] sm:$0xff] }
 0x181   :  { %3701 = vmatprep.subr.bf16.mxu1 %v3925_v19 }
 0x182   :  { %3652 = vmatpush3.bf16.msra.mxu0 %v3651_v42  ;;  %v3753_v42 = vpack.c.bf16 %v2218_v37, %v2217_v36  ;;  %v2253_v37 = vld [vmem:[%s5312_s3 + $0x6b0] sm:$0xff] }
 0x183   :  { %3040 = vmatmul.mubr.f32.vlgmr.msra.gmra.mrb[22].mxu1 %v1103_v47  ;;  %3677 = vmatprep.subr.bf16.mxu0 %v3925_v19  ;;  %v2203_v47 = vld [vmem:[%s5312_s3 + $0x520] sm:$0xff] }
 0x184   :  { %3703 = vmatpush3.bf16.msra.mxu1 %v3702_v46  ;;  %3109 = vmatprep.mubr.msk.f32.mxu1 %vm3926_vm0, %v3927_v1  ;;  %v3729_v46 = vpack.c.bf16 %v2202_v41, %v2201_v39  ;;  %v3732_v50 = vpack.c.bf16 %v2204_v45, %v2203_v47  ;;  %v2237_v41 = vld [vmem:[%s5312_s3 + $0x630] sm:$0xff]  ;;  %v2239_v45 = vld [vmem:[%s5312_s3 + $0x640] sm:$0xff] }
 0x185   :  { %3005 = vmatmul.mubr.f32.vlgmr.msra.gmra.mrb[22].mxu0 %v1013_v48  ;;  %3704 = vmatprep.subr.bf16.mxu1 %v3925_v19  ;;  %v2222_v48 = vld [vmem:[%s5312_s3 + $0x5b8] sm:$0xff] }
 0x186   :  { %3679 = vmatpush3.bf16.msra.mxu0 %v3678_v49  ;;  %3074 = vmatprep.mubr.msk.f32.mxu0 %vm3926_vm0, %v3927_v1  ;;  %v2221_v49 = vld [vmem:[%s5312_s3 + $0x5b0] sm:$0xff] }
 0x187   :  { %3680 = vmatprep.subr.bf16.mxu0 %v3925_v19  ;;  %v3759_v58 = vpack.c.bf16 %v2222_v48, %v2221_v49  ;;  %v2257_v48 = vld [vmem:[%s5312_s3 + $0x6d0] sm:$0xff] }
 0x188   :  { %3706 = vmatpush3.bf16.msra.mxu1 %v3705_v52  ;;  %v2206_v52 = vld [vmem:[%s5312_s3 + $0x538] sm:$0xff] }
 0x189   :  { %3707 = vmatprep.subr.bf16.mxu1 %v3925_v19  ;;  %v3735_v55 = vpack.c.bf16 %v2206_v52, %v2205_v51  ;;  %v2241_v52 = vld [vmem:[%s5312_s3 + $0x650] sm:$0xff] }
 0x18a   :  { %3682 = vmatpush3.bf16.msra.mxu0 %v3681_v54  ;;  %v2224_v54 = vld [vmem:[%s5312_s3 + $0x5c8] sm:$0xff] }
 0x18b   :  { %3683 = vmatprep.subr.bf16.mxu0 %v3925_v19  ;;  %v3762_v60 = vpack.c.bf16 %v2224_v54, %v2223_v53  ;;  %v2259_v54 = vld [vmem:[%s5312_s3 + $0x6e0] sm:$0xff] }
 0x18c   :  { %3709 = vmatpush3.bf16.msra.mxu1 %v3708_v59  ;;  %v2208_v59 = vld [vmem:[%s5312_s3 + $0x548] sm:$0xff] }
 0x18d   :  { %3710 = vmatprep.subr.bf16.mxu1 %v3925_v19  ;;  %v3738_v63 = vpack.c.bf16 %v2208_v59, %v2207_v56  ;;  %v2243_v59 = vld [vmem:[%s5312_s3 + $0x660] sm:$0xff] }
 0x18e   :  { %3685 = vmatpush3.bf16.msra.mxu0 %v3684_v62  ;;  %v2226_v62 = vld [vmem:[%s5312_s3 + $0x5d8] sm:$0xff] }
 0x18f   :  { %3686 = vmatprep.subr.bf16.mxu0 %v3925_v19  ;;  %v3765_v3 = vpack.c.bf16 %v2226_v62, %v2225_v61  ;;  %v2261_v62 = vld [vmem:[%s5312_s3 + $0x6f0] sm:$0xff] }
 0x190   :  { %3712 = vmatpush3.bf16.msra.mxu1 %v3711_v2  ;;  %v2210_v2 = vld [vmem:[%s5312_s3 + $0x558] sm:$0xff] }
 0x191   :  { %3713 = vmatprep.subr.bf16.mxu1 %v3925_v19  ;;  %v3741_v6 = vpack.c.bf16 %v2210_v2, %v2209_v0  ;;  %v2245_v2 = vld [vmem:[%s5312_s3 + $0x670] sm:$0xff] }
 0x192   :  { %3688 = vmatpush3.bf16.msra.mxu0 %v3687_v5  ;;  %v2228_v5 = vld [vmem:[%s5312_s3 + $0x5e8] sm:$0xff] }
 0x193   :  { %3689 = vmatprep.subr.bf16.mxu0 %v3925_v19  ;;  %v3768_v9 = vpack.c.bf16 %v2228_v5, %v2227_v4  ;;  %v5109_v5 = vmax.f32 %v4444_v26, 0.0  ;;  %v2264_v26 = vld [vmem:[%s5312_s3 + $0x708] sm:$0xff] }
 0x194   :  { %3715 = vmatpush3.bf16.msra.mxu1 %v3714_v8  ;;  %v2212_v8 = vld [vmem:[%s5312_s3 + $0x568] sm:$0xff] }
 0x195   :  { %3716 = vmatprep.subr.bf16.mxu1 %v3925_v19  ;;  %v3744_v11 = vpack.c.bf16 %v2212_v8, %v2211_v7  ;;  %v2280_v7 = vld [vmem:[%s5312_s3 + $0x788] sm:$0xff] }
 0x196   :  { %3691 = vmatpush3.bf16.msra.mxu0 %v3690_v10  ;;  %v2230_v10 = vld [vmem:[%s5312_s3 + $0x5f8] sm:$0xff] }
 0x197   :  { %3692 = vmatprep.subr.bf16.mxu0 %v3925_v19  ;;  %v3771_v14 = vpack.c.bf16 %v2230_v10, %v2229_v57  ;;  %v1641_v10 = vrot.slane %v5109_v5, 2 }
 0x198   :  { %3718 = vmatpush3.bf16.msra.mxu1 %v3717_v13  ;;  %v2214_v13 = vld [vmem:[%s5312_s3 + $0x578] sm:$0xff] }
 0x199   :  { %3719 = vmatprep.subr.bf16.mxu1 %v3925_v19  ;;  %v3747_v18 = vpack.c.bf16 %v2214_v13, %v2213_v12  ;;  %v2282_v12 = vld [vmem:[%s5312_s3 + $0x798] sm:$0xff] }
 0x19a   :  { %3694 = vmatpush3.bf16.msra.mxu0 %v3693_v17  ;;  %v2248_v17 = vld [vmem:[%s5312_s3 + $0x688] sm:$0xff] }
 0x19b   :  { %3695 = vmatprep.subr.bf16.mxu0 %v3925_v19  ;;  %v3798_v22 = vpack.c.bf16 %v2248_v17, %v2247_v15  ;;  %v2266_v15 = vld [vmem:[%s5312_s3 + $0x718] sm:$0xff] }
 0x19c   :  { %3721 = vmatpush3.bf16.msra.mxu1 %v3720_v21  ;;  %v2232_v21 = vld [vmem:[%s5312_s3 + $0x608] sm:$0xff] }
 0x19d   :  { %3722 = vmatprep.subr.bf16.mxu1 %v3925_v19  ;;  %v3774_v27 = vpack.c.bf16 %v2232_v21, %v2231_v20  ;;  %v2284_v20 = vld [vmem:[%s5312_s3 + $0x7a8] sm:$0xff] }
 0x19e   :  { %3697 = vmatpush3.bf16.msra.mxu0 %v3696_v24  ;;  %v2249_v24 = vld [vmem:[%s5312_s3 + $0x690] sm:$0xff] }
 0x19f   :  { %3698 = vmatprep.subr.bf16.mxu0 %v3925_v19 }
 0x1a0   :  { %3724 = vmatpush3.bf16.msra.mxu1 %v3723_v28  ;;  %v1372_v28 = vrot.slane %v4870_v29, 4 }
 0x1a1   :  { %3749 = vmatprep.subr.bf16.mxu1 %v3925_v19 }
 0x1a2   :  { %3700 = vmatpush3.bf16.msra.mxu0 %v3699_v32  ;;  %v3801_v32 = vpack.c.bf16 %v2250_v25, %v2249_v24  ;;  %v2285_v25 = vld [vmem:[%s5312_s3 + $0x7b0] sm:$0xff] }
 0x1a3   :  { %3110 = vmatmul.mubr.f32.vlgmr.msra.gmra.mrb[24].mxu1 %v1282_v35  ;;  %3725 = vmatprep.subr.bf16.mxu0 %v3925_v19  ;;  %v2236_v35 = vld [vmem:[%s5312_s3 + $0x628] sm:$0xff] }
 0x1a4   :  { %3751 = vmatpush3.bf16.msra.mxu1 %v3750_v34  ;;  %3179 = vmatprep.mubr.msk.f32.mxu1 %vm3926_vm0, %v3927_v1  ;;  %v2235_v34 = vld [vmem:[%s5312_s3 + $0x620] sm:$0xff] }
 0x1a5   :  { %3075 = vmatmul.mubr.f32.vlgmr.msra.gmra.mrb[24].mxu0 %v4870_v29  ;;  %3752 = vmatprep.subr.bf16.mxu1 %v3925_v19  ;;  %v2251_v29 = vld [vmem:[%s5312_s3 + $0x6a0] sm:$0xff]  ;;  %v3780_v39 = vpack.c.bf16 %v2236_v35, %v2235_v34  ;;  %v2272_v35 = vld [vmem:[%s5312_s3 + $0x748] sm:$0xff] }
 0x1a6   :  { %3727 = vmatpush3.bf16.msra.mxu0 %v3726_v38  ;;  %3144 = vmatprep.mubr.msk.f32.mxu0 %vm3926_vm0, %v3927_v1  ;;  %v3804_v36 = vpack.c.bf16 %v2252_v33, %v2251_v29  ;;  %v2254_v38 = vld [vmem:[%s5312_s3 + $0x6b8] sm:$0xff]  ;;  %v2287_v29 = vld [vmem:[%s5312_s3 + $0x7c0] sm:$0xff]  ;;  %v2288_v33 = vld [vmem:[%s5312_s3 + $0x7c8] sm:$0xff] }
 0x1a7   :  { %3728 = vmatprep.subr.bf16.mxu0 %v3925_v19  ;;  %v3807_v43 = vpack.c.bf16 %v2254_v38, %v2253_v37  ;;  %v2271_v34 = vld [vmem:[%s5312_s3 + $0x740] sm:$0xff]  ;;  %v2289_v37 = vld [vmem:[%s5312_s3 + $0x7d0] sm:$0xff]  ;;  %v2290_v38 = vld [vmem:[%s5312_s3 + $0x7d8] sm:$0xff] }
 0x1a8   :  { %3754 = vmatpush3.bf16.msra.mxu1 %v3753_v42  ;;  %v2238_v42 = vld [vmem:[%s5312_s3 + $0x638] sm:$0xff] }
 0x1a9   :  { %3755 = vmatprep.subr.bf16.mxu1 %v3925_v19  ;;  %v3783_v47 = vpack.c.bf16 %v2238_v42, %v2237_v41  ;;  %v2273_v41 = vld [vmem:[%s5312_s3 + $0x750] sm:$0xff]  ;;  %v2274_v42 = vld [vmem:[%s5312_s3 + $0x758] sm:$0xff] }
 0x1aa   :  { %3730 = vmatpush3.bf16.msra.mxu0 %v3729_v46  ;;  %v2256_v46 = vld [vmem:[%s5312_s3 + $0x6c8] sm:$0xff] }
 0x1ab   :  { %3731 = vmatprep.subr.bf16.mxu0 %v3925_v19  ;;  %v3810_v49 = vpack.c.bf16 %v2256_v46, %v2255_v44  ;;  %v2291_v44 = vld [vmem:[%s5312_s3 + $0x7e0] sm:$0xff]  ;;  %v2292_v46 = vld [vmem:[%s5312_s3 + $0x7e8] sm:$0xff] }
 0x1ac   :  { %3757 = vmatpush3.bf16.msra.mxu1 %v3756_v40  ;;  %v2240_v40 = vld [vmem:[%s5312_s3 + $0x648] sm:$0xff] }
 0x1ad   :  { %3758 = vmatprep.subr.bf16.mxu1 %v3925_v19  ;;  %v3786_v51 = vpack.c.bf16 %v2240_v40, %v2239_v45  ;;  %v3837_v45 = vpack.c.bf16 %v2274_v42, %v2273_v41  ;;  %v1918_v41 = vld [vmem:[%s5314_s5 + $0x78] sm:$0xff] }
 0x1ae   :  { %3733 = vmatpush3.bf16.msra.mxu0 %v3732_v50  ;;  %v2258_v50 = vld [vmem:[%s5312_s3 + $0x6d8] sm:$0xff] }
 0x1af   :  { %3734 = vmatprep.subr.bf16.mxu0 %v3925_v19  ;;  %v3813_v53 = vpack.c.bf16 %v2258_v50, %v2257_v48  ;;  %v2276_v48 = vld [vmem:[%s5312_s3 + $0x768] sm:$0xff] }
 0x1b0   :  { %3760 = vmatpush3.bf16.msra.mxu1 %v3759_v58  ;;  %v2242_v58 = vld [vmem:[%s5312_s3 + $0x658] sm:$0xff] }
 0x1b1   :  { %3761 = vmatprep.subr.bf16.mxu1 %v3925_v19  ;;  %v3789_v56 = vpack.c.bf16 %v2242_v58, %v2241_v52 }
 0x1b2   :  { %3736 = vmatpush3.bf16.msra.mxu0 %v3735_v55  ;;  %v2260_v55 = vld [vmem:[%s5312_s3 + $0x6e8] sm:$0xff] }
 0x1b3   :  { %3737 = vmatprep.subr.bf16.mxu0 %v3925_v19  ;;  %v3816_v61 = vpack.c.bf16 %v2260_v55, %v2259_v54  ;;  %v2294_v54 = vld [vmem:[%s5312_s3 + $0x7f8] sm:$0xff] }
 0x1b4   :  { %3763 = vmatpush3.bf16.msra.mxu1 %v3762_v60  ;;  %v2244_v60 = vld [vmem:[%s5312_s3 + $0x668] sm:$0xff] }
 0x1b5   :  { %3764 = vmatprep.subr.bf16.mxu1 %v3925_v19  ;;  %v3792_v0 = vpack.c.bf16 %v2244_v60, %v2243_v59  ;;  %v2278_v59 = vld [vmem:[%s5312_s3 + $0x778] sm:$0xff] }
 0x1b6   :  { %3739 = vmatpush3.bf16.msra.mxu0 %v3738_v63  ;;  %v2262_v63 = vld [vmem:[%s5312_s3 + $0x6f8] sm:$0xff] }
 0x1b7   :  { %3740 = vmatprep.subr.bf16.mxu0 %v3925_v19  ;;  %v3819_v4 = vpack.c.bf16 %v2262_v63, %v2261_v62  ;;  %v1821_v62 = vrot.slane %v5109_v5, 6  ;;  %v1731_v63 = vrot.slane %v5109_v5, 4 }
 0x1b8   :  { %3766 = vmatpush3.bf16.msra.mxu1 %v3765_v3  ;;  %v2246_v3 = vld [vmem:[%s5312_s3 + $0x678] sm:$0xff] }
 0x1b9   :  { %3767 = vmatprep.subr.bf16.mxu1 %v3925_v19  ;;  %v3795_v8 = vpack.c.bf16 %v2246_v3, %v2245_v2 }
 0x1ba   :  { %3742 = vmatpush3.bf16.msra.mxu0 %v3741_v6  ;;  %v2279_v6 = vld [vmem:[%s5312_s3 + $0x780] sm:$0xff] }
 0x1bb   :  { %3743 = vmatprep.subr.bf16.mxu0 %v3925_v19  ;;  %v3846_v57 = vpack.c.bf16 %v2280_v7, %v2279_v6 }
 0x1bc   :  { %3769 = vmatpush3.bf16.msra.mxu1 %v3768_v9  ;;  %v2263_v9 = vld [vmem:[%s5312_s3 + $0x700] sm:$0xff] }
 0x1bd   :  { %3770 = vmatprep.subr.bf16.mxu1 %v3925_v19  ;;  %v3822_v13 = vpack.c.bf16 %v2264_v26, %v2263_v9 }
 0x1be   :  { %3745 = vmatpush3.bf16.msra.mxu0 %v3744_v11  ;;  %v2281_v11 = vld [vmem:[%s5312_s3 + $0x790] sm:$0xff] }
 0x1bf   :  { %3746 = vmatprep.subr.bf16.mxu0 %v3925_v19  ;;  %v3849_v17 = vpack.c.bf16 %v2282_v12, %v2281_v11  ;;  %v1904_v11 = vld [vmem:[%s5314_s5 + $0x8] sm:$0xff] }
 0x1c0   :  { %3772 = vmatpush3.bf16.msra.mxu1 %v3771_v14  ;;  %v2265_v14 = vld [vmem:[%s5312_s3 + $0x710] sm:$0xff] }
 0x1c1   :  { %3797 = vmatprep.subr.bf16.mxu1 %v3925_v19  ;;  %v3825_v21 = vpack.c.bf16 %v2266_v15, %v2265_v14 }
 0x1c2   :  { %3748 = vmatpush3.bf16.msra.mxu0 %v3747_v18  ;;  %v2283_v18 = vld [vmem:[%s5312_s3 + $0x7a0] sm:$0xff] }
 0x1c3   :  { %3180 = vmatmul.mubr.f32.vlgmr.msra.gmra.mrb[26].mxu1 %v1462_v23  ;;  %3773 = vmatprep.subr.bf16.mxu0 %v3925_v19  ;;  %v2268_v23 = vld [vmem:[%s5312_s3 + $0x728] sm:$0xff]  ;;  %v3852_v24 = vpack.c.bf16 %v2284_v20, %v2283_v18 }
 0x1c4   :  { %3799 = vmatpush3.bf16.msra.mxu1 %v3798_v22  ;;  %3249 = vmatprep.mubr.msk.f32.mxu1 %vm3926_vm0, %v3927_v1  ;;  %v2267_v22 = vld [vmem:[%s5312_s3 + $0x720] sm:$0xff]  ;;  %v1908_v18 = vld [vmem:[%s5314_s5 + $0x28] sm:$0xff] }
 0x1c5   :  { %3145 = vmatmul.mubr.f32.vlgmr.msra.gmra.mrb[26].mxu0 %v1372_v28  ;;  %3800 = vmatprep.subr.bf16.mxu1 %v3925_v19  ;;  %v3828_v28 = vpack.c.bf16 %v2268_v23, %v2267_v22  ;;  %v1910_v22 = vld [vmem:[%s5314_s5 + $0x38] sm:$0xff] }
 0x1c6   :  { %3775 = vmatpush3.bf16.msra.mxu0 %v3774_v27  ;;  %3214 = vmatprep.mubr.msk.f32.mxu0 %vm3926_vm0, %v3927_v1  ;;  %v2286_v27 = vld [vmem:[%s5312_s3 + $0x7b8] sm:$0xff] }
 0x1c7   :  { %3776 = vmatprep.subr.bf16.mxu0 %v3925_v19 }
 0x1c8   :  { %3802 = vmatpush3.bf16.msra.mxu1 %v3801_v32  ;;  %v3855_v32 = vpack.c.bf16 %v2286_v27, %v2285_v25  ;;  %v1912_v25 = vld [vmem:[%s5314_s5 + $0x48] sm:$0xff] }
 0x1c9   :  { %3803 = vmatprep.subr.bf16.mxu1 %v3925_v19 }
 0x1ca   :  { %3778 = vmatpush3.bf16.msra.mxu0 %v3777_v16  ;;  %v3831_v16 = vpack.c.bf16 %v2270_v31, %v2269_v30  ;;  %v1914_v30 = vld [vmem:[%s5314_s5 + $0x58] sm:$0xff] }
 0x1cb   :  { %3779 = vmatprep.subr.bf16.mxu0 %v3925_v19 }
 0x1cc   :  { %3805 = vmatpush3.bf16.msra.mxu1 %v3804_v36  ;;  %v3858_v36 = vpack.c.bf16 %v2288_v33, %v2287_v29  ;;  %v1915_v33 = vld [vmem:[%s5314_s5 + $0x60] sm:$0xff] }
 0x1cd   :  { %3806 = vmatprep.subr.bf16.mxu1 %v3925_v19 }
 0x1ce   :  { %3781 = vmatpush3.bf16.msra.mxu0 %v3780_v39  ;;  %v3834_v39 = vpack.c.bf16 %v2272_v35, %v2271_v34 }
 0x1cf   :  { %3782 = vmatprep.subr.bf16.mxu0 %v3925_v19 }
 0x1d0   :  { %3808 = vmatpush3.bf16.msra.mxu1 %v3807_v43  ;;  %v3861_v43 = vpack.c.bf16 %v2290_v38, %v2289_v37 }
 0x1d1   :  { %3809 = vmatprep.subr.bf16.mxu1 %v3925_v19 }
 0x1d2   :  { %3784 = vmatpush3.bf16.msra.mxu0 %v3783_v47 }
 0x1d3   :  { %3785 = vmatprep.subr.bf16.mxu0 %v3925_v19 }
 0x1d4   :  { %3811 = vmatpush3.bf16.msra.mxu1 %v3810_v49  ;;  %v2275_v49 = vld [vmem:[%s5312_s3 + $0x760] sm:$0xff] }
 0x1d5   :  { %3812 = vmatprep.subr.bf16.mxu1 %v3925_v19  ;;  %v3840_v55 = vpack.c.bf16 %v2276_v48, %v2275_v49 }
 0x1d6   :  { %3787 = vmatpush3.bf16.msra.mxu0 %v3786_v51  ;;  %v3864_v51 = vpack.c.bf16 %v2292_v46, %v2291_v44 }
 0x1d7   :  { %3788 = vmatprep.subr.bf16.mxu0 %v3925_v19 }
 0x1d8   :  { %3814 = vmatpush3.bf16.msra.mxu1 %v3813_v53  ;;  %v2293_v53 = vld [vmem:[%s5312_s3 + $0x7f0] sm:$0xff] }
 0x1d9   :  { %3815 = vmatprep.subr.bf16.mxu1 %v3925_v19  ;;  %v3867_v60 = vpack.c.bf16 %v2294_v54, %v2293_v53 }
 0x1da   :  { %3790 = vmatpush3.bf16.msra.mxu0 %v3789_v56  ;;  %v2277_v56 = vld [vmem:[%s5312_s3 + $0x770] sm:$0xff] }
 0x1db   :  { %3791 = vmatprep.subr.bf16.mxu0 %v3925_v19 }
 0x1dc   :  { %3817 = vmatpush3.bf16.msra.mxu1 %v3816_v61  ;;  %v3843_v61 = vpack.c.bf16 %v2278_v59, %v2277_v56 }
 0x1dd   :  { %3818 = vmatprep.subr.bf16.mxu1 %v3925_v19 }
 0x1de   :  { %3793 = vmatpush3.bf16.msra.mxu0 %v3792_v0 }
 0x1df   :  { %3794 = vmatprep.subr.bf16.mxu0 %v3925_v19 }
 0x1e0   :  { %3820 = vmatpush3.bf16.msra.mxu1 %v3819_v4 }
 0x1e1   :  { %3845 = vmatprep.subr.bf16.mxu1 %v3925_v19 }
 0x1e2   :  { %3796 = vmatpush3.bf16.msra.mxu0 %v3795_v8 }
 0x1e3   :  { %3250 = vmatmul.mubr.f32.vlgmr.msra.gmra.mrb[28].mxu1 %v1641_v10  ;;  %3821 = vmatprep.subr.bf16.mxu0 %v3925_v19 }
 0x1e4   :  { %3847 = vmatpush3.bf16.msra.mxu1 %v3846_v57  ;;  %3319 = vmatprep.mubr.msk.f32.mxu1 %vm3926_vm0, %v3927_v1 }
 0x1e5   :  { %3215 = vmatmul.mubr.f32.vlgmr.msra.gmra.mrb[28].mxu0 %v5109_v5  ;;  %3848 = vmatprep.subr.bf16.mxu1 %v3925_v19  ;;  %v1903_v5 = vld [vmem:[%s5314_s5] sm:$0xff] }
 0x1e6   :  { %3823 = vmatpush3.bf16.msra.mxu0 %v3822_v13  ;;  %3284 = vmatprep.mubr.msk.f32.mxu0 %vm3926_vm0, %v3927_v1  ;;  %v3870_v12 = vpack.c.bf16 %v1904_v11, %v1903_v5  ;;  %v1906_v13 = vld [vmem:[%s5314_s5 + $0x18] sm:$0xff] }
 0x1e7   :  { %3824 = vmatprep.subr.bf16.mxu0 %v3925_v19 }
 0x1e8   :  { %3850 = vmatpush3.bf16.msra.mxu1 %v3849_v17  ;;  %v1907_v17 = vld [vmem:[%s5314_s5 + $0x20] sm:$0xff] }
 0x1e9   :  { %3851 = vmatprep.subr.bf16.mxu1 %v3925_v19  ;;  %v3876_v20 = vpack.c.bf16 %v1908_v18, %v1907_v17 }
 0x1ea   :  { %3826 = vmatpush3.bf16.msra.mxu0 %v3825_v21  ;;  %v1909_v21 = vld [vmem:[%s5314_s5 + $0x30] sm:$0xff] }
 0x1eb   :  { %3827 = vmatprep.subr.bf16.mxu0 %v3925_v19  ;;  %v3879_v23 = vpack.c.bf16 %v1910_v22, %v1909_v21 }
 0x1ec   :  { %3853 = vmatpush3.bf16.msra.mxu1 %v3852_v24  ;;  %v1911_v24 = vld [vmem:[%s5314_s5 + $0x40] sm:$0xff] }
 0x1ed   :  { %3854 = vmatprep.subr.bf16.mxu1 %v3925_v19  ;;  %v3882_v27 = vpack.c.bf16 %v1912_v25, %v1911_v24 }
 0x1ee   :  { %3829 = vmatpush3.bf16.msra.mxu0 %v3828_v28  ;;  %v1913_v28 = vld [vmem:[%s5314_s5 + $0x50] sm:$0xff] }
 0x1ef   :  { %3830 = vmatprep.subr.bf16.mxu0 %v3925_v19  ;;  %v3885_v31 = vpack.c.bf16 %v1914_v30, %v1913_v28 }
 0x1f0   :  { %3856 = vmatpush3.bf16.msra.mxu1 %v3855_v32 }
 0x1f1   :  { %3857 = vmatprep.subr.bf16.mxu1 %v3925_v19 }
 0x1f2   :  { %3832 = vmatpush3.bf16.msra.mxu0 %v3831_v16  ;;  %v1916_v16 = vld [vmem:[%s5314_s5 + $0x68] sm:$0xff] }
 0x1f3   :  { %3833 = vmatprep.subr.bf16.mxu0 %v3925_v19  ;;  %v3888_v35 = vpack.c.bf16 %v1916_v16, %v1915_v33 }
 0x1f4   :  { %3859 = vmatpush3.bf16.msra.mxu1 %v3858_v36 }
 0x1f5   :  { %3860 = vmatprep.subr.bf16.mxu1 %v3925_v19 }
 0x1f6   :  { %3835 = vmatpush3.bf16.msra.mxu0 %v3834_v39  ;;  %v633_v47 = vpop.f32.mrb[16].mxu1  ;;  %v1917_v39 = vld [vmem:[%s5314_s5 + $0x70] sm:$0xff] }
 0x1f7   :  { %v2831_v40 = vpop.f32.mrb[17].mxu1  ;;  %3836 = vmatprep.subr.bf16.mxu0 %v3925_v19  ;;  %v3891_v42 = vpack.c.bf16 %v1918_v41, %v1917_v39 }
 0x1f8   :  { %3862 = vmatpush3.bf16.msra.mxu1 %v3861_v43  ;;  %v563_v50 = vpop.f32.mrb[16].mxu0 }
 0x1f9   :  { %v634_v52 = vadd.f32 %v633_v47, %v563_v50  ;;  %v2796_v58 = vpop.f32.mrb[17].mxu0  ;;  %3863 = vmatprep.subr.bf16.mxu1 %v3925_v19 }
 0x1fa   :  { %3838 = vmatpush3.bf16.msra.mxu0 %v3837_v45 }
 0x1fb   :  { %3839 = vmatprep.subr.bf16.mxu0 %v3925_v19 }
 0x1fc   :  { %3865 = vmatpush3.bf16.msra.mxu1 %v3864_v51 }
 0x1fd   :  { %3866 = vmatprep.subr.bf16.mxu1 %v3925_v19 }
 0x1fe   :  { %3841 = vmatpush3.bf16.msra.mxu0 %v3840_v55 }
 0x1ff   :  { %3842 = vmatprep.subr.bf16.mxu0 %v3925_v19 }
 0x200   :  { %3868 = vmatpush3.bf16.msra.mxu1 %v3867_v60 }
 0x202   :  { %3844 = vmatpush3.bf16.msra.mxu0 %v3843_v61 }
 0x203   :  { %3320 = vmatmul.mubr.f32.vlgmr.msra.gmra.mrb[30].mxu1 %v1821_v62  ;;  %3869 = vmatprep.subr.bf16.mxu0 %v3925_v19 }
 0x205   :  { %3285 = vmatmul.mubr.f32.vlgmr.msra.gmra.mrb[30].mxu0 %v1731_v63 }
 0x206   :  { %3354 = vmatprep.mubr.msk.f32.mxu0 %vm3926_vm0, %v3927_v1  ;;  %v1905_v1 = vld [vmem:[%s5314_s5 + $0x10] sm:$0xff]  ;;  %3871 = vmatpush3.bf16.msra.mxu0 %v3870_v12 }
 0x207   :  { %v3873_v15 = vpack.c.bf16 %v1906_v13, %v1905_v1  ;;  %3872 = vmatprep.subr.bf16.mxu0 %v3925_v19 }
 0x20a   :  { %3874 = vmatpush3.bf16.msra.mxu0 %v3873_v15 }
 0x20b   :  { %3875 = vmatprep.subr.bf16.mxu0 %v3925_v19 }
 0x20e   :  { %3877 = vmatpush3.bf16.msra.mxu0 %v3876_v20 }
 0x20f   :  { %3878 = vmatprep.subr.bf16.mxu0 %v3925_v19 }
 0x212   :  { %3880 = vmatpush3.bf16.msra.mxu0 %v3879_v23 }
 0x213   :  { %3881 = vmatprep.subr.bf16.mxu0 %v3925_v19 }
 0x216   :  { %v812_v0 = vpop.f32.mrb[18].mxu1  ;;  %3883 = vmatpush3.bf16.msra.mxu0 %v3882_v27 }
 0x217   :  { %v2901_v2 = vpop.f32.mrb[19].mxu1  ;;  %3884 = vmatprep.subr.bf16.mxu0 %v3925_v19 }
 0x218   :  { %v722_v3 = vpop.f32.mrb[18].mxu0  ;;  %v2295_v2 = vld [vmem:[%s5313_s4] ss:$0 sm:$0xff]  ;;  %s3928_s4 = smov [#allocation2]  }
 0x219   :  { %v726_v4 = vadd.f32 %v722_v3, %v634_v52  ;;  %v2866_v6 = vpop.f32.mrb[19].mxu0 }
 0x21a   :  { %3886 = vmatpush3.bf16.msra.mxu0 %v3885_v31 }
 0x21b   :  { %v816_v7 = vadd.f32 %v812_v0, %v726_v4  ;;  %3887 = vmatprep.subr.bf16.mxu0 %v3925_v19 }
 0x21e   :  { %3889 = vmatpush3.bf16.msra.mxu0 %v3888_v35 }
 0x21f   :  { %3890 = vmatprep.subr.bf16.mxu0 %v3925_v19 }
 0x222   :  { %3892 = vmatpush3.bf16.msra.mxu0 %v3891_v42 }
 0x236   :  { %v991_v8 = vpop.f32.mrb[20].mxu1 }
 0x237   :  { %v2971_v9 = vpop.f32.mrb[21].mxu1 }
 0x238   :  { %v900_v26 = vpop.f32.mrb[20].mxu0  ;;  %v2296_v9 = vld [vmem:[%s5315_s6] ss:$0 sm:$0xff]  ;;  %s2022_s6 = sshll.u32 %s3928_s4, 4  ;;  %s2023_s6 = int_to_ptr.vmem [resolvable:$true] %s2022_s6 }
 0x239   :  { %v904_v57 = vadd.f32 %v900_v26, %v816_v7  ;;  %v2936_v10 = vpop.f32.mrb[21].mxu0  ;;  %v1996_v7 = vlaneseq  ;;  %s3901_s14 = scalar_lea.vmem %s2023_s6, 32  ;;  %p3906_p1 = scmp.lt.s32.totalorder %s2023_s6, %s2023_s6 }
 0x23a   :  { %p3902_p0 = scmp.ne.s32.totalorder %s2023_s6, %s3901_s14  ;;  %p3907_p2 = scmp.lt.s32.totalorder %s3901_s14, %s3901_s14 }
 0x23b   :  { %v995_v14 = vadd.f32 %v991_v8, %v904_v57  ;;  %v1997_v8 = vand.u32 127, %v1996_v7 }
 0x23c   :  { %p3908_p3 = por %p3907_p2, %p3906_p1 }
 0x23d   :  { %vm1998_vm1 = vcmp.lt.s32.totalorder %v1997_v8, 10 }
 0x23e   :  { %p3909_p4 = pnand %p3908_p3, %p3902_p0 }
 0x256   :  { %v1171_v32 = vpop.f32.mrb[22].mxu1 }
 0x257   :  { %v3041_v29 = vpop.f32.mrb[23].mxu1 }
 0x258   :  { %v1081_v34 = vpop.f32.mrb[22].mxu0 }
 0x259   :  { %v1085_v36 = vadd.f32 %v1081_v34, %v995_v14  ;;  %v3006_v37 = vpop.f32.mrb[23].mxu0 }
 0x25b   :  { %v1175_v38 = vadd.f32 %v1171_v32, %v1085_v36 }
 0x276   :  { %v1350_v43 = vpop.f32.mrb[24].mxu1 }
 0x277   :  { %v3111_v44 = vpop.f32.mrb[25].mxu1 }
 0x278   :  { %v1259_v46 = vpop.f32.mrb[24].mxu0 }
 0x279   :  { %v1263_v47 = vadd.f32 %v1259_v46, %v1175_v38  ;;  %v3076_v45 = vpop.f32.mrb[25].mxu0 }
 0x27b   :  { %v1354_v40 = vadd.f32 %v1350_v43, %v1263_v47 }
 0x296   :  { %v1530_v49 = vpop.f32.mrb[26].mxu1 }
 0x297   :  { %v3181_v48 = vpop.f32.mrb[27].mxu1 }
 0x298   :  { %v1440_v50 = vpop.f32.mrb[26].mxu0 }
 0x299   :  { %v1444_v19 = vadd.f32 %v1440_v50, %v1354_v40  ;;  %v3146_v51 = vpop.f32.mrb[27].mxu0 }
 0x29b   :  { %v1534_v52 = vadd.f32 %v1530_v49, %v1444_v19 }
 0x2b6   :  { %v1709_v58 = vpop.f32.mrb[28].mxu1 }
 0x2b7   :  { %v3251_v53 = vpop.f32.mrb[29].mxu1 }
 0x2b8   :  { %v1618_v54 = vpop.f32.mrb[28].mxu0 }
 0x2b9   :  { %v1622_v55 = vadd.f32 %v1618_v54, %v1534_v52  ;;  %v3216_v56 = vpop.f32.mrb[29].mxu0 }
 0x2bb   :  { %v1713_v59 = vadd.f32 %v1709_v58, %v1622_v55 }
 0x2d6   :  { %v1889_v60 = vpop.f32.mrb[30].mxu1 }
 0x2d7   :  { %v3321_v61 = vpop.f32.mrb[31].mxu1 }
 0x2d8   :  { %v1799_v62 = vpop.f32.mrb[30].mxu0 }
 0x2d9   :  { %v1803_v63 = vadd.f32 %v1799_v62, %v1713_v59  ;;  %v3286_v0 = vpop.f32.mrb[31].mxu0 }
 0x2db   :  { %v1893_v3 = vadd.f32 %v1889_v60, %v1803_v63 }
 0x2dd   :  { %v1901_v4 = vadd.f32 %v2295_v2, %v1893_v3 }
 0x2df   :  { %v1902_v6 = vmax.f32 %v1901_v4, 0.0 }
 0x2e1   :  { %3355 = vmatmul.mubr.f32.vlgmr.msra.gmra.mrb[32].mxu0 %v1902_v6 }
 0x3b4   :  { %v1992_v26 = vpop.f32.mrb[32].mxu0 }
 0x3b5   :  { %v1993_v57 = vadd.f32 %v2296_v9, %v1992_v26  ;;  %v3356_v10 = vpop.f32.mrb[33].mxu0 }
 0x3b7   :  { %v1999_v5 = vsel %vm1998_vm1, %v1993_v57, -1e+30 }
 0x3b8   :  { %v2001_v11 = vsel %vm2000_vm2, %v1999_v5, -inf }
 0x3b9   :  { %2002 = vmax.xlane.f32.xlu0 %v2001_v11 }
 0x446   :  { %v2003_v1 = vpop.xlane.xlu0 %2002 }
 0x447   :  { %v2004_v12 = vsub.f32 %v1999_v5, %v2003_v1 }
 0x449   :  { %v2005_v13 = vmul.f32 1.442695, %v2004_v12 }
 0x44b   :  { %3897 = vpow2.f32 %v2005_v13 }
 0x455   :  { %v3898_v14 = vpop.eup %3897 }
 0x456   :  { %v2007_v15 = vsel %vm1998_vm1, %v3898_v14, 0.0 }
 0x457   :  { %v2008_v17 = vsel %vm2000_vm2, %v2007_v15, 0.0 }
 0x458   :  { %2009 = vadd.xlane.f32.xlu0 %v2008_v17 }
 0x4e5   :  { %v2010_v18 = vpop.xlane.xlu0 %2009 }
 0x4e6   :  { %3899 = vlog2.f32 %v2010_v18 }
 0x4f0   :  { %v3900_v20 = vpop.eup %3899 }
 0x4f1   :  { %v2012_v21 = vmul.f32 0.6931472, %v3900_v20 }
 0x4f3   :  { %v2013_v22 = vadd.f32 %v2012_v21, %v2003_v1 }
 0x4f5   :  { %v2014_v23 = vsub.f32 %v1999_v5, %v2013_v22 }
 0x4f7   :  { %2015 = vst [vmem:[#allocation2] sm:$0x3] %v2014_v23 }
 0x4f8   :  { %3912 = shalt.err (!%p3909_p4)
}
 0x4f9   :  { %s3913_s0 = scalar_lea.hbm %s5316_s7, 32 }
 0x4fa   :  { %p3914_p5 = scmp.ne.s32.totalorder %s5316_s7, %s3913_s0  ;;  %p3917_p6 = scmp.lt.u32.totalorder %s3913_s0, %s5316_s7 }
 0x4fc   :  { %p3919_p7 = pnand %p3917_p6, %p3914_p5 }
 0x4fe   :  { %3922 = shalt.err (!%p3919_p7)
}
 0x4ff   :  { %2025 = dma.vmem_to_hbm [thread:$0]  %s2023_s6, 32, %s5316_s7, [#allocation3]  }
 0x500   :  { %3923 = dma.done.wait [#allocation3], 32  }
 0x501   :  { %3924 = vsyncadd [#allocation3], 4294967264 }
 0x502   :  { %2029 = vsyncpa [#allocation3], 1 }

</bundles_post_ra>
